<compile_context>
chip_gen: v5e
topology: v5e:2x2
jax: 0.10.0
libtpu: 0.0.40
codegen_flags: <defaults>
</compile_context>

<pallas_src>
import numpy as np
import jax
import jax.numpy as jnp
from jax.experimental import pallas as pl
from jax.experimental.pallas import tpu as pltpu

NEG_SLOPE = 0.01   # nn.LeakyReLU default negative_slope
BN_EPS = 1e-5      # nn.BatchNorm2d default eps
LANE = 128
K = 3              # conv_size == shortcut_size == 3 (module defaults)
PAD = 1


def _leaky(x):
    return jnp.where(x > 0, x, NEG_SLOPE * x)


def _round_up(n, m):
    return (n + m - 1) // m * m


def make_resblock_kernel(H_out, W_out, Cin_pad, C_pad, stride):
    HW = H_out * W_out
    taps = [(kh, kw) for kh in range(K) for kw in range(K)]

    def kernel(x_ref, w1s_ref, w2_ref, w3_ref, bn_ref, o_ref,
               pat_ref, h2pad_ref, col3_ref):
        # ---- in-kernel im2col of the parity-decomposed, zero-padded input ----
        # tap (kh,kw) at stride s reads parity image (kh%s, kw%s) at a plain
        # (unstrided) offset (kh//s, kw//s): contiguous slices only.
        for t, (kh, kw) in enumerate(taps):
            p_idx = (kh % stride) * stride + (kw % stride)
            oh, ow = kh // stride, kw // stride
            win = x_ref[0, p_idx, oh:oh + H_out, ow:ow + W_out, :]
            pat_ref[:, t * Cin_pad:(t + 1) * Cin_pad] = win.reshape(HW, Cin_pad)

        # ---- conv1 + shortcut conv fused into ONE bf16 MXU matmul (shared LHS)
        h1s = jnp.dot(pat_ref[...], w1s_ref[...],
                      preferred_element_type=jnp.float32)        # (HW, 2*C_pad)
        h1 = h1s[:, :C_pad] * bn_ref[0:1, :] + bn_ref[1:2, :]    # BN1
        h1 = _leaky(h1)
        sc = h1s[:, C_pad:] * bn_ref[4:5, :] + bn_ref[5:6, :]    # shortcut BN

        # ---- conv2 (1x1) + LeakyReLU ----
        h2 = jnp.dot(h1.astype(jnp.bfloat16), w2_ref[...],
                     preferred_element_type=jnp.float32)         # (HW, C_pad)
        h2 = _leaky(h2)

        # ---- conv3 (3x3, stride 1, pad 1): pad scratch + single im2col matmul
        # Zero only the 1-pixel border (interior fully overwritten below).
        # Done every iteration so megacore-split grids stay correct.
        zero_row = jnp.zeros((1, W_out + 2, C_pad), jnp.bfloat16)
        zero_col = jnp.zeros((H_out + 2, 1, C_pad), jnp.bfloat16)
        h2pad_ref[0:1, :, :] = zero_row
        h2pad_ref[H_out + 1:H_out + 2, :, :] = zero_row
        h2pad_ref[:, 0:1, :] = zero_col
        h2pad_ref[:, W_out + 1:W_out + 2, :] = zero_col
        h2pad_ref[1:1 + H_out, 1:1 + W_out, :] = (
            h2.astype(jnp.bfloat16).reshape(H_out, W_out, C_pad))

        for t, (kh, kw) in enumerate(taps):
            win = h2pad_ref[kh:kh + H_out, kw:kw + W_out, :]
            col3_ref[:, t * C_pad:(t + 1) * C_pad] = win.reshape(HW, C_pad)

        h3 = jnp.dot(col3_ref[...], w3_ref[...],
                     preferred_element_type=jnp.float32)         # (HW, C_pad)
        h3 = h3 * bn_ref[2:3, :] + bn_ref[3:4, :]                # BN2

        # ---- residual add + final activation ----
        o_ref[0] = _leaky(h3 + sc)

    return kernel


def _conv_weight_matrix(w, cin_pad, cout_pad):
    """OIHW -> (K*K*cin_pad, cout_pad), rows ordered (kh, kw, ci) ci-fastest."""
    co, ci, kh, kw = w.shape
    wt = jnp.transpose(w, (2, 3, 1, 0))                       # (kh, kw, ci, co)
    wt = jnp.pad(wt, ((0, 0), (0, 0), (0, cin_pad - ci), (0, cout_pad - co)))
    return wt.reshape(kh * kw * cin_pad, cout_pad)


def resblock_forward(x_nchw, params, stride):
    """x_nchw: (N, C_in, H, W) float32. Returns (N, C_out, H_out, W_out) f32."""
    w1, w2, w3, ws, bn1, bn2, bns = params
    N, C_in, H, W = x_nchw.shape
    C_out = w1.shape[0]
    H_out = (H + 2 * PAD - K) // stride + 1
    W_out = (W + 2 * PAD - K) // stride + 1
    HW = H_out * W_out

    Cin_pad = _round_up(C_in, LANE)
    C_pad = _round_up(C_out, LANE)

    # ---- input: NCHW -> NHWC, zero pad, split into stride^2 parity sub-images
    # (total bytes ~= padded input; no 9x im2col inflation in HBM).
    x = jnp.transpose(x_nchw, (0, 2, 3, 1))
    xp = jnp.pad(x, ((0, 0), (PAD, PAD), (PAD, PAD), (0, Cin_pad - C_in)))
    Hs = (K - 1) // stride + H_out
    Ws = (K - 1) // stride + W_out
    subs = []
    for a in range(stride):
        for b in range(stride):
            sub = xp[:, a::stride, b::stride, :]
            sub = sub[:, :Hs, :Ws, :]
            sub = jnp.pad(sub, ((0, 0), (0, Hs - sub.shape[1]),
                                (0, Ws - sub.shape[2]), (0, 0)))
            subs.append(sub)
    xs = jnp.stack(subs, axis=1).astype(jnp.bfloat16)   # (N, s*s, Hs, Ws, Cin_pad)

    # ---- weights (bf16, lane-padded).  conv1 + shortcut fused along out-chans.
    w1_k = _conv_weight_matrix(w1, Cin_pad, C_pad)
    ws_k = _conv_weight_matrix(ws, Cin_pad, C_pad)
    w1s_k = jnp.concatenate([w1_k, ws_k], axis=1).astype(jnp.bfloat16)  # (9Cin,2C)
    w2_k = _conv_weight_matrix(w2, C_pad, C_pad).astype(jnp.bfloat16)   # (C, C)
    w3_k = _conv_weight_matrix(w3, C_pad, C_pad).astype(jnp.bfloat16)   # (9C, C)

    # ---- fold BatchNorm (eval) into per-channel scale/bias, lane-padded.
    def fold(bn):
        g, b, m, v = bn
        s = g / jnp.sqrt(v + BN_EPS)
        return s, b - m * s
    rows = []
    for bn in (bn1, bn2, bns):
        s, b = fold(bn)
        rows += [jnp.pad(s, (0, C_pad - C_out)), jnp.pad(b, (0, C_pad - C_out))]
    bn_k = jnp.stack(rows, axis=0).astype(jnp.float32)                  # (6, C_pad)

    # ---- VMEM budget / cost estimate
    blk_in = stride * stride * Hs * Ws * Cin_pad * 2
    blk_out = HW * C_pad * 4
    w_bytes = (9 * Cin_pad * 2 * C_pad + C_pad * C_pad + 9 * C_pad * C_pad) * 2 \
        + 6 * C_pad * 4
    scratch_bytes = HW * 9 * Cin_pad * 2 + (H_out + 2) * (W_out + 2) * C_pad * 2 \
        + HW * 9 * C_pad * 2
    need = 2 * (blk_in + blk_out) + 2 * w_bytes + scratch_bytes
    vmem_limit = int(min(max(2 * need, 32 * 1024 * 1024), 64 * 1024 * 1024))

    flops = int(2 * N * HW * (9 * Cin_pad * 2 * C_pad + C_pad * C_pad
                              + 9 * C_pad * C_pad))
    bytes_accessed = int(xs.size * 2 + (w1s_k.size + w2_k.size + w3_k.size) * 2
                         + bn_k.size * 4 + N * HW * C_pad * 4)

    kernel = make_resblock_kernel(H_out, W_out, Cin_pad, C_pad, stride)
    out_flat = pl.pallas_call(
        kernel,
        out_shape=jax.ShapeDtypeStruct((N, HW, C_pad), jnp.float32),
        grid_spec=pltpu.PrefetchScalarGridSpec(
            num_scalar_prefetch=0,
            grid=(N,),
            in_specs=[
                pl.BlockSpec((1, stride * stride, Hs, Ws, Cin_pad),
                             lambda n: (n, 0, 0, 0, 0)),            # parity input
                pl.BlockSpec((9 * Cin_pad, 2 * C_pad), lambda n: (0, 0)),  # w1|ws
                pl.BlockSpec((C_pad, C_pad), lambda n: (0, 0)),            # w2
                pl.BlockSpec((9 * C_pad, C_pad), lambda n: (0, 0)),        # w3
                pl.BlockSpec((6, C_pad), lambda n: (0, 0)),                # BN
            ],
            out_specs=pl.BlockSpec((1, HW, C_pad), lambda n: (n, 0, 0)),
            scratch_shapes=[
                pltpu.VMEM((HW, 9 * Cin_pad), jnp.bfloat16),          # conv1 im2col
                pltpu.VMEM((H_out + 2, W_out + 2, C_pad), jnp.bfloat16),  # h2 pad
                pltpu.VMEM((HW, 9 * C_pad), jnp.bfloat16),            # conv3 im2col
            ],
        ),
        compiler_params=pltpu.CompilerParams(
            dimension_semantics=("parallel",),
            vmem_limit_bytes=vmem_limit),
        cost_estimate=pl.CostEstimate(flops=flops, transcendentals=0,
                                      bytes_accessed=bytes_accessed),
    )(xs, w1s_k, w2_k, w3_k, bn_k)

    out = out_flat[:, :, :C_out].reshape(N, H_out, W_out, C_out)
    return jnp.transpose(out, (0, 3, 1, 2))                         # back to NCHW


def ref_forward(x, params, stride):
    """Pure-JAX f32 reference (lax.conv), NCHW, inference-mode semantics."""
    w1, w2, w3, ws, bn1, bn2, bns = params
    dn = ('NCHW', 'OIHW', 'NCHW')

    def conv(x, w, s, p):
        return jax.lax.conv_general_dilated(x, w, (s, s), ((p, p), (p, p)),
                                            dimension_numbers=dn)

    def bn(x, prm):
        g, b, m, v = [a.reshape(1, -1, 1, 1) for a in prm]
        return (x - m) / jnp.sqrt(v + BN_EPS) * g + b

    h = conv(x, w1, stride, 1)                  # Dropout = identity (eval)
    h = _leaky(bn(h, bn1))
    h = _leaky(conv(h, w2, 1, 0))
    h = bn(conv(h, w3, 1, 1), bn2)
    sc = bn(conv(x, ws, stride, 1), bns)
    return _leaky(h + sc)


if __name__ == "__main__":
    N, C_in, C_out, H, W, stride = 2, 4, 8, 16, 16, 2
    key = jax.random.PRNGKey(0)
    ks = jax.random.split(key, 8)

    x = jax.random.normal(ks[0], (N, C_in, H, W), jnp.float32)
    w1 = jax.random.normal(ks[1], (C_out, C_in, 3, 3), jnp.float32) * 0.2
    w2 = jax.random.normal(ks[2], (C_out, C_out, 1, 1), jnp.float32) * 0.2
    w3 = jax.random.normal(ks[3], (C_out, C_out, 3, 3), jnp.float32) * 0.2
    ws = jax.random.normal(ks[4], (C_out, C_in, 3, 3), jnp.float32) * 0.2

    def bn_params(k):
        k1, k2, k3, k4 = jax.random.split(k, 4)
        gamma = 1.0 + 0.1 * jax.random.normal(k1, (C_out,), jnp.float32)
        beta = 0.1 * jax.random.normal(k2, (C_out,), jnp.float32)
        mean = 0.1 * jax.random.normal(k3, (C_out,), jnp.float32)
        var = 1.0 + 0.1 * jax.random.uniform(k4, (C_out,), jnp.float32)
        return gamma, beta, mean, var

    bn1, bn2, bns = bn_params(ks[5]), bn_params(ks[6]), bn_params(ks[7])
    params = (w1, w2, w3, ws, bn1, bn2, bns)

    out = resblock_forward(x, params, stride)
    out = jax.block_until_ready(out)

    ref = ref_forward(x, params, stride)
    # bf16-matmul path: expect ~1e-2 scale agreement against the f32 reference.
    np.testing.assert_allclose(np.asarray(out), np.asarray(ref), rtol=4e-2, atol=4e-2)
    print("KERNEL_OK")
</pallas_src>

<mosaic_0001>
module attributes {stable_mosaic.version = 11 : i64} {
  func.func @kernel(%arg0: i32, %arg1: memref<1x4x9x9x128xbf16, #tpu.memory_space<vmem>>, %arg2: memref<1152x256xbf16, #tpu.memory_space<vmem>>, %arg3: memref<128x128xbf16, #tpu.memory_space<vmem>>, %arg4: memref<1152x128xbf16, #tpu.memory_space<vmem>>, %arg5: memref<6x128xf32, #tpu.memory_space<vmem>>, %arg6: memref<1x64x128xf32, #tpu.memory_space<vmem>>, %arg7: memref<64x1152xbf16, #tpu.memory_space<vmem>>, %arg8: memref<10x10x128xbf16, #tpu.memory_space<vmem>>, %arg9: memref<64x1152xbf16, #tpu.memory_space<vmem>>) attributes {dimension_semantics = [#tpu.dimension_semantics<parallel>], iteration_bounds = array<i64: 2>, scalar_prefetch = 0 : i64, scratch_operands = 3 : i64, tpu.core_type = #tpu.core_type<tc>, window_params = [{transform_indices = @transform_0, window_bounds = array<i64: 1, 4, 9, 9, 128>}, {pipeline_mode = #tpu.pipeline_mode<synchronous>, transform_indices = @transform_1, window_bounds = array<i64: 1152, 256>}, {pipeline_mode = #tpu.pipeline_mode<synchronous>, transform_indices = @transform_2, window_bounds = array<i64: 128, 128>}, {pipeline_mode = #tpu.pipeline_mode<synchronous>, transform_indices = @transform_3, window_bounds = array<i64: 1152, 128>}, {pipeline_mode = #tpu.pipeline_mode<synchronous>, transform_indices = @transform_4, window_bounds = array<i64: 6, 128>}, {transform_indices = @transform_5, window_bounds = array<i64: 1, 64, 128>}]} {
    %c0 = arith.constant 0 : index
    %c0_0 = arith.constant 0 : index
    %c0_1 = arith.constant 0 : index
    %c0_2 = arith.constant 0 : index
    %c0_3 = arith.constant 0 : index
    %0 = vector.load %arg1[%c0, %c0_0, %c0_1, %c0_2, %c0_3] : memref<1x4x9x9x128xbf16, #tpu.memory_space<vmem>>, vector<1x1x8x8x128xbf16>
    %1 = vector.shape_cast %0 : vector<1x1x8x8x128xbf16> to vector<8x8x128xbf16>
    %2 = vector.shape_cast %1 : vector<8x8x128xbf16> to vector<64x128xbf16>
    %c0_4 = arith.constant 0 : index
    %c0_5 = arith.constant 0 : index
    %3 = vector.load %arg7[%c0_4, %c0_5] : memref<64x1152xbf16, #tpu.memory_space<vmem>>, vector<64x128xbf16>
    tpu.vector_store %arg7[%c0_4, %c0_5], %2 {strides = array<i32>} : memref<64x1152xbf16, #tpu.memory_space<vmem>>, vector<64x128xbf16>,
    %c0_6 = arith.constant 0 : index
    %c1 = arith.constant 1 : index
    %c0_7 = arith.constant 0 : index
    %c0_8 = arith.constant 0 : index
    %c0_9 = arith.constant 0 : index
    %4 = vector.load %arg1[%c0_6, %c1, %c0_7, %c0_8, %c0_9] : memref<1x4x9x9x128xbf16, #tpu.memory_space<vmem>>, vector<1x1x8x8x128xbf16>
    %5 = vector.shape_cast %4 : vector<1x1x8x8x128xbf16> to vector<8x8x128xbf16>
    %6 = vector.shape_cast %5 : vector<8x8x128xbf16> to vector<64x128xbf16>
    %c0_10 = arith.constant 0 : index
    %c128 = arith.constant 128 : index
    %7 = vector.load %arg7[%c0_10, %c128] : memref<64x1152xbf16, #tpu.memory_space<vmem>>, vector<64x128xbf16>
    tpu.vector_store %arg7[%c0_10, %c128], %6 {strides = array<i32>} : memref<64x1152xbf16, #tpu.memory_space<vmem>>, vector<64x128xbf16>,
    %c0_11 = arith.constant 0 : index
    %c0_12 = arith.constant 0 : index
    %c0_13 = arith.constant 0 : index
    %c1_14 = arith.constant 1 : index
    %c0_15 = arith.constant 0 : index
    %8 = vector.load %arg1[%c0_11, %c0_12, %c0_13, %c1_14, %c0_15] : memref<1x4x9x9x128xbf16, #tpu.memory_space<vmem>>, vector<1x1x8x8x128xbf16>
    %9 = vector.shape_cast %8 : vector<1x1x8x8x128xbf16> to vector<8x8x128xbf16>
    %10 = vector.shape_cast %9 : vector<8x8x128xbf16> to vector<64x128xbf16>
    %c0_16 = arith.constant 0 : index
    %c256 = arith.constant 256 : index
    %11 = vector.load %arg7[%c0_16, %c256] : memref<64x1152xbf16, #tpu.memory_space<vmem>>, vector<64x128xbf16>
    tpu.vector_store %arg7[%c0_16, %c256], %10 {strides = array<i32>} : memref<64x1152xbf16, #tpu.memory_space<vmem>>, vector<64x128xbf16>,
    %c0_17 = arith.constant 0 : index
    %c2 = arith.constant 2 : index
    %c0_18 = arith.constant 0 : index
    %c0_19 = arith.constant 0 : index
    %c0_20 = arith.constant 0 : index
    %12 = vector.load %arg1[%c0_17, %c2, %c0_18, %c0_19, %c0_20] : memref<1x4x9x9x128xbf16, #tpu.memory_space<vmem>>, vector<1x1x8x8x128xbf16>
    %13 = vector.shape_cast %12 : vector<1x1x8x8x128xbf16> to vector<8x8x128xbf16>
    %14 = vector.shape_cast %13 : vector<8x8x128xbf16> to vector<64x128xbf16>
    %c0_21 = arith.constant 0 : index
    %c384 = arith.constant 384 : index
    %15 = vector.load %arg7[%c0_21, %c384] : memref<64x1152xbf16, #tpu.memory_space<vmem>>, vector<64x128xbf16>
    tpu.vector_store %arg7[%c0_21, %c384], %14 {strides = array<i32>} : memref<64x1152xbf16, #tpu.memory_space<vmem>>, vector<64x128xbf16>,
    %c0_22 = arith.constant 0 : index
    %c3 = arith.constant 3 : index
    %c0_23 = arith.constant 0 : index
    %c0_24 = arith.constant 0 : index
    %c0_25 = arith.constant 0 : index
    %16 = vector.load %arg1[%c0_22, %c3, %c0_23, %c0_24, %c0_25] : memref<1x4x9x9x128xbf16, #tpu.memory_space<vmem>>, vector<1x1x8x8x128xbf16>
    %17 = vector.shape_cast %16 : vector<1x1x8x8x128xbf16> to vector<8x8x128xbf16>
    %18 = vector.shape_cast %17 : vector<8x8x128xbf16> to vector<64x128xbf16>
    %c0_26 = arith.constant 0 : index
    %c512 = arith.constant 512 : index
    %19 = vector.load %arg7[%c0_26, %c512] : memref<64x1152xbf16, #tpu.memory_space<vmem>>, vector<64x128xbf16>
    tpu.vector_store %arg7[%c0_26, %c512], %18 {strides = array<i32>} : memref<64x1152xbf16, #tpu.memory_space<vmem>>, vector<64x128xbf16>,
    %c0_27 = arith.constant 0 : index
    %c2_28 = arith.constant 2 : index
    %c0_29 = arith.constant 0 : index
    %c1_30 = arith.constant 1 : index
    %c0_31 = arith.constant 0 : index
    %20 = vector.load %arg1[%c0_27, %c2_28, %c0_29, %c1_30, %c0_31] : memref<1x4x9x9x128xbf16, #tpu.memory_space<vmem>>, vector<1x1x8x8x128xbf16>
    %21 = vector.shape_cast %20 : vector<1x1x8x8x128xbf16> to vector<8x8x128xbf16>
    %22 = vector.shape_cast %21 : vector<8x8x128xbf16> to vector<64x128xbf16>
    %c0_32 = arith.constant 0 : index
    %c640 = arith.constant 640 : index
    %23 = vector.load %arg7[%c0_32, %c640] : memref<64x1152xbf16, #tpu.memory_space<vmem>>, vector<64x128xbf16>
    tpu.vector_store %arg7[%c0_32, %c640], %22 {strides = array<i32>} : memref<64x1152xbf16, #tpu.memory_space<vmem>>, vector<64x128xbf16>,
    %c0_33 = arith.constant 0 : index
    %c0_34 = arith.constant 0 : index
    %c1_35 = arith.constant 1 : index
    %c0_36 = arith.constant 0 : index
    %c0_37 = arith.constant 0 : index
    %24 = vector.load %arg1[%c0_33, %c0_34, %c1_35, %c0_36, %c0_37] : memref<1x4x9x9x128xbf16, #tpu.memory_space<vmem>>, vector<1x1x8x8x128xbf16>
    %25 = vector.shape_cast %24 : vector<1x1x8x8x128xbf16> to vector<8x8x128xbf16>
    %26 = vector.shape_cast %25 : vector<8x8x128xbf16> to vector<64x128xbf16>
    %c0_38 = arith.constant 0 : index
    %c768 = arith.constant 768 : index
    %27 = vector.load %arg7[%c0_38, %c768] : memref<64x1152xbf16, #tpu.memory_space<vmem>>, vector<64x128xbf16>
    tpu.vector_store %arg7[%c0_38, %c768], %26 {strides = array<i32>} : memref<64x1152xbf16, #tpu.memory_space<vmem>>, vector<64x128xbf16>,
    %c0_39 = arith.constant 0 : index
    %c1_40 = arith.constant 1 : index
    %c1_41 = arith.constant 1 : index
    %c0_42 = arith.constant 0 : index
    %c0_43 = arith.constant 0 : index
    %28 = vector.load %arg1[%c0_39, %c1_40, %c1_41, %c0_42, %c0_43] : memref<1x4x9x9x128xbf16, #tpu.memory_space<vmem>>, vector<1x1x8x8x128xbf16>
    %29 = vector.shape_cast %28 : vector<1x1x8x8x128xbf16> to vector<8x8x128xbf16>
    %30 = vector.shape_cast %29 : vector<8x8x128xbf16> to vector<64x128xbf16>
    %c0_44 = arith.constant 0 : index
    %c896 = arith.constant 896 : index
    %31 = vector.load %arg7[%c0_44, %c896] : memref<64x1152xbf16, #tpu.memory_space<vmem>>, vector<64x128xbf16>
    tpu.vector_store %arg7[%c0_44, %c896], %30 {strides = array<i32>} : memref<64x1152xbf16, #tpu.memory_space<vmem>>, vector<64x128xbf16>,
    %c0_45 = arith.constant 0 : index
    %c0_46 = arith.constant 0 : index
    %c1_47 = arith.constant 1 : index
    %c1_48 = arith.constant 1 : index
    %c0_49 = arith.constant 0 : index
    %32 = vector.load %arg1[%c0_45, %c0_46, %c1_47, %c1_48, %c0_49] : memref<1x4x9x9x128xbf16, #tpu.memory_space<vmem>>, vector<1x1x8x8x128xbf16>
    %33 = vector.shape_cast %32 : vector<1x1x8x8x128xbf16> to vector<8x8x128xbf16>
    %34 = vector.shape_cast %33 : vector<8x8x128xbf16> to vector<64x128xbf16>
    %c0_50 = arith.constant 0 : index
    %c1024 = arith.constant 1024 : index
    %35 = vector.load %arg7[%c0_50, %c1024] : memref<64x1152xbf16, #tpu.memory_space<vmem>>, vector<64x128xbf16>
    tpu.vector_store %arg7[%c0_50, %c1024], %34 {strides = array<i32>} : memref<64x1152xbf16, #tpu.memory_space<vmem>>, vector<64x128xbf16>,
    %c0_51 = arith.constant 0 : index
    %c0_52 = arith.constant 0 : index
    %36 = vector.load %arg7[%c0_51, %c0_52] : memref<64x1152xbf16, #tpu.memory_space<vmem>>, vector<64x1152xbf16>
    %c0_53 = arith.constant 0 : index
    %c0_54 = arith.constant 0 : index
    %37 = vector.load %arg2[%c0_53, %c0_54] : memref<1152x256xbf16, #tpu.memory_space<vmem>>, vector<1152x256xbf16>
    %cst = arith.constant dense<0.000000e+00> : vector<64x256xf32>
    %38 = tpu.matmul %36, %37, %cst {dimension_numbers = #tpu.dot_dimension_numbers<[1], [0], [0], [1], [0, 0, 1, 1], [], []>} : vector<64x1152xbf16>, vector<1152x256xbf16>, vector<64x256xf32> -> vector<64x256xf32>
    %39 = vector.extract_strided_slice %38 {offsets = [0, 0], sizes = [64, 128], strides = [1, 1]} : vector<64x256xf32> to vector<64x128xf32>
    %c0_55 = arith.constant 0 : index
    %c0_56 = arith.constant 0 : index
    %40 = vector.load %arg5[%c0_55, %c0_56] : memref<6x128xf32, #tpu.memory_space<vmem>>, vector<1x128xf32>
    %41 = vector.broadcast %40 : vector<1x128xf32> to vector<64x128xf32>
    %42 = arith.mulf %39, %41 : vector<64x128xf32>
    %c1_57 = arith.constant 1 : index
    %c0_58 = arith.constant 0 : index
    %43 = vector.load %arg5[%c1_57, %c0_58] : memref<6x128xf32, #tpu.memory_space<vmem>>, vector<1x128xf32>
    %44 = vector.broadcast %43 : vector<1x128xf32> to vector<64x128xf32>
    %45 = arith.addf %42, %44 : vector<64x128xf32>
    %cst_59 = arith.constant 0.000000e+00 : f32
    %46 = vector.broadcast %cst_59 : f32 to vector<64x128xf32>
    %47 = arith.cmpf ogt, %45, %46 : vector<64x128xf32>
    %cst_60 = arith.constant 0.00999999977 : f32
    %48 = vector.broadcast %cst_60 : f32 to vector<64x128xf32>
    %49 = arith.mulf %48, %45 : vector<64x128xf32>
    %50 = arith.select %47, %45, %49 : vector<64x128xi1>, vector<64x128xf32>
    %51 = vector.extract_strided_slice %38 {offsets = [0, 128], sizes = [64, 128], strides = [1, 1]} : vector<64x256xf32> to vector<64x128xf32>
    %c4 = arith.constant 4 : index
    %c0_61 = arith.constant 0 : index
    %52 = vector.load %arg5[%c4, %c0_61] : memref<6x128xf32, #tpu.memory_space<vmem>>, vector<1x128xf32>
    %53 = vector.broadcast %52 : vector<1x128xf32> to vector<64x128xf32>
    %54 = arith.mulf %51, %53 : vector<64x128xf32>
    %c5 = arith.constant 5 : index
    %c0_62 = arith.constant 0 : index
    %55 = vector.load %arg5[%c5, %c0_62] : memref<6x128xf32, #tpu.memory_space<vmem>>, vector<1x128xf32>
    %56 = vector.broadcast %55 : vector<1x128xf32> to vector<64x128xf32>
    %57 = arith.addf %54, %56 : vector<64x128xf32>
    %58 = arith.truncf %50 : vector<64x128xf32> to vector<64x128xbf16>
    %c0_63 = arith.constant 0 : index
    %c0_64 = arith.constant 0 : index
    %59 = vector.load %arg3[%c0_63, %c0_64] : memref<128x128xbf16, #tpu.memory_space<vmem>>, vector<128x128xbf16>
    %cst_65 = arith.constant dense<0.000000e+00> : vector<64x128xf32>
    %60 = tpu.matmul %58, %59, %cst_65 {dimension_numbers = #tpu.dot_dimension_numbers<[1], [0], [0], [1], [0, 0, 1, 1], [], []>} : vector<64x128xbf16>, vector<128x128xbf16>, vector<64x128xf32> -> vector<64x128xf32>
    %cst_66 = arith.constant 0.000000e+00 : f32
    %61 = vector.broadcast %cst_66 : f32 to vector<64x128xf32>
    %62 = arith.cmpf ogt, %60, %61 : vector<64x128xf32>
    %cst_67 = arith.constant 0.00999999977 : f32
    %63 = vector.broadcast %cst_67 : f32 to vector<64x128xf32>
    %64 = arith.mulf %63, %60 : vector<64x128xf32>
    %65 = arith.select %62, %60, %64 : vector<64x128xi1>, vector<64x128xf32>
    %cst_68 = arith.constant 0.000000e+00 : bf16
    %66 = vector.broadcast %cst_68 : bf16 to vector<1x10x128xbf16>
    %cst_69 = arith.constant 0.000000e+00 : bf16
    %67 = vector.broadcast %cst_69 : bf16 to vector<10x1x128xbf16>
    %c0_70 = arith.constant 0 : index
    %c0_71 = arith.constant 0 : index
    %c0_72 = arith.constant 0 : index
    %68 = vector.load %arg8[%c0_70, %c0_71, %c0_72] : memref<10x10x128xbf16, #tpu.memory_space<vmem>>, vector<1x10x128xbf16>
    tpu.vector_store %arg8[%c0_70, %c0_71, %c0_72], %66 {strides = array<i32>} : memref<10x10x128xbf16, #tpu.memory_space<vmem>>, vector<1x10x128xbf16>,
    %c9 = arith.constant 9 : index
    %c0_73 = arith.constant 0 : index
    %c0_74 = arith.constant 0 : index
    %69 = vector.load %arg8[%c9, %c0_73, %c0_74] : memref<10x10x128xbf16, #tpu.memory_space<vmem>>, vector<1x10x128xbf16>
    tpu.vector_store %arg8[%c9, %c0_73, %c0_74], %66 {strides = array<i32>} : memref<10x10x128xbf16, #tpu.memory_space<vmem>>, vector<1x10x128xbf16>,
    %c0_75 = arith.constant 0 : index
    %c0_76 = arith.constant 0 : index
    %c0_77 = arith.constant 0 : index
    %70 = vector.load %arg8[%c0_75, %c0_76, %c0_77] : memref<10x10x128xbf16, #tpu.memory_space<vmem>>, vector<10x1x128xbf16>
    tpu.vector_store %arg8[%c0_75, %c0_76, %c0_77], %67 {strides = array<i32>} : memref<10x10x128xbf16, #tpu.memory_space<vmem>>, vector<10x1x128xbf16>,
    %c0_78 = arith.constant 0 : index
    %c9_79 = arith.constant 9 : index
    %c0_80 = arith.constant 0 : index
    %71 = vector.load %arg8[%c0_78, %c9_79, %c0_80] : memref<10x10x128xbf16, #tpu.memory_space<vmem>>, vector<10x1x128xbf16>
    tpu.vector_store %arg8[%c0_78, %c9_79, %c0_80], %67 {strides = array<i32>} : memref<10x10x128xbf16, #tpu.memory_space<vmem>>, vector<10x1x128xbf16>,
    %72 = arith.truncf %65 : vector<64x128xf32> to vector<64x128xbf16>
    %73 = vector.shape_cast %72 : vector<64x128xbf16> to vector<8x8x128xbf16>
    %c1_81 = arith.constant 1 : index
    %c1_82 = arith.constant 1 : index
    %c0_83 = arith.constant 0 : index
    %74 = vector.load %arg8[%c1_81, %c1_82, %c0_83] : memref<10x10x128xbf16, #tpu.memory_space<vmem>>, vector<8x8x128xbf16>
    tpu.vector_store %arg8[%c1_81, %c1_82, %c0_83], %73 {strides = array<i32>} : memref<10x10x128xbf16, #tpu.memory_space<vmem>>, vector<8x8x128xbf16>,
    %c0_84 = arith.constant 0 : index
    %c0_85 = arith.constant 0 : index
    %c0_86 = arith.constant 0 : index
    %75 = vector.load %arg8[%c0_84, %c0_85, %c0_86] : memref<10x10x128xbf16, #tpu.memory_space<vmem>>, vector<8x8x128xbf16>
    %76 = vector.shape_cast %75 : vector<8x8x128xbf16> to vector<64x128xbf16>
    %c0_87 = arith.constant 0 : index
    %c0_88 = arith.constant 0 : index
    %77 = vector.load %arg9[%c0_87, %c0_88] : memref<64x1152xbf16, #tpu.memory_space<vmem>>, vector<64x128xbf16>
    tpu.vector_store %arg9[%c0_87, %c0_88], %76 {strides = array<i32>} : memref<64x1152xbf16, #tpu.memory_space<vmem>>, vector<64x128xbf16>,
    %c0_89 = arith.constant 0 : index
    %c1_90 = arith.constant 1 : index
    %c0_91 = arith.constant 0 : index
    %78 = vector.load %arg8[%c0_89, %c1_90, %c0_91] : memref<10x10x128xbf16, #tpu.memory_space<vmem>>, vector<8x8x128xbf16>
    %79 = vector.shape_cast %78 : vector<8x8x128xbf16> to vector<64x128xbf16>
    %c0_92 = arith.constant 0 : index
    %c128_93 = arith.constant 128 : index
    %80 = vector.load %arg9[%c0_92, %c128_93] : memref<64x1152xbf16, #tpu.memory_space<vmem>>, vector<64x128xbf16>
    tpu.vector_store %arg9[%c0_92, %c128_93], %79 {strides = array<i32>} : memref<64x1152xbf16, #tpu.memory_space<vmem>>, vector<64x128xbf16>,
    %c0_94 = arith.constant 0 : index
    %c2_95 = arith.constant 2 : index
    %c0_96 = arith.constant 0 : index
    %81 = vector.load %arg8[%c0_94, %c2_95, %c0_96] : memref<10x10x128xbf16, #tpu.memory_space<vmem>>, vector<8x8x128xbf16>
    %82 = vector.shape_cast %81 : vector<8x8x128xbf16> to vector<64x128xbf16>
    %c0_97 = arith.constant 0 : index
    %c256_98 = arith.constant 256 : index
    %83 = vector.load %arg9[%c0_97, %c256_98] : memref<64x1152xbf16, #tpu.memory_space<vmem>>, vector<64x128xbf16>
    tpu.vector_store %arg9[%c0_97, %c256_98], %82 {strides = array<i32>} : memref<64x1152xbf16, #tpu.memory_space<vmem>>, vector<64x128xbf16>,
    %c1_99 = arith.constant 1 : index
    %c0_100 = arith.constant 0 : index
    %c0_101 = arith.constant 0 : index
    %84 = vector.load %arg8[%c1_99, %c0_100, %c0_101] : memref<10x10x128xbf16, #tpu.memory_space<vmem>>, vector<8x8x128xbf16>
    %85 = vector.shape_cast %84 : vector<8x8x128xbf16> to vector<64x128xbf16>
    %c0_102 = arith.constant 0 : index
    %c384_103 = arith.constant 384 : index
    %86 = vector.load %arg9[%c0_102, %c384_103] : memref<64x1152xbf16, #tpu.memory_space<vmem>>, vector<64x128xbf16>
    tpu.vector_store %arg9[%c0_102, %c384_103], %85 {strides = array<i32>} : memref<64x1152xbf16, #tpu.memory_space<vmem>>, vector<64x128xbf16>,
    %c1_104 = arith.constant 1 : index
    %c1_105 = arith.constant 1 : index
    %c0_106 = arith.constant 0 : index
    %87 = vector.load %arg8[%c1_104, %c1_105, %c0_106] : memref<10x10x128xbf16, #tpu.memory_space<vmem>>, vector<8x8x128xbf16>
    %88 = vector.shape_cast %87 : vector<8x8x128xbf16> to vector<64x128xbf16>
    %c0_107 = arith.constant 0 : index
    %c512_108 = arith.constant 512 : index
    %89 = vector.load %arg9[%c0_107, %c512_108] : memref<64x1152xbf16, #tpu.memory_space<vmem>>, vector<64x128xbf16>
    tpu.vector_store %arg9[%c0_107, %c512_108], %88 {strides = array<i32>} : memref<64x1152xbf16, #tpu.memory_space<vmem>>, vector<64x128xbf16>,
    %c1_109 = arith.constant 1 : index
    %c2_110 = arith.constant 2 : index
    %c0_111 = arith.constant 0 : index
    %90 = vector.load %arg8[%c1_109, %c2_110, %c0_111] : memref<10x10x128xbf16, #tpu.memory_space<vmem>>, vector<8x8x128xbf16>
    %91 = vector.shape_cast %90 : vector<8x8x128xbf16> to vector<64x128xbf16>
    %c0_112 = arith.constant 0 : index
    %c640_113 = arith.constant 640 : index
    %92 = vector.load %arg9[%c0_112, %c640_113] : memref<64x1152xbf16, #tpu.memory_space<vmem>>, vector<64x128xbf16>
    tpu.vector_store %arg9[%c0_112, %c640_113], %91 {strides = array<i32>} : memref<64x1152xbf16, #tpu.memory_space<vmem>>, vector<64x128xbf16>,
    %c2_114 = arith.constant 2 : index
    %c0_115 = arith.constant 0 : index
    %c0_116 = arith.constant 0 : index
    %93 = vector.load %arg8[%c2_114, %c0_115, %c0_116] : memref<10x10x128xbf16, #tpu.memory_space<vmem>>, vector<8x8x128xbf16>
    %94 = vector.shape_cast %93 : vector<8x8x128xbf16> to vector<64x128xbf16>
    %c0_117 = arith.constant 0 : index
    %c768_118 = arith.constant 768 : index
    %95 = vector.load %arg9[%c0_117, %c768_118] : memref<64x1152xbf16, #tpu.memory_space<vmem>>, vector<64x128xbf16>
    tpu.vector_store %arg9[%c0_117, %c768_118], %94 {strides = array<i32>} : memref<64x1152xbf16, #tpu.memory_space<vmem>>, vector<64x128xbf16>,
    %c2_119 = arith.constant 2 : index
    %c1_120 = arith.constant 1 : index
    %c0_121 = arith.constant 0 : index
    %96 = vector.load %arg8[%c2_119, %c1_120, %c0_121] : memref<10x10x128xbf16, #tpu.memory_space<vmem>>, vector<8x8x128xbf16>
    %97 = vector.shape_cast %96 : vector<8x8x128xbf16> to vector<64x128xbf16>
    %c0_122 = arith.constant 0 : index
    %c896_123 = arith.constant 896 : index
    %98 = vector.load %arg9[%c0_122, %c896_123] : memref<64x1152xbf16, #tpu.memory_space<vmem>>, vector<64x128xbf16>
    tpu.vector_store %arg9[%c0_122, %c896_123], %97 {strides = array<i32>} : memref<64x1152xbf16, #tpu.memory_space<vmem>>, vector<64x128xbf16>,
    %c2_124 = arith.constant 2 : index
    %c2_125 = arith.constant 2 : index
    %c0_126 = arith.constant 0 : index
    %99 = vector.load %arg8[%c2_124, %c2_125, %c0_126] : memref<10x10x128xbf16, #tpu.memory_space<vmem>>, vector<8x8x128xbf16>
    %100 = vector.shape_cast %99 : vector<8x8x128xbf16> to vector<64x128xbf16>
    %c0_127 = arith.constant 0 : index
    %c1024_128 = arith.constant 1024 : index
    %101 = vector.load %arg9[%c0_127, %c1024_128] : memref<64x1152xbf16, #tpu.memory_space<vmem>>, vector<64x128xbf16>
    tpu.vector_store %arg9[%c0_127, %c1024_128], %100 {strides = array<i32>} : memref<64x1152xbf16, #tpu.memory_space<vmem>>, vector<64x128xbf16>,
    %c0_129 = arith.constant 0 : index
    %c0_130 = arith.constant 0 : index
    %102 = vector.load %arg9[%c0_129, %c0_130] : memref<64x1152xbf16, #tpu.memory_space<vmem>>, vector<64x1152xbf16>
    %c0_131 = arith.constant 0 : index
    %c0_132 = arith.constant 0 : index
    %103 = vector.load %arg4[%c0_131, %c0_132] : memref<1152x128xbf16, #tpu.memory_space<vmem>>, vector<1152x128xbf16>
    %cst_133 = arith.constant dense<0.000000e+00> : vector<64x128xf32>
    %104 = tpu.matmul %102, %103, %cst_133 {dimension_numbers = #tpu.dot_dimension_numbers<[1], [0], [0], [1], [0, 0, 1, 1], [], []>} : vector<64x1152xbf16>, vector<1152x128xbf16>, vector<64x128xf32> -> vector<64x128xf32>
    %c2_134 = arith.constant 2 : index
    %c0_135 = arith.constant 0 : index
    %105 = vector.load %arg5[%c2_134, %c0_135] : memref<6x128xf32, #tpu.memory_space<vmem>>, vector<1x128xf32>
    %106 = vector.broadcast %105 : vector<1x128xf32> to vector<64x128xf32>
    %107 = arith.mulf %104, %106 : vector<64x128xf32>
    %c3_136 = arith.constant 3 : index
    %c0_137 = arith.constant 0 : index
    %108 = vector.load %arg5[%c3_136, %c0_137] : memref<6x128xf32, #tpu.memory_space<vmem>>, vector<1x128xf32>
    %109 = vector.broadcast %108 : vector<1x128xf32> to vector<64x128xf32>
    %110 = arith.addf %107, %109 : vector<64x128xf32>
    %111 = arith.addf %110, %57 : vector<64x128xf32>
    %cst_138 = arith.constant 0.000000e+00 : f32
    %112 = vector.broadcast %cst_138 : f32 to vector<64x128xf32>
    %113 = arith.cmpf ogt, %111, %112 : vector<64x128xf32>
    %cst_139 = arith.constant 0.00999999977 : f32
    %114 = vector.broadcast %cst_139 : f32 to vector<64x128xf32>
    %115 = arith.mulf %114, %111 : vector<64x128xf32>
    %116 = arith.select %113, %111, %115 : vector<64x128xi1>, vector<64x128xf32>
    %c0_140 = arith.constant 0 : index
    %c0_141 = arith.constant 0 : index
    %c0_142 = arith.constant 0 : index
    %117 = vector.load %arg6[%c0_140, %c0_141, %c0_142] : memref<1x64x128xf32, #tpu.memory_space<vmem>>, vector<1x64x128xf32>
    %118 = vector.shape_cast %117 : vector<1x64x128xf32> to vector<64x128xf32>
    %119 = vector.shape_cast %116 : vector<64x128xf32> to vector<1x64x128xf32>
    tpu.vector_store %arg6[%c0_140, %c0_141, %c0_142], %119 {strides = array<i32>} : memref<1x64x128xf32, #tpu.memory_space<vmem>>, vector<1x64x128xf32>,
    return
  }
  func.func @transform_0(%arg0: i32) -> (i32, i32, i32, i32, i32) {
    %c0_i32 = arith.constant 0 : i32
    %c0_i32_0 = arith.constant 0 : i32
    %c0_i32_1 = arith.constant 0 : i32
    %c0_i32_2 = arith.constant 0 : i32
    %c0_i32_3 = arith.constant 0 : i32
    return %arg0, %c0_i32, %c0_i32_0, %c0_i32_1, %c0_i32_2 : i32, i32, i32, i32, i32
  }
  func.func @transform_1(%arg0: i32) -> (i32, i32) {
    %c0_i32 = arith.constant 0 : i32
    %c0_i32_0 = arith.constant 0 : i32
    %c0_i32_1 = arith.constant 0 : i32
    return %c0_i32, %c0_i32_0 : i32, i32
  }
  func.func @transform_2(%arg0: i32) -> (i32, i32) {
    %c0_i32 = arith.constant 0 : i32
    %c0_i32_0 = arith.constant 0 : i32
    %c0_i32_1 = arith.constant 0 : i32
    return %c0_i32, %c0_i32_0 : i32, i32
  }
  func.func @transform_3(%arg0: i32) -> (i32, i32) {
    %c0_i32 = arith.constant 0 : i32
    %c0_i32_0 = arith.constant 0 : i32
    %c0_i32_1 = arith.constant 0 : i32
    return %c0_i32, %c0_i32_0 : i32, i32
  }
  func.func @transform_4(%arg0: i32) -> (i32, i32) {
    %c0_i32 = arith.constant 0 : i32
    %c0_i32_0 = arith.constant 0 : i32
    %c0_i32_1 = arith.constant 0 : i32
    return %c0_i32, %c0_i32_0 : i32, i32
  }
  func.func @transform_5(%arg0: i32) -> (i32, i32, i32) {
    %c0_i32 = arith.constant 0 : i32
    %c0_i32_0 = arith.constant 0 : i32
    %c0_i32_1 = arith.constant 0 : i32
    return %arg0, %c0_i32, %c0_i32_0 : i32, i32, i32
  }
}

</mosaic_0001>

<bundles_post_ra>
// kernel: tpu_custom_call.1
= control target key start
LH: loop header
LB: loop body
LE: loop exit
PB: predicated region body
PF: predicated region fallthrough
CT: control target
= control target key end

     0   :  { %10 = vsyncpa [#allocation6], 0  ;;  %s7822_s0 = inlined_call_operand.vmem [shape: bf16[2,4,9,9,128], index: 0, kind: input, shape index: {}]   ;;  %s7823_s1 = inlined_call_operand.hbm [shape: bf16[1152,256], index: 1, kind: input, shape index: {}]   ;;  %s7824_s2 = inlined_call_operand.vmem [shape: bf16[128,128], index: 2, kind: input, shape index: {}]   ;;  %s7825_s3 = inlined_call_operand.vmem [shape: bf16[1152,128], index: 3, kind: input, shape index: {}]   ;;  %s7826_s4 = inlined_call_operand.vmem [shape: f32[6,128], index: 4, kind: input, shape index: {}]   ;;  %s7827_s5 = inlined_call_operand.hbm [shape: f32[2,64,128], index: 5, kind: output, shape index: {}]  }
   0x1   :  { %11 = vsyncpa [#allocation7], 0 }
   0x2   :  { %13 = vsyncpa [#allocation7 + $0x1], 0  ;;  %s6502_s18 = smov 0   ;;  %s6504_s19 = smov 0  }
   0x3   :  { %s6506_s20 = smov 0   ;;  %s6508_s21 = smov 0  }
   0x4 LB: > { %s6523_s22 = sadd.s32 4294967295, %s6464_s21   ;;  %s4716_s23 = sadd.s32 4294967294, %s6464_s21   ;;  %s6464_s21 = sphi %s6508_s21, %s7865_s21   ;;  %s6460_s20 = sphi %s6506_s20, %s7864_s20   ;;  %s6456_s19 = sphi %s6504_s19, %s7863_s19   ;;  %s6452_s18 = sphi %s6502_s18, %s7862_s18  }
   0x5   : > { %s6527_s24 = sadd.s32 1, %s6464_s21   ;;  %s136_s25 = sadd.s32 1, %s6460_s20 }
   0x6   : > { %s133_s26 = ssub.s32 %s6464_s21, %s6527_s24  ;;  %p146_p0 = scmp.ne.s32.totalorder %s6460_s20, %s6456_s19 }
   0x7   : > { %p134_p1 = scmp.eq.s32.totalorder %s133_s26, 0  ;;  %p147_p2 = scmp.eq.s32.totalorder %s6523_s22, 1 }
   0x8   : > { %p152_p3 = scmp.ne.s32.totalorder %s6456_s19, %s6452_s18  ;;  %p153_p4 = scmp.eq.s32.totalorder %s4716_s23, 1 }
   0x9   : > { %s6538_s27 = scalar_select %p134_p1, %s6460_s20, %s136_s25  }
   0xa   : > { %p6540_p5 = por %p147_p2, %p146_p0  ;;  %p6544_p6 = por %p153_p4, %p152_p3 }
   0xb   : > { %p4717_p7 = scmp.ge.s32.totalorder %s6464_s21, 1  ;;  %p160_p8 = scmp.lt.s32.totalorder %s6464_s21, 3 }
   0xc   : > { %p6321_p9 = scmp.eq.s32.totalorder %s6523_s22, 0  ;;  %s171_s7 = sshll.u32 %s7823_s1, 4  ;;  %s172_s7 = int_to_ptr.hbm [resolvable:$true] %s171_s7 }
   0xd   : > { %p161_p10 = pnand %p4717_p7, %p160_p8  ;;  %s6466_s8 = smov [#allocation5]  }
   0xe   : > { %s173_s9 = sshll.u32 %s6466_s8, 4  ;;  %s6467_s10 = smov 128   ;;  %s174_s9 = int_to_ptr.vmem [resolvable:$true] %s173_s9 }
   0xf   : > { %p6313_p11 = pneg %p161_p10  ;;  %s6468_s11 = smov 8  }
  0x10   : > { %206 = sbr.rel (%p161_p10) target bundleno = 851 (0x353), region = 40 }
  0x11   : > { %p6314_p12 = pnand %p6321_p9, %p6313_p11 }
  0x13   : > { %6316 = dma.hbm_to_vmem [thread:$0]  (!%p6314_p12), %s172_s7, 18432, %s174_s9, [#allocation6], %s6467_s10, %s6467_s10, %s6468_s11  }
  0x15   : > { %6443 = dma.done.wait (%p6321_p9), [#allocation6], 18432  }
  0x16   : > { %6445 = vsyncadd (%p6321_p9), [#allocation6], 4294948864  ;;  %p235_p13 = scmp.lt.s32.totalorder %s6523_s22, 1  ;;  %v4998_v0 = vld [vmem:[#allocation5 + $0x70] sm:$0xf]  ;;  %vm2577_vm11 = vcmask 1040384  }
  0x17   : > { %v6060_v1 = vld [vmem:[#allocation5 + $0x74] sm:$0xf0]  ;;  %v5062_v2 = vld [vmem:[#allocation5 + $0xf0] sm:$0xf]  ;;  %v4990_v11 = vld [vmem:[#allocation5 + $0x60] sm:$0xf] }
  0x18   : > { %v4999_v3 = vor.u32 %v6060_v1, %v4998_v0  ;;  %v6076_v4 = vld [vmem:[#allocation5 + $0xf4] sm:$0xf0]  ;;  %v5126_v5 = vld [vmem:[#allocation5 + $0x170] sm:$0xf]  ;;  %v6058_v13 = vld [vmem:[#allocation5 + $0x64] sm:$0xf0] }
  0x19   : > { %v6092_v6 = vld [vmem:[#allocation5 + $0x174] sm:$0xf0]  ;;  %v5063_v7 = vor.u32 %v6076_v4, %v5062_v2  ;;  %v5190_v9 = vld [vmem:[#allocation5 + $0x1f0] sm:$0xf]  ;;  %v5054_v14 = vld [vmem:[#allocation5 + $0xe0] sm:$0xf]  ;;  %v4991_v16 = vor.u32 %v6058_v13, %v4990_v11 }
  0x1a   : > { %v5127_v8 = vor.u32 %v6092_v6, %v5126_v5  ;;  %v6108_v10 = vld [vmem:[#allocation5 + $0x1f4] sm:$0xf0]  ;;  %1865 = vmatpush.bf16.msra.mxu0 %v4999_v3  ;;  %v6074_v15 = vld [vmem:[#allocation5 + $0xe4] sm:$0xf0]  ;;  %v5118_v18 = vld [vmem:[#allocation5 + $0x160] sm:$0xf] }
  0x1b   : > { %v5191_v12 = vor.u32 %v6108_v10, %v5190_v9  ;;  %1894 = vmatpush.bf16.msra.mxu1 %v5063_v7  ;;  %v5055_v17 = vor.u32 %v6074_v15, %v5054_v14  ;;  %v6090_v19 = vld [vmem:[#allocation5 + $0x164] sm:$0xf0]  ;;  %v5182_v20 = vld [vmem:[#allocation5 + $0x1e0] sm:$0xf]  ;;  %v4982_v23 = vld [vmem:[#allocation5 + $0x50] sm:$0xf] }
  0x1c   : > { %1923 = vmatpush.bf16.msra.mxu2 %v5127_v8  ;;  %v5119_v21 = vor.u32 %v6090_v19, %v5118_v18  ;;  %v6106_v22 = vld [vmem:[#allocation5 + $0x1e4] sm:$0xf0]  ;;  %v6056_v24 = vld [vmem:[#allocation5 + $0x54] sm:$0xf0]  ;;  %v5046_v26 = vld [vmem:[#allocation5 + $0xd0] sm:$0xf] }
  0x1d   : > { %1952 = vmatpush.bf16.msra.mxu3 %v5191_v12  ;;  %v5183_v25 = vor.u32 %v6106_v22, %v5182_v20  ;;  %v6072_v27 = vld [vmem:[#allocation5 + $0xd4] sm:$0xf0]  ;;  %v5110_v28 = vld [vmem:[#allocation5 + $0x150] sm:$0xf]  ;;  %v4983_v29 = vor.u32 %v6056_v24, %v4982_v23  ;;  %v4974_v35 = vld [vmem:[#allocation5 + $0x40] sm:$0xf] }
  0x1e   : > { %1866 = vmatpush.bf16.msra.mxu0 %v4991_v16  ;;  %v6088_v30 = vld [vmem:[#allocation5 + $0x154] sm:$0xf0]  ;;  %v5174_v31 = vld [vmem:[#allocation5 + $0x1d0] sm:$0xf]  ;;  %v5047_v33 = vor.u32 %v6072_v27, %v5046_v26  ;;  %v6054_v36 = vld [vmem:[#allocation5 + $0x44] sm:$0xf0] }
  0x1f   : > { %v6104_v32 = vld [vmem:[#allocation5 + $0x1d4] sm:$0xf0]  ;;  %1895 = vmatpush.bf16.msra.mxu1 %v5055_v17  ;;  %v5111_v34 = vor.u32 %v6088_v30, %v5110_v28  ;;  %v5038_v37 = vld [vmem:[#allocation5 + $0xc0] sm:$0xf]  ;;  %v6070_v39 = vld [vmem:[#allocation5 + $0xc4] sm:$0xf0]  ;;  %v4975_v44 = vor.u32 %v6054_v36, %v4974_v35 }
  0x20   : > { %1924 = vmatpush.bf16.msra.mxu2 %v5119_v21  ;;  %v5175_v38 = vor.u32 %v6104_v32, %v5174_v31  ;;  %v5102_v40 = vld [vmem:[#allocation5 + $0x140] sm:$0xf]  ;;  %v6086_v41 = vld [vmem:[#allocation5 + $0x144] sm:$0xf0]  ;;  %s6564_s12 = scalar_select %p235_p13, %s6523_s22, 1  ;;  %v5039_v45 = vor.u32 %v6070_v39, %v5038_v37 }
  0x21   : > { %1953 = vmatpush.bf16.msra.mxu3 %v5183_v25  ;;  %v5166_v42 = vld [vmem:[#allocation5 + $0x1c0] sm:$0xf]  ;;  %v6102_v43 = vld [vmem:[#allocation5 + $0x1c4] sm:$0xf0]  ;;  %v5103_v46 = vor.u32 %v6086_v41, %v5102_v40  ;;  %v4966_v47 = vld [vmem:[#allocation5 + $0x30] sm:$0xf] }
  0x22   : > { %1867 = vmatpush.bf16.msra.mxu0 %v4983_v29  ;;  %v6052_v48 = vld [vmem:[#allocation5 + $0x34] sm:$0xf0]  ;;  %v5030_v49 = vld [vmem:[#allocation5 + $0xb0] sm:$0xf]  ;;  %v5167_v50 = vor.u32 %v6102_v43, %v5166_v42  ;;  %v4958_v57 = vld [vmem:[#allocation5 + $0x20] sm:$0xf] }
  0x23   : > { %1896 = vmatpush.bf16.msra.mxu1 %v5047_v33  ;;  %v6068_v51 = vld [vmem:[#allocation5 + $0xb4] sm:$0xf0]  ;;  %v5094_v52 = vld [vmem:[#allocation5 + $0x130] sm:$0xf]  ;;  %v4967_v56 = vor.u32 %v6052_v48, %v4966_v47  ;;  %s6306_s13 = smul.u32 288, %s6564_s12  ;;  %s6418_s10 = scalar_lea.hbm %s7827_s5, 128 }
  0x24   : > { %1925 = vmatpush.bf16.msra.mxu2 %v5111_v34  ;;  %v6084_v53 = vld [vmem:[#allocation5 + $0x134] sm:$0xf0]  ;;  %v5158_v54 = vld [vmem:[#allocation5 + $0x1b0] sm:$0xf]  ;;  %v5031_v58 = vor.u32 %v6068_v51, %v5030_v49  ;;  %v6050_v60 = vld [vmem:[#allocation5 + $0x24] sm:$0xf0] }
  0x25   : > { %1954 = vmatpush.bf16.msra.mxu3 %v5175_v38  ;;  %v6100_v55 = vld [vmem:[#allocation5 + $0x1b4] sm:$0xf0]  ;;  %v5095_v59 = vor.u32 %v6084_v53, %v5094_v52  ;;  %v5022_v61 = vld [vmem:[#allocation5 + $0xa0] sm:$0xf]  ;;  %v6066_v62 = vld [vmem:[#allocation5 + $0xa4] sm:$0xf0]  ;;  %v4959_v6 = vor.u32 %v6050_v60, %v4958_v57  ;;  %s6572_s16 = scalar_lea.vmem %s7822_s0, %s6306_s13 }
  0x26   : > { %1868 = vmatpush.bf16.msra.mxu0 %v4975_v44  ;;  %v5159_v63 = vor.u32 %v6100_v55, %v5158_v54  ;;  %v5086_v0 = vld [vmem:[#allocation5 + $0x120] sm:$0xf]  ;;  %v6082_v1 = vld [vmem:[#allocation5 + $0x124] sm:$0xf0]  ;;  %v4950_v4 = vld [vmem:[#allocation5 + $0x10] sm:$0xf]  ;;  %v5023_v10 = vor.u32 %v6066_v62, %v5022_v61 }
  0x27   : > { %1897 = vmatpush.bf16.msra.mxu1 %v5039_v45  ;;  %v5150_v2 = vld [vmem:[#allocation5 + $0x1a0] sm:$0xf]  ;;  %v6098_v3 = vld [vmem:[#allocation5 + $0x1a4] sm:$0xf0]  ;;  %v6048_v5 = vld [vmem:[#allocation5 + $0x14] sm:$0xf0]  ;;  %v5087_v11 = vor.u32 %v6082_v1, %v5086_v0 }
  0x28   : > { %1926 = vmatpush.bf16.msra.mxu2 %v5103_v46  ;;  %vm290_vm0 = vsmask.f32 3328  ;;  %vm291_vm1 = vsmask.f32 7440  ;;  %v5014_v7 = vld [vmem:[#allocation5 + $0x90] sm:$0xf]  ;;  %v5151_v15 = vor.u32 %v6098_v3, %v5150_v2  ;;  %v4951_v22 = vor.u32 %v6048_v5, %v4950_v4 }
  0x29   : > { %1955 = vmatpush.bf16.msra.mxu3 %v5167_v50  ;;  %v6064_v8 = vld [vmem:[#allocation5 + $0x94] sm:$0xf0]  ;;  %v5078_v9 = vld [vmem:[#allocation5 + $0x110] sm:$0xf]  ;;  %v6574_v16 = vld [vmem:[#allocation5] sm:$0xf] }
  0x2a   : > { %1869 = vmatpush.bf16.msra.mxu0 %v4967_v56  ;;  %v6080_v12 = vld [vmem:[#allocation5 + $0x114] sm:$0xf0]  ;;  %v5142_v13 = vld [vmem:[#allocation5 + $0x190] sm:$0xf]  ;;  %v6046_v17 = vld [vmem:[#allocation5 + $0x4] sm:$0xf0]  ;;  %v5015_v29 = vor.u32 %v6064_v8, %v5014_v7 }
  0x2b   : > { %1898 = vmatpush.bf16.msra.mxu1 %v5031_v58  ;;  %v6096_v14 = vld [vmem:[#allocation5 + $0x194] sm:$0xf0]  ;;  %v241_v18 = vld [vmem:[%s6572_s16] sm:$0xf]  ;;  %v4725_v21 = vld [vmem:[%s6572_s16 + $0x50] sm:$0xf]  ;;  %v5079_v30 = vor.u32 %v6080_v12, %v5078_v9  ;;  %v4943_v40 = vor.u32 %v6046_v17, %v6574_v16 }
  0x2c   : > { %1927 = vmatpush.bf16.msra.mxu2 %v5095_v59  ;;  %v242_v19 = vld [vmem:[%s6572_s16 + $0x8] sm:$0xf]  ;;  %249 = vst [vmem:[#allocation2] sm:$0xf] %v241_v18  ;;  %v5006_v23 = vld [vmem:[#allocation5 + $0x80] sm:$0xf]  ;;  %v5143_v31 = vor.u32 %v6096_v14, %v5142_v13  ;;  %vm6589_vm2 = vmor %vm290_vm0, %vm291_vm1 }
  0x2d   : > { %1956 = vmatpush.bf16.msra.mxu3 %v5159_v63  ;;  %v4724_v20 = vld [vmem:[%s6572_s16 + $0x48] sm:$0xf]  ;;  %v6062_v24 = vld [vmem:[#allocation5 + $0x84] sm:$0xf0]  ;;  %v5070_v25 = vld [vmem:[#allocation5 + $0x100] sm:$0xf] }
  0x2e   : > { %1870 = vmatpush.bf16.msra.mxu0 %v4959_v6  ;;  %v6078_v26 = vld [vmem:[#allocation5 + $0x104] sm:$0xf0]  ;;  %250 = vst [vmem:[#allocation2 + $0x24] sm:$0xf] %v242_v19  ;;  %v274_v27 = vld [vmem:[%s6572_s16] sm:$0xf]  ;;  %v5007_v50 = vor.u32 %v6062_v24, %v5006_v23 }
  0x2f   : > { %v275_v28 = vld [vmem:[%s6572_s16 + $0x4] sm:$0x1]  ;;  %1899 = vmatpush.bf16.msra.mxu1 %v5023_v10  ;;  %v5134_v32 = vld [vmem:[#allocation5 + $0x180] sm:$0xf]  ;;  %v6094_v33 = vld [vmem:[#allocation5 + $0x184] sm:$0xf0]  ;;  %v5071_v51 = vor.u32 %v6078_v26, %v5070_v25 }
  0x30   : > { %1928 = vmatpush.bf16.msra.mxu2 %v5087_v11  ;;  %266 = vst [vmem:[#allocation2 + $0x4] sm:$0xf] %v4724_v20  ;;  %v276_v34 = vld [vmem:[%s6572_s16 + $0x8] sm:$0xf]  ;;  %v277_v35 = vld [vmem:[%s6572_s16 + $0xc] sm:$0x1]  ;;  %v5135_v55 = vor.u32 %v6094_v33, %v5134_v32 }
  0x31   : > { %1957 = vmatpush.bf16.msra.mxu3 %v5151_v15  ;;  %267 = vst [vmem:[#allocation2 + $0x28] sm:$0xf] %v4725_v21  ;;  %v294_v36 = vshrl.u32 %v274_v27, 16  ;;  %v297_v37 = vshll.u32 %v274_v27, 16  ;;  %v303_v38 = vshll.u32 %v275_v28, 16  ;;  %v308_v39 = vshrl.u32 %v276_v34, 16 }
  0x32   : > { %v311_v41 = vshll.u32 %v276_v34, 16  ;;  %v317_v42 = vshll.u32 %v277_v35, 16  ;;  %v5254_v43 = vld [vmem:[#allocation5 + $0x270] sm:$0xf]  ;;  %v6124_v44 = vld [vmem:[#allocation5 + $0x274] sm:$0xf0]  ;;  %1871 = vmatpush.bf16.msra.mxu0 %v4951_v22 }
  0x33   : > { %v296_v45 = vrot.slane %v294_v36, 4  ;;  %v299_v46 = vrot.slane %v297_v37, 5  ;;  %v305_v47 = vrot.slane %v303_v38, 5  ;;  %v310_v48 = vrot.slane %v308_v39, 4  ;;  %v4732_v49 = vld [vmem:[%s6572_s16 + $0x90] sm:$0xf]  ;;  %1900 = vmatpush.bf16.msra.mxu1 %v5015_v29 }
  0x34   : > { %1929 = vmatpush.bf16.msra.mxu2 %v5079_v30  ;;  %v313_v52 = vrot.slane %v311_v41, 5  ;;  %v319_v53 = vrot.slane %v317_v42, 5  ;;  %v4733_v54 = vld [vmem:[%s6572_s16 + $0x98] sm:$0xf]  ;;  %430 = vst [vmem:[#allocation2 + $0xc] sm:$0xf] %v4732_v49  ;;  %v5255_v59 = vor.u32 %v6124_v44, %v5254_v43 }
  0x35   : > { %1958 = vmatpush.bf16.msra.mxu3 %v5143_v31  ;;  %v4798_v56 = vld [vmem:[#allocation2] sm:$0xf]  ;;  %v300_v58 = vor.u32 %v299_v46, %v296_v45  ;;  %431 = vst [vmem:[#allocation2 + $0x30] sm:$0xf] %v4733_v54  ;;  %v5246_v60 = vld [vmem:[#allocation5 + $0x260] sm:$0xf] }
  0x36   : > { %v6013_v61 = vld [vmem:[#allocation2 + $0x20] sm:$0xf0]  ;;  %v314_v62 = vor.u32 %v313_v52, %v310_v48  ;;  %v6122_v63 = vld [vmem:[#allocation5 + $0x264] sm:$0xf0]  ;;  %v243_v0 = vld [vmem:[%s6572_s16 + $0x10] sm:$0xf]  ;;  %1872 = vmatpush.bf16.msra.mxu0 %v4943_v40 }
  0x37   : > { %v6594_v1 = vor.u32 %v6013_v61, %v4798_v56  ;;  %v6009_v2 = vld [vmem:[#allocation2 + $0x4] sm:$0xf]  ;;  %v301_v3 = vrot.slane %v300_v58, 4  ;;  %v244_v4 = vld [vmem:[%s6572_s16 + $0x18] sm:$0xf]  ;;  %1901 = vmatpush.bf16.msra.mxu1 %v5007_v50  ;;  %v5247_v9 = vor.u32 %v6122_v63, %v5246_v60  ;;  %vm2973_vm0 = vcmask 1042432  }
  0x38   : > { %1930 = vmatpush.bf16.msra.mxu2 %v5071_v51  ;;  %v4800_v5 = vld [vmem:[#allocation2 + $0x24] sm:$0xf0]  ;;  %v315_v6 = vrot.slane %v314_v62, 4  ;;  %251 = vst [vmem:[#allocation2 + $0x48] sm:$0xf] %v243_v0  ;;  %vm2974_vm1 = vcmask 1046532  }
  0x39   : > { %1959 = vmatpush.bf16.msra.mxu3 %v5135_v55  ;;  %v6597_v7 = vor.u32 %v6009_v2, %v4800_v5  ;;  %v306_v8 = vsel %vm6589_vm2, %v301_v3, %v305_v47  ;;  %252 = vst [vmem:[#allocation2 + $0x6c] sm:$0xf] %v244_v4  ;;  %v4726_v10 = vld [vmem:[%s6572_s16 + $0x58] sm:$0xf]  ;;  %v4727_v11 = vld [vmem:[%s6572_s16 + $0x60] sm:$0xf]  ;;  %1873 = vmatmul.bf16.vlgmr.msra.gmra.mxu0 %v6594_v1 }
  0x3a   : > { %1981 = vmatpush.bf16.msrb.mxu0 %v5255_v59  ;;  %v320_v12 = vsel %vm6589_vm2, %v315_v6, %v319_v53  ;;  %413 = vst [vmem:[#allocation2 + $0x8] sm:$0xf] %v306_v8  ;;  %v278_v13 = vld [vmem:[%s6572_s16 + $0x10] sm:$0xf]  ;;  %v279_v14 = vld [vmem:[%s6572_s16 + $0x14] sm:$0x1] }
  0x3b   : > { %1902 = vmatmul.bf16.vlgmr.msra.gmra.mxu1 %v6597_v7  ;;  %414 = vst [vmem:[#allocation2 + $0x2c] sm:$0xf] %v320_v12  ;;  %v6010_v15 = vld [vmem:[#allocation2 + $0xc] sm:$0xf]  ;;  %v280_v16 = vld [vmem:[%s6572_s16 + $0x18] sm:$0xf] }
  0x3c   : > { %v4808_v17 = vld [vmem:[#allocation2 + $0x2c] sm:$0xf0]  ;;  %268 = vst [vmem:[#allocation2 + $0x4c] sm:$0xf] %v4726_v10  ;;  %v281_v18 = vld [vmem:[%s6572_s16 + $0x1c] sm:$0x1] }
  0x3d   : > { %v6611_v19 = vor.u32 %v6010_v15, %v4808_v17  ;;  %269 = vst [vmem:[#allocation2 + $0x70] sm:$0xf] %v4727_v11  ;;  %v322_v20 = vshrl.u32 %v278_v13, 16  ;;  %v325_v21 = vshll.u32 %v278_v13, 16  ;;  %v331_v22 = vshll.u32 %v279_v14, 16  ;;  %s232_s13 = sand.u32 1, %s6456_s19  }
  0x3e   : > { %1982 = vmatpush.bf16.msrb.mxu0 %v5247_v9  ;;  %v336_v23 = vshrl.u32 %v280_v16, 16  ;;  %v339_v24 = vshll.u32 %v280_v16, 16  ;;  %v345_v25 = vshll.u32 %v281_v18, 16  ;;  %v5238_v28 = vld [vmem:[#allocation5 + $0x250] sm:$0xf]  ;;  %s4722_s14 = sshll.u32 %s232_s13, 6 }
  0x3f   : > { %1960 = vmatmul.bf16.vlgmr.msra.gmra.mxu3 %v6611_v19  ;;  %v324_v26 = vrot.slane %v322_v20, 4  ;;  %v327_v27 = vrot.slane %v325_v21, 5  ;;  %v333_v29 = vrot.slane %v331_v22, 5  ;;  %v4834_v34 = vld [vmem:[#allocation2 + $0x48] sm:$0xf]  ;;  %s7721_s15 = scalar_lea.vmem [#allocation8], %s4722_s14 }
  0x40   : > { %v338_v30 = vrot.slane %v336_v23, 4  ;;  %v341_v31 = vrot.slane %v339_v24, 5  ;;  %v347_v32 = vrot.slane %v345_v25, 5  ;;  %v6022_v35 = vld [vmem:[#allocation2 + $0x68] sm:$0xf0]  ;;  %s4639_s26 = sshll.u32 %s7721_s15, 4  ;;  %s4640_s26 = int_to_ptr.vmem [resolvable:$true] %s4639_s26 }
  0x41   : > { %v4806_v33 = vld [vmem:[#allocation2 + $0x8] sm:$0xf]  ;;  %v328_v36 = vor.u32 %v327_v27, %v324_v26  ;;  %v5382_v38 = vld [vmem:[#allocation5 + $0x370] sm:$0xf]  ;;  %v5230_v52 = vld [vmem:[#allocation5 + $0x240] sm:$0xf]  ;;  %v6621_v54 = vor.u32 %v6022_v35, %v4834_v34 }
  0x42   : > { %v6120_v37 = vld [vmem:[#allocation5 + $0x254] sm:$0xf0]  ;;  %v6014_v39 = vld [vmem:[#allocation2 + $0x28] sm:$0xf0]  ;;  %v342_v40 = vor.u32 %v341_v31, %v338_v30  ;;  %v4734_v43 = vld [vmem:[%s6572_s16 + $0xa0] sm:$0xf] }
  0x43   : > { %v5239_v41 = vor.u32 %v6120_v37, %v5238_v28  ;;  %v6156_v42 = vld [vmem:[#allocation5 + $0x374] sm:$0xf0]  ;;  %v6615_v44 = vor.u32 %v6014_v39, %v4806_v33  ;;  %v6018_v45 = vld [vmem:[#allocation2 + $0x4c] sm:$0xf]  ;;  %v329_v46 = vrot.slane %v328_v36, 4 }
  0x44   : > { %v5383_v47 = vor.u32 %v6156_v42, %v5382_v38  ;;  %v4735_v48 = vld [vmem:[%s6572_s16 + $0xa8] sm:$0xf]  ;;  %v4836_v49 = vld [vmem:[#allocation2 + $0x6c] sm:$0xf0]  ;;  %v343_v50 = vrot.slane %v342_v40, 4 }
  0x45   : > { %1983 = vmatpush.bf16.msrb.mxu0 %v5239_v41  ;;  %432 = vst [vmem:[#allocation2 + $0x54] sm:$0xf] %v4734_v43  ;;  %1931 = vmatmul.bf16.vlgmr.msra.gmra.mxu2 %v6615_v44  ;;  %v334_v51 = vsel %vm6589_vm2, %v329_v46, %v333_v29  ;;  %v6118_v53 = vld [vmem:[#allocation5 + $0x244] sm:$0xf0]  ;;  %v5374_v58 = vld [vmem:[#allocation5 + $0x360] sm:$0xf]  ;;  %v6625_v60 = vor.u32 %v6018_v45, %v4836_v49 }
  0x46   : > { %433 = vst [vmem:[#allocation2 + $0x78] sm:$0xf] %v4735_v48  ;;  %v348_v55 = vsel %vm6589_vm2, %v343_v50, %v347_v32  ;;  %2039 = vmatpush.bf16.msrb.mxu2 %v5383_v47  ;;  %v5231_v56 = vor.u32 %v6118_v53, %v5230_v52  ;;  %v6154_v59 = vld [vmem:[#allocation5 + $0x364] sm:$0xf0]  ;;  %v245_v62 = vld [vmem:[%s6572_s16 + $0x20] sm:$0xf] }
  0x47   : > { %415 = vst [vmem:[#allocation2 + $0x50] sm:$0xf] %v334_v51  ;;  %v5375_v61 = vor.u32 %v6154_v59, %v5374_v58  ;;  %v246_v63 = vld [vmem:[%s6572_s16 + $0x28] sm:$0xf]  ;;  %v4729_v2 = vld [vmem:[%s6572_s16 + $0x70] sm:$0xf] }
  0x48   : > { %416 = vst [vmem:[#allocation2 + $0x74] sm:$0xf] %v348_v55  ;;  %v4728_v0 = vld [vmem:[%s6572_s16 + $0x68] sm:$0xf]  ;;  %v282_v3 = vld [vmem:[%s6572_s16 + $0x20] sm:$0xf] }
  0x49   : > { %1984 = vmatpush.bf16.msrb.mxu0 %v5231_v56  ;;  %253 = vst [vmem:[#allocation2 + $0x90] sm:$0xf] %v245_v62  ;;  %v283_v4 = vld [vmem:[%s6572_s16 + $0x24] sm:$0x1]  ;;  %v284_v5 = vld [vmem:[%s6572_s16 + $0x28] sm:$0xf] }
  0x4a   : > { %254 = vst [vmem:[#allocation2 + $0xb4] sm:$0xf] %v246_v63  ;;  %1878 = vmatmul.bf16.gmra.mxu0 %v6621_v54  ;;  %2040 = vmatpush.bf16.msrb.mxu2 %v5375_v61  ;;  %v285_v6 = vld [vmem:[%s6572_s16 + $0x2c] sm:$0x1]  ;;  %v350_v9 = vshrl.u32 %v282_v3, 16  ;;  %v353_v10 = vshll.u32 %v282_v3, 16 }
  0x4b   : > { %270 = vst [vmem:[#allocation2 + $0x94] sm:$0xf] %v4728_v0  ;;  %1907 = vmatmul.bf16.gmra.mxu1 %v6625_v60  ;;  %v359_v12 = vshll.u32 %v283_v4, 16  ;;  %v364_v13 = vshrl.u32 %v284_v5, 16  ;;  %v367_v14 = vshll.u32 %v284_v5, 16  ;;  %v373_v15 = vshll.u32 %v285_v6, 16 }
  0x4c   : > { %v6019_v8 = vld [vmem:[#allocation2 + $0x54] sm:$0xf]  ;;  %271 = vst [vmem:[#allocation2 + $0xb8] sm:$0xf] %v4729_v2  ;;  %v352_v17 = vrot.slane %v350_v9, 4  ;;  %v355_v18 = vrot.slane %v353_v10, 5 }
  0x4d   : > { %v4844_v11 = vld [vmem:[#allocation2 + $0x74] sm:$0xf0]  ;;  %v5222_v20 = vld [vmem:[#allocation5 + $0x230] sm:$0xf]  ;;  %v366_v23 = vrot.slane %v364_v13, 4  ;;  %v369_v24 = vrot.slane %v367_v14, 5 }
  0x4e   : > { %v6637_v16 = vor.u32 %v6019_v8, %v4844_v11  ;;  %v4842_v21 = vld [vmem:[#allocation2 + $0x50] sm:$0xf]  ;;  %v356_v25 = vor.u32 %v355_v18, %v352_v17  ;;  %v361_v26 = vrot.slane %v359_v12, 5  ;;  %v6116_v27 = vld [vmem:[#allocation5 + $0x234] sm:$0xf0]  ;;  %v375_v30 = vrot.slane %v373_v15, 5 }
  0x4f   : > { %v6023_v22 = vld [vmem:[#allocation2 + $0x70] sm:$0xf0]  ;;  %v5366_v28 = vld [vmem:[#allocation5 + $0x350] sm:$0xf]  ;;  %v370_v29 = vor.u32 %v369_v24, %v366_v23  ;;  %v5223_v31 = vor.u32 %v6116_v27, %v5222_v20  ;;  %v6152_v32 = vld [vmem:[#allocation5 + $0x354] sm:$0xf0] }
  0x50   : > { %1965 = vmatmul.bf16.gmra.mxu3 %v6637_v16  ;;  %v4736_v33 = vld [vmem:[%s6572_s16 + $0xb0] sm:$0xf]  ;;  %v6641_v34 = vor.u32 %v6023_v22, %v4842_v21  ;;  %v357_v37 = vrot.slane %v356_v25, 4  ;;  %v5367_v38 = vor.u32 %v6152_v32, %v5366_v28  ;;  %v4737_v39 = vld [vmem:[%s6572_s16 + $0xb8] sm:$0xf] }
  0x51   : > { %v4870_v35 = vld [vmem:[#allocation2 + $0x90] sm:$0xf]  ;;  %v6031_v36 = vld [vmem:[#allocation2 + $0xb0] sm:$0xf0]  ;;  %v371_v42 = vrot.slane %v370_v29, 4  ;;  %1985 = vmatpush.bf16.msrb.mxu0 %v5223_v31 }
  0x52   : > { %v6027_v40 = vld [vmem:[#allocation2 + $0x94] sm:$0xf]  ;;  %434 = vst [vmem:[#allocation2 + $0x9c] sm:$0xf] %v4736_v33  ;;  %v362_v43 = vsel %vm6589_vm2, %v357_v37, %v361_v26  ;;  %2041 = vmatpush.bf16.msrb.mxu2 %v5367_v38  ;;  %v5318_v45 = vld [vmem:[#allocation5 + $0x2f0] sm:$0xf]  ;;  %v6649_v55 = vor.u32 %v6031_v36, %v4870_v35 }
  0x53   : > { %v4872_v41 = vld [vmem:[#allocation2 + $0xb4] sm:$0xf0]  ;;  %435 = vst [vmem:[#allocation2 + $0xc0] sm:$0xf] %v4737_v39  ;;  %v6140_v46 = vld [vmem:[#allocation5 + $0x2f4] sm:$0xf0]  ;;  %v376_v47 = vsel %vm6589_vm2, %v371_v42, %v375_v30 }
  0x54   : > { %417 = vst [vmem:[#allocation2 + $0x98] sm:$0xf] %v362_v43  ;;  %v5319_v48 = vor.u32 %v6140_v46, %v5318_v45  ;;  %v5446_v49 = vld [vmem:[#allocation5 + $0x3f0] sm:$0xf]  ;;  %v6172_v50 = vld [vmem:[#allocation5 + $0x3f4] sm:$0xf0]  ;;  %v6651_v62 = vor.u32 %v6027_v40, %v4872_v41 }
  0x55   : > { %1936 = vmatmul.bf16.gmra.mxu2 %v6641_v34  ;;  %418 = vst [vmem:[#allocation2 + $0xbc] sm:$0xf] %v376_v47  ;;  %v5447_v51 = vor.u32 %v6172_v50, %v5446_v49  ;;  %v5310_v52 = vld [vmem:[#allocation5 + $0x2e0] sm:$0xf]  ;;  %v6138_v53 = vld [vmem:[#allocation5 + $0x2e4] sm:$0xf0] }
  0x56   : > { %2010 = vmatpush.bf16.msrb.mxu1 %v5319_v48  ;;  %v5311_v56 = vor.u32 %v6138_v53, %v5310_v52  ;;  %v5438_v58 = vld [vmem:[#allocation5 + $0x3e0] sm:$0xf]  ;;  %v6170_v59 = vld [vmem:[#allocation5 + $0x3e4] sm:$0xf0]  ;;  %v5302_v6 = vld [vmem:[#allocation5 + $0x2d0] sm:$0xf] }
  0x57   : > { %v5214_v61 = vld [vmem:[#allocation5 + $0x220] sm:$0xf]  ;;  %2068 = vmatpush.bf16.msrb.mxu3 %v5447_v51  ;;  %v5439_v63 = vor.u32 %v6170_v59, %v5438_v58  ;;  %v6114_v0 = vld [vmem:[#allocation5 + $0x224] sm:$0xf0]  ;;  %v6136_v8 = vld [vmem:[#allocation5 + $0x2d4] sm:$0xf0] }
  0x58   : > { %v5358_v2 = vld [vmem:[#allocation5 + $0x340] sm:$0xf]  ;;  %v6150_v3 = vld [vmem:[#allocation5 + $0x344] sm:$0xf0]  ;;  %v5215_v4 = vor.u32 %v6114_v0, %v5214_v61  ;;  %v5430_v10 = vld [vmem:[#allocation5 + $0x3d0] sm:$0xf]  ;;  %v5303_v13 = vor.u32 %v6136_v8, %v5302_v6 }
  0x59   : > { %v5359_v5 = vor.u32 %v6150_v3, %v5358_v2  ;;  %v6028_v9 = vld [vmem:[#allocation2 + $0x9c] sm:$0xf]  ;;  %v6168_v11 = vld [vmem:[#allocation5 + $0x3d4] sm:$0xf0]  ;;  %v5294_v14 = vld [vmem:[#allocation5 + $0x2c0] sm:$0xf] }
  0x5a   : > { %1883 = vmatmul.bf16.gmra.mxu0 %v6649_v55  ;;  %v4880_v12 = vld [vmem:[#allocation2 + $0xbc] sm:$0xf0]  ;;  %2011 = vmatpush.bf16.msrb.mxu1 %v5311_v56  ;;  %v6134_v15 = vld [vmem:[#allocation5 + $0x2c4] sm:$0xf0]  ;;  %v5422_v18 = vld [vmem:[#allocation5 + $0x3c0] sm:$0xf]  ;;  %v5431_v24 = vor.u32 %v6168_v11, %v5430_v10 }
  0x5b   : > { %1912 = vmatmul.bf16.gmra.mxu1 %v6651_v62  ;;  %v6655_v17 = vor.u32 %v6028_v9, %v4880_v12  ;;  %2069 = vmatpush.bf16.msrb.mxu3 %v5439_v63  ;;  %v6166_v20 = vld [vmem:[#allocation5 + $0x3c4] sm:$0xf0]  ;;  %v247_v21 = vld [vmem:[%s6572_s16 + $0x30] sm:$0xf]  ;;  %v4731_v27 = vld [vmem:[%s6572_s16 + $0x80] sm:$0xf]  ;;  %v5295_v28 = vor.u32 %v6134_v15, %v5294_v14 }
  0x5c   : > { %v4878_v22 = vld [vmem:[#allocation2 + $0x98] sm:$0xf]  ;;  %v6032_v23 = vld [vmem:[#allocation2 + $0xb8] sm:$0xf0]  ;;  %1986 = vmatpush.bf16.msrb.mxu0 %v5215_v4  ;;  %2042 = vmatpush.bf16.msrb.mxu2 %v5359_v5  ;;  %255 = vst [vmem:[#allocation2 + $0xd8] sm:$0xf] %v247_v21  ;;  %v5423_v31 = vor.u32 %v6166_v20, %v5422_v18 }
  0x5d   : > { %v248_v25 = vld [vmem:[%s6572_s16 + $0x38] sm:$0xf]  ;;  %v286_v29 = vld [vmem:[%s6572_s16 + $0x30] sm:$0xf]  ;;  %v287_v30 = vld [vmem:[%s6572_s16 + $0x34] sm:$0x1]  ;;  %v6666_v40 = vor.u32 %v6032_v23, %v4878_v22 }
  0x5e   : > { %256 = vst [vmem:[#allocation2 + $0xfc] sm:$0xf] %v248_v25  ;;  %v4730_v26 = vld [vmem:[%s6572_s16 + $0x78] sm:$0xf]  ;;  %2012 = vmatpush.bf16.msrb.mxu1 %v5303_v13  ;;  %v289_v33 = vld [vmem:[%s6572_s16 + $0x3c] sm:$0x1] }
  0x5f   : > { %272 = vst [vmem:[#allocation2 + $0xdc] sm:$0xf] %v4730_v26  ;;  %v288_v32 = vld [vmem:[%s6572_s16 + $0x38] sm:$0xf]  ;;  %2070 = vmatpush.bf16.msrb.mxu3 %v5431_v24  ;;  %v378_v35 = vshrl.u32 %v286_v29, 16  ;;  %v381_v36 = vshll.u32 %v286_v29, 16 }
  0x60   : > { %1970 = vmatmul.bf16.gmra.mxu3 %v6655_v17  ;;  %273 = vst [vmem:[#allocation2 + $0x100] sm:$0xf] %v4731_v27  ;;  %v387_v37 = vshll.u32 %v287_v30, 16  ;;  %v392_v38 = vshrl.u32 %v288_v32, 16  ;;  %v5206_v39 = vld [vmem:[#allocation5 + $0x210] sm:$0xf] }
  0x61   : > { %v395_v41 = vshll.u32 %v288_v32, 16  ;;  %v401_v42 = vshll.u32 %v289_v33, 16  ;;  %v6112_v43 = vld [vmem:[#allocation5 + $0x214] sm:$0xf0]  ;;  %v5350_v45 = vld [vmem:[#allocation5 + $0x330] sm:$0xf] }
  0x62   : > { %2013 = vmatpush.bf16.msrb.mxu1 %v5295_v28  ;;  %v380_v46 = vrot.slane %v378_v35, 4  ;;  %v383_v47 = vrot.slane %v381_v36, 5  ;;  %v389_v48 = vrot.slane %v387_v37, 5  ;;  %v394_v49 = vrot.slane %v392_v38, 4  ;;  %v6148_v50 = vld [vmem:[#allocation5 + $0x334] sm:$0xf0] }
  0x63   : > { %v4906_v51 = vld [vmem:[#allocation2 + $0xd8] sm:$0xf]  ;;  %v397_v52 = vrot.slane %v395_v41, 5  ;;  %v403_v53 = vrot.slane %v401_v42, 5  ;;  %v5207_v56 = vor.u32 %v6112_v43, %v5206_v39  ;;  %v5351_v58 = vor.u32 %v6148_v50, %v5350_v45  ;;  %v4738_v59 = vld [vmem:[%s6572_s16 + $0xc0] sm:$0xf]  ;;  %2071 = vmatpush.bf16.msrb.mxu3 %v5423_v31 }
  0x64   : > { %v384_v63 = vor.u32 %v383_v47, %v380_v46  ;;  %v4739_v0 = vld [vmem:[%s6572_s16 + $0xc8] sm:$0xf]  ;;  %436 = vst [vmem:[#allocation2 + $0xe4] sm:$0xf] %v4738_v59  ;;  %v5286_v4 = vld [vmem:[#allocation5 + $0x2b0] sm:$0xf] }
  0x65   : > { %v6040_v61 = vld [vmem:[#allocation2 + $0xf8] sm:$0xf0]  ;;  %1941 = vmatmul.bf16.gmra.mxu2 %v6666_v40  ;;  %v398_v3 = vor.u32 %v397_v52, %v394_v49  ;;  %1987 = vmatpush.bf16.msrb.mxu0 %v5207_v56  ;;  %437 = vst [vmem:[#allocation2 + $0x108] sm:$0xf] %v4739_v0  ;;  %v6132_v9 = vld [vmem:[#allocation5 + $0x2b4] sm:$0xf0] }
  0x66   : > { %v6036_v2 = vld [vmem:[#allocation2 + $0xdc] sm:$0xf]  ;;  %v6671_v5 = vor.u32 %v6040_v61, %v4906_v51  ;;  %v385_v8 = vrot.slane %v384_v63, 4  ;;  %2043 = vmatpush.bf16.msrb.mxu2 %v5351_v58  ;;  %v5287_v12 = vor.u32 %v6132_v9, %v5286_v4  ;;  %v5414_v13 = vld [vmem:[#allocation5 + $0x3b0] sm:$0xf] }
  0x67   : > { %v4908_v6 = vld [vmem:[#allocation2 + $0xfc] sm:$0xf0]  ;;  %v399_v11 = vrot.slane %v398_v3, 4  ;;  %v6164_v14 = vld [vmem:[#allocation5 + $0x3b4] sm:$0xf0] }
  0x68   : > { %v6673_v10 = vor.u32 %v6036_v2, %v4908_v6  ;;  %v390_v15 = vsel %vm6589_vm2, %v385_v8, %v389_v48  ;;  %v5415_v18 = vor.u32 %v6164_v14, %v5414_v13  ;;  %v5342_v20 = vld [vmem:[#allocation5 + $0x320] sm:$0xf]  ;;  %v6146_v21 = vld [vmem:[#allocation5 + $0x324] sm:$0xf0]  ;;  %2014 = vmatpush.bf16.msrb.mxu1 %v5287_v12  ;;  %v5334_v33 = vld [vmem:[#allocation5 + $0x310] sm:$0xf] }
  0x69   : > { %v5278_v22 = vld [vmem:[#allocation5 + $0x2a0] sm:$0xf]  ;;  %v404_v23 = vsel %vm6589_vm2, %v399_v11, %v403_v53  ;;  %419 = vst [vmem:[#allocation2 + $0xe0] sm:$0xf] %v390_v15  ;;  %v5343_v24 = vor.u32 %v6146_v21, %v5342_v20  ;;  %v6130_v25 = vld [vmem:[#allocation5 + $0x2a4] sm:$0xf0] }
  0x6a   : > { %v5406_v26 = vld [vmem:[#allocation5 + $0x3a0] sm:$0xf]  ;;  %1888 = vmatmul.bf16.gmra.mxu0 %v6671_v5  ;;  %420 = vst [vmem:[#allocation2 + $0x104] sm:$0xf] %v404_v23  ;;  %2072 = vmatpush.bf16.msrb.mxu3 %v5415_v18  ;;  %v5279_v27 = vor.u32 %v6130_v25, %v5278_v22  ;;  %v6162_v28 = vld [vmem:[#allocation5 + $0x3a4] sm:$0xf0] }
  0x6b   : > { %v5198_v29 = vld [vmem:[#allocation5 + $0x200] sm:$0xf]  ;;  %1917 = vmatmul.bf16.gmra.mxu1 %v6673_v10  ;;  %v6037_v30 = vld [vmem:[#allocation2 + $0xe4] sm:$0xf]  ;;  %2044 = vmatpush.bf16.msrb.mxu2 %v5343_v24  ;;  %v5407_v31 = vor.u32 %v6162_v28, %v5406_v26  ;;  %v6110_v32 = vld [vmem:[#allocation5 + $0x204] sm:$0xf0] }
  0x6c   : > { %v4916_v35 = vld [vmem:[#allocation2 + $0x104] sm:$0xf0]  ;;  %v5199_v36 = vor.u32 %v6110_v32, %v5198_v29  ;;  %v5270_v38 = vld [vmem:[#allocation5 + $0x290] sm:$0xf]  ;;  %2015 = vmatpush.bf16.msrb.mxu1 %v5279_v27  ;;  %v5326_v48 = vld [vmem:[#allocation5 + $0x300] sm:$0xf] }
  0x6d   : > { %v6144_v37 = vld [vmem:[#allocation5 + $0x314] sm:$0xf0]  ;;  %v6681_v39 = vor.u32 %v6037_v30, %v4916_v35  ;;  %v5398_v43 = vld [vmem:[#allocation5 + $0x390] sm:$0xf]  ;;  %v6142_v49 = vld [vmem:[#allocation5 + $0x304] sm:$0xf0] }
  0x6e   : > { %v5335_v41 = vor.u32 %v6144_v37, %v5334_v33  ;;  %v6128_v42 = vld [vmem:[#allocation5 + $0x294] sm:$0xf0]  ;;  %2073 = vmatpush.bf16.msrb.mxu3 %v5407_v31  ;;  %1988 = vmatpush.bf16.msrb.mxu0 %v5199_v36  ;;  %v5262_v50 = vld [vmem:[#allocation5 + $0x280] sm:$0xf]  ;;  %v5327_v51 = vor.u32 %v6142_v49, %v5326_v48  ;;  %v6126_v52 = vld [vmem:[#allocation5 + $0x284] sm:$0xf0] }
  0x6f   : > { %v6160_v45 = vld [vmem:[#allocation5 + $0x394] sm:$0xf0]  ;;  %v5271_v46 = vor.u32 %v6128_v42, %v5270_v38  ;;  %v5390_v53 = vld [vmem:[#allocation5 + $0x380] sm:$0xf]  ;;  %v6158_v56 = vld [vmem:[#allocation5 + $0x384] sm:$0xf0]  ;;  %v5263_v0 = vor.u32 %v6126_v52, %v5262_v50 }
  0x70   : > { %v5399_v47 = vor.u32 %v6160_v45, %v5398_v43  ;;  %1975 = vmatmul.bf16.gmra.mxu3 %v6681_v39  ;;  %2045 = vmatpush.bf16.msrb.mxu2 %v5335_v41  ;;  %v4914_v58 = vld [vmem:[#allocation2 + $0xe0] sm:$0xf]  ;;  %v4740_v59 = vld [vmem:[%s6572_s16 + $0xd8] sm:$0xf]  ;;  %v4764_v2 = vld [vmem:[%s6572_s16 + $0x8] sm:$0xf]  ;;  %v5391_v4 = vor.u32 %v6158_v56, %v5390_v53 }
  0x71   : > { %v4741_v61 = vld [vmem:[%s6572_s16 + $0xe0] sm:$0xf]  ;;  %v6041_v63 = vld [vmem:[#allocation2 + $0x100] sm:$0xf0]  ;;  %2016 = vmatpush.bf16.msrb.mxu1 %v5271_v46  ;;  %447 = vst [vmem:[#allocation2 + $0x10] sm:$0xf] %v4740_v59 }
  0x72   : > { %v6687_v3 = vor.u32 %v6041_v63, %v4914_v58  ;;  %2074 = vmatpush.bf16.msrb.mxu3 %v5399_v47  ;;  %448 = vst [vmem:[#allocation2 + $0x34] sm:$0xf] %v4741_v61  ;;  %v4765_v6 = vld [vmem:[%s6572_s16 + $0x10] sm:$0xf]  ;;  %v5510_v8 = vld [vmem:[#allocation5 + $0x470] sm:$0xf] }
  0x73   : > { %608 = vst [vmem:[#allocation2 + $0x18] sm:$0xf] %v4764_v2  ;;  %v6188_v9 = vld [vmem:[#allocation5 + $0x474] sm:$0xf0]  ;;  %v4748_v11 = vld [vmem:[%s6572_s16 + $0x90] sm:$0xf] }
  0x74   : > { %2046 = vmatpush.bf16.msrb.mxu2 %v5327_v51  ;;  %609 = vst [vmem:[#allocation2 + $0x3c] sm:$0xf] %v4765_v6  ;;  %v5511_v12 = vor.u32 %v6188_v9, %v5510_v8  ;;  %v4749_v13 = vld [vmem:[%s6572_s16 + $0x94] sm:$0x1]  ;;  %v4750_v14 = vld [vmem:[%s6572_s16 + $0x98] sm:$0xf] }
  0x75   : > { %1946 = vmatmul.bf16.gmra.mxu2 %v6687_v3  ;;  %2017 = vmatpush.bf16.msrb.mxu1 %v5263_v0  ;;  %v4751_v15 = vld [vmem:[%s6572_s16 + $0x9c] sm:$0x1]  ;;  %v472_v18 = vshrl.u32 %v4748_v11, 16  ;;  %v475_v20 = vshll.u32 %v4748_v11, 16  ;;  %v481_v21 = vshll.u32 %v4749_v13, 16  ;;  %v486_v22 = vshrl.u32 %v4750_v14, 16 }
  0x76   : > { %2075 = vmatpush.bf16.msrb.mxu3 %v5391_v4  ;;  %2097 = vmatpush.bf16.msra.mxu0 %v5511_v12  ;;  %v489_v23 = vshll.u32 %v4750_v14, 16  ;;  %v495_v24 = vshll.u32 %v4751_v15, 16  ;;  %v4772_v25 = vld [vmem:[%s6572_s16 + $0x50] sm:$0xf]  ;;  %v4773_v26 = vld [vmem:[%s6572_s16 + $0x58] sm:$0xf] }
  0x77   : > { %v474_v27 = vrot.slane %v472_v18, 4  ;;  %v477_v28 = vrot.slane %v475_v20, 5  ;;  %v488_v29 = vrot.slane %v486_v22, 4  ;;  %625 = vst [vmem:[#allocation2 + $0x1c] sm:$0xf] %v4772_v25  ;;  %v483_v31 = vrot.slane %v481_v21, 5 }
  0x78   : > { %v4814_v30 = vld [vmem:[#allocation2 + $0x10] sm:$0xf]  ;;  %v491_v32 = vrot.slane %v489_v23, 5  ;;  %626 = vst [vmem:[#allocation2 + $0x40] sm:$0xf] %v4773_v26  ;;  %v497_v42 = vrot.slane %v495_v24, 5 }
  0x79   : > { %v6015_v33 = vld [vmem:[#allocation2 + $0x30] sm:$0xf0]  ;;  %v478_v35 = vor.u32 %v477_v28, %v474_v27  ;;  %v5502_v36 = vld [vmem:[#allocation5 + $0x460] sm:$0xf]  ;;  %v6186_v37 = vld [vmem:[#allocation5 + $0x464] sm:$0xf0] }
  0x7a   : > { %v6697_v38 = vor.u32 %v6015_v33, %v4814_v30  ;;  %v492_v41 = vor.u32 %v491_v32, %v488_v29  ;;  %v5503_v43 = vor.u32 %v6186_v37, %v5502_v36  ;;  %v4742_v45 = vld [vmem:[%s6572_s16 + $0xe8] sm:$0xf]  ;;  %v4743_v46 = vld [vmem:[%s6572_s16 + $0xf0] sm:$0xf]  ;;  %v4822_v48 = vld [vmem:[#allocation2 + $0x18] sm:$0xf] }
  0x7b   : > { %v479_v47 = vrot.slane %v478_v35, 4  ;;  %449 = vst [vmem:[#allocation2 + $0x58] sm:$0xf] %v4742_v45  ;;  %v6016_v49 = vld [vmem:[#allocation2 + $0x38] sm:$0xf0] }
  0x7c   : > { %1989 = vmatmul.bf16.vlgmr.msrb.gmra.mxu0 %v6697_v38  ;;  %v493_v50 = vrot.slane %v492_v41, 4  ;;  %450 = vst [vmem:[#allocation2 + $0x7c] sm:$0xf] %v4743_v46  ;;  %v4766_v51 = vld [vmem:[%s6572_s16 + $0x18] sm:$0xf]  ;;  %v6711_v9 = vor.u32 %v6016_v49, %v4822_v48 }
  0x7d   : > { %v484_v52 = vsel %vm6589_vm2, %v479_v47, %v483_v31  ;;  %2098 = vmatpush.bf16.msra.mxu0 %v5503_v43  ;;  %v4767_v53 = vld [vmem:[%s6572_s16 + $0x20] sm:$0xf]  ;;  %610 = vst [vmem:[#allocation2 + $0x60] sm:$0xf] %v4766_v51  ;;  %v6184_v61 = vld [vmem:[#allocation5 + $0x454] sm:$0xf0] }
  0x7e   : > { %v5494_v56 = vld [vmem:[#allocation5 + $0x450] sm:$0xf]  ;;  %v498_v58 = vsel %vm6589_vm2, %v493_v50, %v497_v42  ;;  %591 = vst [vmem:[#allocation2 + $0x14] sm:$0xf] %v484_v52  ;;  %v6012_v59 = vld [vmem:[#allocation2 + $0x1c] sm:$0xf] }
  0x7f   : > { %592 = vst [vmem:[#allocation2 + $0x38] sm:$0xf] %v498_v58  ;;  %v4824_v63 = vld [vmem:[#allocation2 + $0x3c] sm:$0xf0]  ;;  %v5495_v0 = vor.u32 %v6184_v61, %v5494_v56  ;;  %v6075_v2 = vld [vmem:[#allocation5 + $0xf4] sm:$0xf] }
  0x80   : > { %v6708_v4 = vor.u32 %v6012_v59, %v4824_v63  ;;  %611 = vst [vmem:[#allocation2 + $0x84] sm:$0xf] %v4767_v53  ;;  %v5064_v6 = vld [vmem:[#allocation5 + $0xf8] sm:$0xf0]  ;;  %v4752_v8 = vld [vmem:[%s6572_s16 + $0xa0] sm:$0xf] }
  0x81   : > { %2099 = vmatpush.bf16.msra.mxu0 %v5495_v0  ;;  %v5067_v11 = vor.u32 %v6075_v2, %v5064_v6  ;;  %v4753_v12 = vld [vmem:[%s6572_s16 + $0xa4] sm:$0x1]  ;;  %v4754_v13 = vld [vmem:[%s6572_s16 + $0xa8] sm:$0xf]  ;;  %v4755_v14 = vld [vmem:[%s6572_s16 + $0xac] sm:$0x1] }
  0x82   : > { %2076 = vmatmul.bf16.vlgmr.msrb.gmra.mxu3 %v6708_v4  ;;  %v500_v15 = vshrl.u32 %v4752_v8, 16  ;;  %v503_v18 = vshll.u32 %v4752_v8, 16  ;;  %v509_v20 = vshll.u32 %v4753_v12, 16  ;;  %v514_v21 = vshrl.u32 %v4754_v13, 16  ;;  %v4774_v24 = vld [vmem:[%s6572_s16 + $0x60] sm:$0xf] }
  0x83   : > { %2155 = vmatpush.bf16.msra.mxu2 %v5067_v11  ;;  %v517_v22 = vshll.u32 %v4754_v13, 16  ;;  %v523_v23 = vshll.u32 %v4755_v14, 16  ;;  %v4850_v25 = vld [vmem:[#allocation2 + $0x58] sm:$0xf]  ;;  %v6024_v26 = vld [vmem:[#allocation2 + $0x78] sm:$0xf0] }
  0x84   : > { %v502_v27 = vrot.slane %v500_v15, 4  ;;  %v505_v28 = vrot.slane %v503_v18, 5  ;;  %v511_v30 = vrot.slane %v509_v20, 5  ;;  %v516_v31 = vrot.slane %v514_v21, 4  ;;  %v4775_v36 = vld [vmem:[%s6572_s16 + $0x68] sm:$0xf] }
  0x85   : > { %2047 = vmatmul.bf16.vlgmr.msrb.gmra.mxu2 %v6711_v9  ;;  %v6011_v29 = vld [vmem:[#allocation2 + $0x14] sm:$0xf]  ;;  %v519_v32 = vrot.slane %v517_v22, 5  ;;  %627 = vst [vmem:[#allocation2 + $0x64] sm:$0xf] %v4774_v24  ;;  %v525_v42 = vrot.slane %v523_v23, 5  ;;  %v6722_v45 = vor.u32 %v6024_v26, %v4850_v25 }
  0x86   : > { %v4816_v33 = vld [vmem:[#allocation2 + $0x34] sm:$0xf0]  ;;  %v506_v35 = vor.u32 %v505_v28, %v502_v27  ;;  %628 = vst [vmem:[#allocation2 + $0x88] sm:$0xf] %v4775_v36  ;;  %v5486_v43 = vld [vmem:[#allocation5 + $0x440] sm:$0xf] }
  0x87   : > { %v6720_v37 = vor.u32 %v6011_v29, %v4816_v33  ;;  %v520_v41 = vor.u32 %v519_v32, %v516_v31  ;;  %v6182_v47 = vld [vmem:[#allocation5 + $0x444] sm:$0xf0]  ;;  %v6073_v48 = vld [vmem:[#allocation5 + $0xe4] sm:$0xf]  ;;  %v5056_v51 = vld [vmem:[#allocation5 + $0xe8] sm:$0xf0] }
  0x88   : > { %v507_v46 = vrot.slane %v506_v35, 4  ;;  %v5487_v50 = vor.u32 %v6182_v47, %v5486_v43  ;;  %v4744_v52 = vld [vmem:[%s6572_s16 + $0xf8] sm:$0xf]  ;;  %v5059_v56 = vor.u32 %v6073_v48, %v5056_v51  ;;  %v4745_v58 = vld [vmem:[%s6572_s16 + $0x100] sm:$0xf] }
  0x89   : > { %2018 = vmatmul.bf16.vlgmr.msrb.gmra.mxu1 %v6720_v37  ;;  %v521_v49 = vrot.slane %v520_v41, 4  ;;  %451 = vst [vmem:[#allocation2 + $0xa0] sm:$0xf] %v4744_v52  ;;  %v4768_v59 = vld [vmem:[%s6572_s16 + $0x28] sm:$0xf] }
  0x8a   : > { %v512_v53 = vsel %vm6589_vm2, %v507_v46, %v511_v30  ;;  %2100 = vmatpush.bf16.msra.mxu0 %v5487_v50  ;;  %v4769_v63 = vld [vmem:[%s6572_s16 + $0x30] sm:$0xf]  ;;  %v5478_v0 = vld [vmem:[#allocation5 + $0x430] sm:$0xf]  ;;  %v6025_v6 = vld [vmem:[#allocation2 + $0x80] sm:$0xf0]  ;;  %2156 = vmatpush.bf16.msra.mxu2 %v5059_v56 }
  0x8b   : > { %v526_v61 = vsel %vm6589_vm2, %v521_v49, %v525_v42  ;;  %593 = vst [vmem:[#allocation2 + $0x5c] sm:$0xf] %v512_v53  ;;  %v4858_v2 = vld [vmem:[#allocation2 + $0x60] sm:$0xf]  ;;  %v6180_v8 = vld [vmem:[#allocation5 + $0x434] sm:$0xf0] }
  0x8c   : > { %1994 = vmatmul.bf16.gmra.mxu0 %v6722_v45  ;;  %594 = vst [vmem:[#allocation2 + $0x80] sm:$0xf] %v526_v61  ;;  %v6071_v11 = vld [vmem:[#allocation5 + $0xd4] sm:$0xf]  ;;  %v5479_v13 = vor.u32 %v6180_v8, %v5478_v0  ;;  %v5048_v14 = vld [vmem:[#allocation5 + $0xd8] sm:$0xf0]  ;;  %v6740_v29 = vor.u32 %v6025_v6, %v4858_v2 }
  0x8d   : > { %v6021_v12 = vld [vmem:[#allocation2 + $0x64] sm:$0xf]  ;;  %452 = vst [vmem:[#allocation2 + $0xc4] sm:$0xf] %v4745_v58  ;;  %v4860_v15 = vld [vmem:[#allocation2 + $0x84] sm:$0xf0]  ;;  %v5051_v18 = vor.u32 %v6071_v11, %v5048_v14 }
  0x8e   : > { %612 = vst [vmem:[#allocation2 + $0xa8] sm:$0xf] %v4768_v59  ;;  %v4756_v20 = vld [vmem:[%s6572_s16 + $0xb0] sm:$0xf]  ;;  %v6735_v21 = vor.u32 %v6021_v12, %v4860_v15  ;;  %2101 = vmatpush.bf16.msra.mxu0 %v5479_v13  ;;  %v4757_v22 = vld [vmem:[%s6572_s16 + $0xb4] sm:$0x1] }
  0x8f   : > { %613 = vst [vmem:[#allocation2 + $0xcc] sm:$0xf] %v4769_v63  ;;  %v4758_v23 = vld [vmem:[%s6572_s16 + $0xb8] sm:$0xf]  ;;  %2157 = vmatpush.bf16.msra.mxu2 %v5051_v18  ;;  %v4759_v24 = vld [vmem:[%s6572_s16 + $0xbc] sm:$0x1] }
  0x90   : > { %v528_v25 = vshrl.u32 %v4756_v20, 16  ;;  %v531_v26 = vshll.u32 %v4756_v20, 16  ;;  %v537_v27 = vshll.u32 %v4757_v22, 16  ;;  %v542_v28 = vshrl.u32 %v4758_v23, 16  ;;  %v4776_v32 = vld [vmem:[%s6572_s16 + $0x70] sm:$0xf] }
  0x91   : > { %v545_v30 = vshll.u32 %v4758_v23, 16  ;;  %v551_v31 = vshll.u32 %v4759_v24, 16  ;;  %v4886_v43 = vld [vmem:[#allocation2 + $0xa0] sm:$0xf]  ;;  %v4777_v47 = vld [vmem:[%s6572_s16 + $0x78] sm:$0xf] }
  0x92   : > { %v6020_v33 = vld [vmem:[#allocation2 + $0x5c] sm:$0xf]  ;;  %2081 = vmatmul.bf16.gmra.mxu3 %v6735_v21  ;;  %v530_v35 = vrot.slane %v528_v25, 4  ;;  %v533_v36 = vrot.slane %v531_v26, 5  ;;  %v544_v41 = vrot.slane %v542_v28, 4  ;;  %v539_v49 = vrot.slane %v537_v27, 5 }
  0x93   : > { %v4852_v42 = vld [vmem:[#allocation2 + $0x7c] sm:$0xf0]  ;;  %v547_v46 = vrot.slane %v545_v30, 5  ;;  %v553_v50 = vrot.slane %v551_v31, 5  ;;  %629 = vst [vmem:[#allocation2 + $0xac] sm:$0xf] %v4776_v32 }
  0x94   : > { %v534_v48 = vor.u32 %v533_v36, %v530_v35  ;;  %v6059_v51 = vld [vmem:[#allocation5 + $0x74] sm:$0xf]  ;;  %v6746_v52 = vor.u32 %v6020_v33, %v4852_v42  ;;  %630 = vst [vmem:[#allocation2 + $0xd0] sm:$0xf] %v4777_v47  ;;  %v5000_v58 = vld [vmem:[#allocation5 + $0x78] sm:$0xf0] }
  0x95   : > { %2052 = vmatmul.bf16.gmra.mxu2 %v6740_v29  ;;  %v6033_v53 = vld [vmem:[#allocation2 + $0xc0] sm:$0xf0]  ;;  %v548_v56 = vor.u32 %v547_v46, %v544_v41  ;;  %v5003_v61 = vor.u32 %v6059_v51, %v5000_v58  ;;  %v5128_v2 = vld [vmem:[#allocation5 + $0x178] sm:$0xf0]  ;;  %v6057_v6 = vld [vmem:[#allocation5 + $0x64] sm:$0xf] }
  0x96   : > { %v535_v59 = vrot.slane %v534_v48, 4  ;;  %v6091_v63 = vld [vmem:[#allocation5 + $0x174] sm:$0xf]  ;;  %v6748_v8 = vor.u32 %v6033_v53, %v4886_v43  ;;  %v4992_v13 = vld [vmem:[#allocation5 + $0x68] sm:$0xf0] }
  0x97   : > { %v549_v0 = vrot.slane %v548_v56, 4  ;;  %2126 = vmatpush.bf16.msra.mxu1 %v5003_v61  ;;  %v5131_v12 = vor.u32 %v6091_v63, %v5128_v2  ;;  %v6089_v14 = vld [vmem:[#allocation5 + $0x164] sm:$0xf]  ;;  %v5120_v15 = vld [vmem:[#allocation5 + $0x168] sm:$0xf0]  ;;  %v4995_v20 = vor.u32 %v6057_v6, %v4992_v13 }
  0x98   : > { %v540_v11 = vsel %vm6589_vm2, %v535_v59, %v539_v49  ;;  %v5470_v22 = vld [vmem:[#allocation5 + $0x420] sm:$0xf]  ;;  %v6178_v23 = vld [vmem:[#allocation5 + $0x424] sm:$0xf0]  ;;  %v5123_v24 = vor.u32 %v6089_v14, %v5120_v15  ;;  %v6069_v26 = vld [vmem:[#allocation5 + $0xc4] sm:$0xf] }
  0x99   : > { %2023 = vmatmul.bf16.gmra.mxu1 %v6746_v52  ;;  %v554_v18 = vsel %vm6589_vm2, %v549_v0, %v553_v50  ;;  %595 = vst [vmem:[#allocation2 + $0xa4] sm:$0xf] %v540_v11  ;;  %2184 = vmatpush.bf16.msra.mxu3 %v5131_v12  ;;  %v5471_v25 = vor.u32 %v6178_v23, %v5470_v22  ;;  %v5040_v27 = vld [vmem:[#allocation5 + $0xc8] sm:$0xf0]  ;;  %v6055_v31 = vld [vmem:[#allocation5 + $0x54] sm:$0xf] }
  0x9a   : > { %596 = vst [vmem:[#allocation2 + $0xc8] sm:$0xf] %v554_v18  ;;  %v6030_v28 = vld [vmem:[#allocation2 + $0xac] sm:$0xf]  ;;  %v5043_v30 = vor.u32 %v6069_v26, %v5040_v27  ;;  %v4894_v33 = vld [vmem:[#allocation2 + $0xa8] sm:$0xf] }
  0x9b   : > { %v4984_v32 = vld [vmem:[#allocation5 + $0x58] sm:$0xf0]  ;;  %v4896_v35 = vld [vmem:[#allocation2 + $0xcc] sm:$0xf0]  ;;  %2127 = vmatpush.bf16.msra.mxu1 %v4995_v20  ;;  %v6087_v41 = vld [vmem:[#allocation5 + $0x154] sm:$0xf]  ;;  %2102 = vmatpush.bf16.msra.mxu0 %v5471_v25 }
  0x9c   : > { %1999 = vmatmul.bf16.gmra.mxu0 %v6748_v8  ;;  %v4987_v36 = vor.u32 %v6055_v31, %v4984_v32  ;;  %v5112_v42 = vld [vmem:[#allocation5 + $0x158] sm:$0xf0]  ;;  %2158 = vmatpush.bf16.msra.mxu2 %v5043_v30  ;;  %v6053_v46 = vld [vmem:[#allocation5 + $0x44] sm:$0xf]  ;;  %v4976_v47 = vld [vmem:[#allocation5 + $0x48] sm:$0xf0]  ;;  %v6756_v48 = vor.u32 %v6030_v28, %v4896_v35 }
  0x9d   : > { %v6034_v43 = vld [vmem:[#allocation2 + $0xc8] sm:$0xf0]  ;;  %2185 = vmatpush.bf16.msra.mxu3 %v5123_v24  ;;  %v6085_v49 = vld [vmem:[#allocation5 + $0x144] sm:$0xf]  ;;  %v5104_v50 = vld [vmem:[#allocation5 + $0x148] sm:$0xf0]  ;;  %v5115_v56 = vor.u32 %v6087_v41, %v5112_v42  ;;  %v4979_v63 = vor.u32 %v6053_v46, %v4976_v47 }
  0x9e   : > { %7834 = vst [vmem:[#allocation11_spill] sm:$0xff] %v6756_v48  ;;  %v4746_v51 = vld [vmem:[%s6572_s16 + $0x108] sm:$0xf]  ;;  %v4747_v53 = vld [vmem:[%s6572_s16 + $0x110] sm:$0xf]  ;;  %v6762_v2 = vor.u32 %v6034_v43, %v4894_v33  ;;  %v5107_v15 = vor.u32 %v6085_v49, %v5104_v50 }
  0x9f   : > { %453 = vst [vmem:[#allocation2 + $0xe8] sm:$0xf] %v4746_v51  ;;  %v4770_v58 = vld [vmem:[%s6572_s16 + $0x38] sm:$0xf]  ;;  %v4771_v59 = vld [vmem:[%s6572_s16 + $0x40] sm:$0xf]  ;;  %2128 = vmatpush.bf16.msra.mxu1 %v4987_v36 }
  0xa0   : > { %v6029_v61 = vld [vmem:[#allocation2 + $0xa4] sm:$0xf]  ;;  %454 = vst [vmem:[#allocation2 + $0x10c] sm:$0xf] %v4747_v53  ;;  %v5462_v0 = vld [vmem:[#allocation5 + $0x410] sm:$0xf] }
  0xa1   : > { %v4888_v6 = vld [vmem:[#allocation2 + $0xc4] sm:$0xf0]  ;;  %614 = vst [vmem:[#allocation2 + $0xf0] sm:$0xf] %v4770_v58  ;;  %v6067_v13 = vld [vmem:[#allocation5 + $0xb4] sm:$0xf]  ;;  %2186 = vmatpush.bf16.msra.mxu3 %v5115_v56 }
  0xa2   : > { %v6176_v11 = vld [vmem:[#allocation5 + $0x414] sm:$0xf0]  ;;  %2086 = vmatmul.bf16.gmra.mxu3 %v6756_v48  ;;  %615 = vst [vmem:[#allocation2 + $0x114] sm:$0xf] %v4771_v59  ;;  %v5032_v14 = vld [vmem:[#allocation5 + $0xb8] sm:$0xf0]  ;;  %v6770_v30 = vor.u32 %v6029_v61, %v4888_v6 }
  0xa3   : > { %v5463_v12 = vor.u32 %v6176_v11, %v5462_v0  ;;  %v5035_v18 = vor.u32 %v6067_v13, %v5032_v14  ;;  %v4760_v20 = vld [vmem:[%s6572_s16 + $0xc0] sm:$0xf]  ;;  %v4761_v22 = vld [vmem:[%s6572_s16 + $0xc4] sm:$0x1]  ;;  %v4762_v23 = vld [vmem:[%s6572_s16 + $0xc8] sm:$0xf]  ;;  %2129 = vmatpush.bf16.msra.mxu1 %v4979_v63 }
  0xa4   : > { %v4763_v24 = vld [vmem:[%s6572_s16 + $0xcc] sm:$0x1]  ;;  %v556_v25 = vshrl.u32 %v4760_v20, 16  ;;  %v559_v26 = vshll.u32 %v4760_v20, 16  ;;  %v565_v27 = vshll.u32 %v4761_v22, 16  ;;  %v570_v28 = vshrl.u32 %v4762_v23, 16 }
  0xa5   : > { %2103 = vmatpush.bf16.msra.mxu0 %v5463_v12  ;;  %2057 = vmatmul.bf16.gmra.mxu2 %v6762_v2  ;;  %v573_v31 = vshll.u32 %v4762_v23, 16  ;;  %v579_v32 = vshll.u32 %v4763_v24, 16  ;;  %v4778_v33 = vld [vmem:[%s6572_s16 + $0x80] sm:$0xf]  ;;  %v4779_v35 = vld [vmem:[%s6572_s16 + $0x88] sm:$0xf] }
  0xa6   : > { %v4922_v36 = vld [vmem:[#allocation2 + $0xe8] sm:$0xf]  ;;  %2159 = vmatpush.bf16.msra.mxu2 %v5035_v18  ;;  %v558_v41 = vrot.slane %v556_v25, 4  ;;  %v561_v42 = vrot.slane %v559_v26, 5  ;;  %v572_v43 = vrot.slane %v570_v28, 4  ;;  %2187 = vmatpush.bf16.msra.mxu3 %v5107_v15  ;;  %v567_v51 = vrot.slane %v565_v27, 5 }
  0xa7   : > { %v6042_v46 = vld [vmem:[#allocation2 + $0x108] sm:$0xf0]  ;;  %v575_v47 = vrot.slane %v573_v31, 5  ;;  %631 = vst [vmem:[#allocation2 + $0xf4] sm:$0xf] %v4778_v33  ;;  %v581_v58 = vrot.slane %v579_v32, 5 }
  0xa8   : > { %v6774_v49 = vor.u32 %v6042_v46, %v4922_v36  ;;  %v562_v50 = vor.u32 %v561_v42, %v558_v41  ;;  %632 = vst [vmem:[#allocation2 + $0x118] sm:$0xf] %v4779_v35  ;;  %v6051_v53 = vld [vmem:[#allocation5 + $0x34] sm:$0xf]  ;;  %v4968_v59 = vld [vmem:[#allocation5 + $0x38] sm:$0xf0] }
  0xa9   : > { %2028 = vmatmul.bf16.gmra.mxu1 %v6770_v30  ;;  %v576_v56 = vor.u32 %v575_v47, %v572_v43  ;;  %v6083_v61 = vld [vmem:[#allocation5 + $0x134] sm:$0xf]  ;;  %v4971_v0 = vor.u32 %v6051_v53, %v4968_v59  ;;  %v5096_v6 = vld [vmem:[#allocation5 + $0x138] sm:$0xf0]  ;;  %v6065_v11 = vld [vmem:[#allocation5 + $0xa4] sm:$0xf] }
  0xaa   : > { %v563_v63 = vrot.slane %v562_v50, 4  ;;  %v5099_v13 = vor.u32 %v6083_v61, %v5096_v6  ;;  %v5024_v14 = vld [vmem:[#allocation5 + $0xa8] sm:$0xf0]  ;;  %v6049_v15 = vld [vmem:[#allocation5 + $0x24] sm:$0xf] }
  0xab   : > { %v577_v12 = vrot.slane %v576_v56, 4  ;;  %v4930_v18 = vld [vmem:[#allocation2 + $0xf0] sm:$0xf]  ;;  %v6043_v20 = vld [vmem:[#allocation2 + $0x110] sm:$0xf0]  ;;  %2130 = vmatpush.bf16.msra.mxu1 %v4971_v0  ;;  %v5027_v23 = vor.u32 %v6065_v11, %v5024_v14 }
  0xac   : > { %2004 = vmatmul.bf16.gmra.mxu0 %v6774_v49  ;;  %v568_v22 = vsel %vm6589_vm2, %v563_v63, %v567_v51  ;;  %v4960_v24 = vld [vmem:[#allocation5 + $0x28] sm:$0xf0]  ;;  %v6081_v25 = vld [vmem:[#allocation5 + $0x124] sm:$0xf]  ;;  %2188 = vmatpush.bf16.msra.mxu3 %v5099_v13  ;;  %v5454_v32 = vld [vmem:[#allocation5 + $0x400] sm:$0xf] }
  0xad   : > { %v5088_v26 = vld [vmem:[#allocation5 + $0x128] sm:$0xf0]  ;;  %v582_v27 = vsel %vm6589_vm2, %v577_v12, %v581_v58  ;;  %597 = vst [vmem:[#allocation2 + $0xec] sm:$0xf] %v568_v22  ;;  %v4963_v28 = vor.u32 %v6049_v15, %v4960_v24  ;;  %v6174_v33 = vld [vmem:[#allocation5 + $0x404] sm:$0xf0]  ;;  %2160 = vmatpush.bf16.msra.mxu2 %v5027_v23  ;;  %v6784_v58 = vor.u32 %v6043_v20, %v4930_v18 }
  0xae   : > { %v5091_v31 = vor.u32 %v6081_v25, %v5088_v26  ;;  %598 = vst [vmem:[#allocation2 + $0x110] sm:$0xf] %v582_v27  ;;  %v6039_v35 = vld [vmem:[#allocation2 + $0xf4] sm:$0xf]  ;;  %v5455_v36 = vor.u32 %v6174_v33, %v5454_v32  ;;  %v6063_v41 = vld [vmem:[#allocation5 + $0x94] sm:$0xf] }
  0xaf   : > { %v4932_v42 = vld [vmem:[#allocation2 + $0x114] sm:$0xf0]  ;;  %v5016_v43 = vld [vmem:[#allocation5 + $0x98] sm:$0xf0]  ;;  %v6047_v46 = vld [vmem:[#allocation5 + $0x14] sm:$0xf]  ;;  %2131 = vmatpush.bf16.msra.mxu1 %v4963_v28 }
  0xb0   : > { %v6782_v47 = vor.u32 %v6039_v35, %v4932_v42  ;;  %2104 = vmatpush.bf16.msra.mxu0 %v5455_v36  ;;  %v5019_v50 = vor.u32 %v6063_v41, %v5016_v43  ;;  %v4952_v51 = vld [vmem:[#allocation5 + $0x18] sm:$0xf0]  ;;  %v6079_v53 = vld [vmem:[#allocation5 + $0x114] sm:$0xf]  ;;  %2189 = vmatpush.bf16.msra.mxu3 %v5091_v31  ;;  %v6061_v63 = vld [vmem:[#allocation5 + $0x84] sm:$0xf] }
  0xb1   : > { %v5080_v56 = vld [vmem:[#allocation5 + $0x118] sm:$0xf0]  ;;  %v4955_v59 = vor.u32 %v6047_v46, %v4952_v51  ;;  %v5008_v0 = vld [vmem:[#allocation5 + $0x88] sm:$0xf0]  ;;  %v6045_v6 = vld [vmem:[#allocation5 + $0x4] sm:$0xf] }
  0xb2   : > { %7835 = vst [vmem:[#allocation12_spill] sm:$0xff] %v6782_v47  ;;  %v5083_v61 = vor.u32 %v6079_v53, %v5080_v56  ;;  %2091 = vmatmul.bf16.gmra.mxu3 %v6782_v47  ;;  %2161 = vmatpush.bf16.msra.mxu2 %v5019_v50  ;;  %v5011_v11 = vor.u32 %v6061_v63, %v5008_v0  ;;  %v4944_v12 = vld [vmem:[#allocation5 + $0x8] sm:$0xf0]  ;;  %v6077_v13 = vld [vmem:[#allocation5 + $0x104] sm:$0xf] }
  0xb3   : > { %v5072_v14 = vld [vmem:[#allocation5 + $0x108] sm:$0xf0]  ;;  %v4780_v15 = vld [vmem:[%s6572_s16 + $0x8] sm:$0xf]  ;;  %v4781_v22 = vld [vmem:[%s6572_s16 + $0xc] sm:$0x1]  ;;  %2132 = vmatpush.bf16.msra.mxu1 %v4955_v59  ;;  %v4947_v18 = vor.u32 %v6045_v6, %v4944_v12 }
  0xb4   : > { %v4782_v23 = vld [vmem:[%s6572_s16 + $0x10] sm:$0xf]  ;;  %v6038_v24 = vld [vmem:[#allocation2 + $0xec] sm:$0xf]  ;;  %v5075_v20 = vor.u32 %v6077_v13, %v5072_v14  ;;  %v4783_v25 = vld [vmem:[%s6572_s16 + $0x14] sm:$0x1]  ;;  %2190 = vmatpush.bf16.msra.mxu3 %v5083_v61 }
  0xb5   : > { %v650_v26 = vshrl.u32 %v4780_v15, 16  ;;  %v653_v27 = vshll.u32 %v4780_v15, 16  ;;  %2062 = vmatmul.bf16.gmra.mxu2 %v6784_v58  ;;  %v4924_v28 = vld [vmem:[#allocation2 + $0x10c] sm:$0xf0]  ;;  %v659_v31 = vshll.u32 %v4781_v22, 16  ;;  %v664_v32 = vshrl.u32 %v4782_v23, 16 }
  0xb6   : > { %v667_v33 = vshll.u32 %v4782_v23, 16  ;;  %v673_v35 = vshll.u32 %v4783_v25, 16  ;;  %v6792_v36 = vor.u32 %v6038_v24, %v4924_v28  ;;  %2162 = vmatpush.bf16.msra.mxu2 %v5011_v11  ;;  %v4784_v43 = vld [vmem:[%s6572_s16 + $0x18] sm:$0xf]  ;;  %v4785_v46 = vld [vmem:[%s6572_s16 + $0x1c] sm:$0x1]  ;;  %v1874_v50 = vpop.f32.mrf.mxu0 }
  0xb7   : > { %v652_v41 = vrot.slane %v650_v26, 4  ;;  %v655_v42 = vrot.slane %v653_v27, 5  ;;  %v661_v51 = vrot.slane %v659_v31, 5  ;;  %v666_v53 = vrot.slane %v664_v32, 4  ;;  %v4786_v63 = vld [vmem:[%s6572_s16 + $0x20] sm:$0xf]  ;;  %2133 = vmatpush.bf16.msra.mxu1 %v4947_v18 }
  0xb8   : > { %v669_v56 = vrot.slane %v667_v33, 5  ;;  %v675_v59 = vrot.slane %v673_v35, 5  ;;  %v1903_v61 = vpop.f32.mrf.mxu1  ;;  %v4787_v6 = vld [vmem:[%s6572_s16 + $0x24] sm:$0x1]  ;;  %v678_v12 = vshrl.u32 %v4784_v43, 16  ;;  %v681_v13 = vshll.u32 %v4784_v43, 16  ;;  %2191 = vmatpush.bf16.msra.mxu3 %v5075_v20 }
  0xb9   : > { %v656_v0 = vor.u32 %v655_v42, %v652_v41  ;;  %v687_v14 = vshll.u32 %v4785_v46, 16  ;;  %2033 = vmatmul.bf16.gmra.mxu1 %v6792_v36  ;;  %v6799_v11 = vadd.f32 %v1903_v61, %v1874_v50  ;;  %v692_v22 = vshrl.u32 %v4786_v63, 16  ;;  %v6139_v24 = vld [vmem:[#allocation5 + $0x2f4] sm:$0xf]  ;;  %v5320_v25 = vld [vmem:[#allocation5 + $0x2f8] sm:$0xf0] }
  0xba   : > { %v670_v15 = vor.u32 %v669_v56, %v666_v53  ;;  %v695_v23 = vshll.u32 %v4786_v63, 16  ;;  %v680_v18 = vrot.slane %v678_v12, 4  ;;  %v683_v27 = vrot.slane %v681_v13, 5  ;;  %v4788_v31 = vld [vmem:[%s6572_s16 + $0x28] sm:$0xf] }
  0xbb   : > { %v657_v26 = vrot.slane %v656_v0, 4  ;;  %v689_v28 = vrot.slane %v687_v14, 5  ;;  %v694_v33 = vrot.slane %v692_v22, 4  ;;  %v701_v41 = vshll.u32 %v4787_v6, 16  ;;  %v6137_v42 = vld [vmem:[#allocation5 + $0x2e4] sm:$0xf] }
  0xbc   : > { %v671_v32 = vrot.slane %v670_v15, 4  ;;  %v697_v35 = vrot.slane %v695_v23, 5  ;;  %v684_v43 = vor.u32 %v683_v27, %v680_v18  ;;  %v5323_v46 = vor.u32 %v6139_v24, %v5320_v25  ;;  %v5312_v50 = vld [vmem:[#allocation5 + $0x2e8] sm:$0xf0]  ;;  %v4789_v53 = vld [vmem:[%s6572_s16 + $0x2c] sm:$0x1] }
  0xbd   : > { %v662_v20 = vsel %vm6589_vm2, %v657_v26, %v661_v51  ;;  %v4790_v56 = vld [vmem:[%s6572_s16 + $0x30] sm:$0xf]  ;;  %v703_v0 = vrot.slane %v701_v41, 5  ;;  %v5315_v12 = vor.u32 %v6137_v42, %v5312_v50  ;;  %v4791_v13 = vld [vmem:[%s6572_s16 + $0x34] sm:$0x1]  ;;  %v706_v6 = vshrl.u32 %v4788_v31, 16 }
  0xbe   : > { %v676_v63 = vsel %vm6589_vm2, %v671_v32, %v675_v59  ;;  %769 = vst [vmem:[#allocation2 + $0x20] sm:$0xf] %v662_v20  ;;  %v698_v61 = vor.u32 %v697_v35, %v694_v33  ;;  %v685_v14 = vrot.slane %v684_v43, 4  ;;  %2271 = vmatpush.bf16.msrb.mxu2 %v5323_v46  ;;  %v709_v15 = vshll.u32 %v4788_v31, 16  ;;  %v6809_v51 = vpop.f32.mrf.mxu0 }
  0xbf   : > { %770 = vst [vmem:[#allocation2 + $0x44] sm:$0xf] %v676_v63  ;;  %v715_v22 = vshll.u32 %v4789_v53, 16  ;;  %v720_v24 = vshrl.u32 %v4790_v56, 16  ;;  %v723_v25 = vshll.u32 %v4790_v56, 16  ;;  %v729_v26 = vshll.u32 %v4791_v13, 16 }
  0xc0   : > { %v699_v23 = vrot.slane %v698_v61, 4  ;;  %v6811_v18 = vpop.f32.mrf.mxu1  ;;  %v690_v59 = vsel %vm6589_vm2, %v685_v14, %v689_v28  ;;  %v708_v27 = vrot.slane %v706_v6, 4  ;;  %v711_v32 = vrot.slane %v709_v15, 5  ;;  %v4792_v63 = vld [vmem:[%s6572_s16 + $0x38] sm:$0xf] }
  0xc1   : > { %771 = vst [vmem:[#allocation2 + $0x68] sm:$0xf] %v690_v59  ;;  %v722_v31 = vrot.slane %v720_v24, 4  ;;  %v725_v35 = vrot.slane %v723_v25, 5  ;;  %v717_v20 = vrot.slane %v715_v22, 5  ;;  %v731_v46 = vrot.slane %v729_v26, 5 }
  0xc2   : > { %v704_v33 = vsel %vm6589_vm2, %v699_v23, %v703_v0  ;;  %2192 = vmatmul.bf16.vlgmr.msra.gmra.mxu3 %v6615_v44  ;;  %v1961_v41 = vpop.f32.mrf.mxu3  ;;  %2272 = vmatpush.bf16.msrb.mxu2 %v5315_v12  ;;  %v712_v42 = vor.u32 %v711_v32, %v708_v27  ;;  %v6107_v0 = vld [vmem:[#allocation5 + $0x1f4] sm:$0xf]  ;;  %v5192_v13 = vld [vmem:[#allocation5 + $0x1f8] sm:$0xf0]  ;;  %v6825_v14 = vld [vmem:[%s6572_s16 + $0x40] sm:$0xf] }
  0xc3   : > { %772 = vst [vmem:[#allocation2 + $0x8c] sm:$0xf] %v704_v33  ;;  %v726_v43 = vor.u32 %v725_v35, %v722_v31  ;;  %v5195_v15 = vor.u32 %v6107_v0, %v5192_v13  ;;  %v6135_v23 = vld [vmem:[#allocation5 + $0x2d4] sm:$0xf]  ;;  %v734_v24 = vshrl.u32 %v4792_v63, 16  ;;  %v737_v32 = vshll.u32 %v4792_v63, 16 }
  0xc4   : > { %v713_v50 = vrot.slane %v712_v42, 4  ;;  %v5304_v59 = vld [vmem:[#allocation5 + $0x2d8] sm:$0xf0]  ;;  %v6123_v27 = vld [vmem:[#allocation5 + $0x274] sm:$0xf]  ;;  %v748_v33 = vshrl.u32 %v6825_v14, 16 }
  0xc5   : > { %v4830_v28 = vld [vmem:[#allocation2 + $0x20] sm:$0xf]  ;;  %2163 = vmatmul.bf16.vlgmr.msra.gmra.mxu2 %v6597_v7  ;;  %v727_v56 = vrot.slane %v726_v43, 4  ;;  %2213 = vmatpush.bf16.msrb.mxu0 %v5195_v15  ;;  %v5307_v35 = vor.u32 %v6135_v23, %v5304_v59  ;;  %v5256_v42 = vld [vmem:[#allocation5 + $0x278] sm:$0xf0]  ;;  %v751_v59 = vshll.u32 %v6825_v14, 16 }
  0xc6   : > { %v6017_v53 = vld [vmem:[#allocation2 + $0x40] sm:$0xf0]  ;;  %v718_v44 = vsel %vm6589_vm2, %v713_v50, %v717_v20  ;;  %v5384_v43 = vld [vmem:[#allocation5 + $0x378] sm:$0xf0]  ;;  %v6153_v0 = vld [vmem:[#allocation5 + $0x364] sm:$0xf] }
  0xc7   : > { %v6820_v61 = vor.u32 %v6017_v53, %v4830_v28  ;;  %v1879_v12 = vpop.f32.mrf.mxu0  ;;  %v732_v6 = vsel %vm6589_vm2, %v727_v56, %v731_v46  ;;  %773 = vst [vmem:[#allocation2 + $0xb0] sm:$0xf] %v718_v44  ;;  %v6155_v20 = vld [vmem:[#allocation5 + $0x374] sm:$0xf]  ;;  %v5259_v28 = vor.u32 %v6123_v27, %v5256_v42  ;;  %v5184_v53 = vld [vmem:[#allocation5 + $0x1e8] sm:$0xf0]  ;;  %2273 = vmatpush.bf16.msrb.mxu2 %v5307_v35 }
  0xc8   : > { %v1932_v7 = vpop.f32.mrf.mxu2  ;;  %v1908_v22 = vpop.f32.mrf.mxu1  ;;  %774 = vst [vmem:[#allocation2 + $0xd4] sm:$0xf] %v732_v6  ;;  %v5387_v50 = vor.u32 %v6155_v20, %v5384_v43  ;;  %v5248_v44 = vld [vmem:[#allocation5 + $0x268] sm:$0xf0]  ;;  %v6103_v6 = vld [vmem:[#allocation5 + $0x1d4] sm:$0xf]  ;;  %v1906_v27 = vadd.f32 %v6811_v18, %v6809_v51 }
  0xc9   : > { %2105 = vmatmul.bf16.vlgmr.msra.gmra.mxu0 %v6820_v61  ;;  %2134 = vmatmul.bf16.vlgmr.msra.gmra.mxu1 %v6594_v1  ;;  %v1933_v25 = vadd.f32 %v1932_v7, %v6799_v11  ;;  %v6832_v26 = vadd.f32 %v1908_v22, %v1879_v12  ;;  %v6105_v1 = vld [vmem:[#allocation5 + $0x1e4] sm:$0xf]  ;;  %v5376_v63 = vld [vmem:[#allocation5 + $0x368] sm:$0xf0]  ;;  %v5176_v15 = vld [vmem:[#allocation5 + $0x1d8] sm:$0xf0] }
  0xca   : > { %v1963_v31 = vpop.f32.mrf.mxu3  ;;  %v6121_v11 = vld [vmem:[#allocation5 + $0x264] sm:$0xf]  ;;  %v5187_v56 = vor.u32 %v6105_v1, %v5184_v53  ;;  %2242 = vmatpush.bf16.msrb.mxu1 %v5259_v28  ;;  %2300 = vmatpush.bf16.msrb.mxu3 %v5387_v50  ;;  %v5379_v12 = vor.u32 %v6153_v0, %v5376_v63  ;;  %v5296_v22 = vld [vmem:[#allocation5 + $0x2c8] sm:$0xf0]  ;;  %v4866_v35 = vld [vmem:[#allocation2 + $0x68] sm:$0xf] }
  0xcb   : > { %v6835_v46 = vadd.f32 %v1961_v41, %v1933_v25  ;;  %v5251_v13 = vor.u32 %v6121_v11, %v5248_v44  ;;  %v6133_v7 = vld [vmem:[#allocation5 + $0x2c4] sm:$0xf]  ;;  %v5179_v41 = vor.u32 %v6103_v6, %v5176_v15  ;;  %v4793_v23 = vld [vmem:[%s6572_s16 + $0x3c] sm:$0x1]  ;;  %v736_v25 = vrot.slane %v734_v24, 4 }
  0xcc   : > { %2214 = vmatpush.bf16.msrb.mxu0 %v5187_v56  ;;  %v6026_v42 = vld [vmem:[#allocation2 + $0x88] sm:$0xf0]  ;;  %v5299_v43 = vor.u32 %v6133_v7, %v5296_v22  ;;  %v739_v28 = vrot.slane %v737_v32, 5  ;;  %v743_v50 = vshll.u32 %v4793_v23, 16  ;;  %v6119_v11 = vld [vmem:[#allocation5 + $0x254] sm:$0xf] }
  0xcd   : > { %v5240_v56 = vld [vmem:[#allocation5 + $0x258] sm:$0xf0]  ;;  %v6151_v44 = vld [vmem:[#allocation5 + $0x354] sm:$0xf]  ;;  %v6101_v32 = vld [vmem:[#allocation5 + $0x1c4] sm:$0xf] }
  0xce   : > { %2243 = vmatpush.bf16.msrb.mxu1 %v5251_v13  ;;  %2301 = vmatpush.bf16.msrb.mxu3 %v5379_v12  ;;  %v5243_v14 = vor.u32 %v6119_v11, %v5240_v56  ;;  %v5368_v0 = vld [vmem:[#allocation5 + $0x358] sm:$0xf0]  ;;  %v4795_v51 = vld [vmem:[%s6572_s16 + $0x44] sm:$0x1]  ;;  %v745_v18 = vrot.slane %v743_v50, 5  ;;  %v740_v7 = vor.u32 %v739_v28, %v736_v25  ;;  %v750_v22 = vrot.slane %v748_v33, 4 }
  0xcf   : > { %v6841_v20 = vpop.f32.mrf.mxu0  ;;  %v5371_v6 = vor.u32 %v6151_v44, %v5368_v0  ;;  %v5168_v15 = vld [vmem:[#allocation5 + $0x1c8] sm:$0xf0]  ;;  %v753_v23 = vrot.slane %v751_v59, 5  ;;  %2274 = vmatpush.bf16.msrb.mxu2 %v5299_v43  ;;  %v6117_v13 = vld [vmem:[#allocation5 + $0x244] sm:$0xf]  ;;  %v6849_v11 = vor.u32 %v6026_v42, %v4866_v35  ;;  %v757_v48 = vshll.u32 %v4795_v51, 16 }
  0xd0   : > { %v1934_v1 = vpop.f32.mrf.mxu2  ;;  %v6843_v53 = vpop.f32.mrf.mxu1  ;;  %2215 = vmatpush.bf16.msrb.mxu0 %v5179_v41  ;;  %v5232_v12 = vld [vmem:[#allocation5 + $0x248] sm:$0xf0]  ;;  %v741_v56 = vrot.slane %v740_v7, 4  ;;  %v6099_v43 = vld [vmem:[#allocation5 + $0x1b4] sm:$0xf]  ;;  %s6305_s16 = sshll.u32 %s6523_s22, 6 }
  0xd1   : > { %v1935_v24 = vadd.f32 %v1934_v1, %v1906_v27  ;;  %v5171_v27 = vor.u32 %v6101_v32, %v5168_v15  ;;  %v6149_v1 = vld [vmem:[#allocation5 + $0x344] sm:$0xf]  ;;  %v5360_v50 = vld [vmem:[#allocation5 + $0x348] sm:$0xf0]  ;;  %v5235_v41 = vor.u32 %v6117_v13, %v5232_v12  ;;  %v759_v59 = vrot.slane %v757_v48, 5  ;;  %s4638_s25 = scalar_lea.hbm %s7827_s5, %s6305_s16  ;;  %s4627_s22 = scalar_lea.sflag [#allocation7], %s232_s13 }
  0xd2   : > { %2197 = vmatmul.bf16.gmra.mxu3 %v6641_v34  ;;  %v754_v34 = vor.u32 %v753_v23, %v750_v22  ;;  %2244 = vmatpush.bf16.msrb.mxu1 %v5243_v14  ;;  %v5363_v33 = vor.u32 %v6149_v1, %v5360_v50  ;;  %v5160_v28 = vld [vmem:[#allocation5 + $0x1b8] sm:$0xf0]  ;;  %v6131_v44 = vld [vmem:[#allocation5 + $0x2b4] sm:$0xf]  ;;  %v6097_v13 = vld [vmem:[#allocation5 + $0x1a4] sm:$0xf] }
  0xd3   : > { %v1966_v63 = vpop.f32.mrf.mxu3  ;;  %v6847_v47 = vadd.f32 %v1963_v31, %v1935_v24  ;;  %2302 = vmatpush.bf16.msrb.mxu3 %v5371_v6  ;;  %v746_v31 = vsel %vm6589_vm2, %v741_v56, %v745_v18  ;;  %v5163_v42 = vor.u32 %v6099_v43, %v5160_v28  ;;  %v5288_v24 = vld [vmem:[#allocation5 + $0x2b8] sm:$0xf0]  ;;  %v6115_v6 = vld [vmem:[#allocation5 + $0x234] sm:$0xf]  ;;  %v5152_v12 = vld [vmem:[#allocation5 + $0x1a8] sm:$0xf0] }
  0xd4   : > { %2216 = vmatpush.bf16.msrb.mxu0 %v5171_v27  ;;  %v755_v25 = vrot.slane %v754_v34, 4  ;;  %775 = vst [vmem:[#allocation2 + $0xf8] sm:$0xf] %v746_v31  ;;  %v5291_v51 = vor.u32 %v6131_v44, %v5288_v24  ;;  %v5224_v32 = vld [vmem:[#allocation5 + $0x238] sm:$0xf0]  ;;  %v5155_v56 = vor.u32 %v6097_v13, %v5152_v12  ;;  %s4641_s30 = sshll.u32 %s4638_s25, 4  ;;  %s4642_s30 = int_to_ptr.hbm [resolvable:$true] %s4641_s30 }
  0xd5   : > { %2168 = vmatmul.bf16.gmra.mxu2 %v6625_v60  ;;  %v6147_v18 = vld [vmem:[#allocation5 + $0x334] sm:$0xf]  ;;  %v5352_v7 = vld [vmem:[#allocation5 + $0x338] sm:$0xf0]  ;;  %v5227_v23 = vor.u32 %v6115_v6, %v5224_v32  ;;  %v6129_v1 = vld [vmem:[#allocation5 + $0x2a4] sm:$0xf] }
  0xd6   : > { %v760_v0 = vsel %vm6589_vm2, %v755_v25, %v759_v59  ;;  %2245 = vmatpush.bf16.msrb.mxu1 %v5235_v41  ;;  %v5355_v27 = vor.u32 %v6147_v18, %v5352_v7  ;;  %2275 = vmatpush.bf16.msrb.mxu2 %v5291_v51  ;;  %v6113_v34 = vld [vmem:[#allocation5 + $0x224] sm:$0xf]  ;;  %v5344_v59 = vld [vmem:[#allocation5 + $0x328] sm:$0xf0]  ;;  %v6095_v43 = vld [vmem:[#allocation5 + $0x194] sm:$0xf] }
  0xd7   : > { %v1884_v35 = vpop.f32.mrf.mxu0  ;;  %776 = vst [vmem:[#allocation2 + $0x11c] sm:$0xf] %v760_v0  ;;  %2303 = vmatpush.bf16.msrb.mxu3 %v5363_v33  ;;  %v6145_v25 = vld [vmem:[#allocation5 + $0x324] sm:$0xf]  ;;  %v5144_v28 = vld [vmem:[#allocation5 + $0x198] sm:$0xf0] }
  0xd8   : > { %v1937_v60 = vpop.f32.mrf.mxu2  ;;  %v1913_v14 = vpop.f32.mrf.mxu1  ;;  %2217 = vmatpush.bf16.msrb.mxu0 %v5163_v42  ;;  %v6127_v41 = vld [vmem:[#allocation5 + $0x294] sm:$0xf]  ;;  %v5272_v33 = vld [vmem:[#allocation5 + $0x298] sm:$0xf0]  ;;  %v5347_v42 = vor.u32 %v6145_v25, %v5344_v59  ;;  %v5147_v24 = vor.u32 %v6095_v43, %v5144_v28  ;;  %v5136_v13 = vld [vmem:[#allocation5 + $0x188] sm:$0xf0] }
  0xd9   : > { %2110 = vmatmul.bf16.gmra.mxu0 %v6849_v11  ;;  %2139 = vmatmul.bf16.gmra.mxu1 %v6621_v54  ;;  %v1938_v48 = vadd.f32 %v1937_v60, %v6832_v26  ;;  %v6859_v15 = vadd.f32 %v1913_v14, %v1884_v35  ;;  %v5280_v54 = vld [vmem:[#allocation5 + $0x2a8] sm:$0xf0]  ;;  %v4902_v14 = vld [vmem:[#allocation2 + $0xb0] sm:$0xf]  ;;  %v5275_v51 = vor.u32 %v6127_v41, %v5272_v33  ;;  %v6111_v6 = vld [vmem:[#allocation5 + $0x214] sm:$0xf] }
  0xda   : > { %v5216_v26 = vld [vmem:[#allocation5 + $0x228] sm:$0xf0]  ;;  %v5283_v31 = vor.u32 %v6129_v1, %v5280_v54  ;;  %2246 = vmatpush.bf16.msrb.mxu1 %v5227_v23  ;;  %v5208_v32 = vld [vmem:[#allocation5 + $0x218] sm:$0xf0]  ;;  %v6143_v7 = vld [vmem:[#allocation5 + $0x314] sm:$0xf] }
  0xdb   : > { %v1968_v22 = vpop.f32.mrf.mxu3  ;;  %v6861_v50 = vadd.f32 %v1966_v63, %v1938_v48  ;;  %2304 = vmatpush.bf16.msrb.mxu3 %v5355_v27  ;;  %v5219_v35 = vor.u32 %v6113_v34, %v5216_v26  ;;  %v1911_v63 = vadd.f32 %v6843_v53, %v6841_v20  ;;  %v6035_v48 = vld [vmem:[#allocation2 + $0xd0] sm:$0xf0]  ;;  %v5336_v23 = vld [vmem:[#allocation5 + $0x318] sm:$0xf0]  ;;  %v5211_v20 = vor.u32 %v6111_v6, %v5208_v32  ;;  %v5264_v34 = vld [vmem:[#allocation5 + $0x288] sm:$0xf0] }
  0xdc   : > { %2218 = vmatpush.bf16.msrb.mxu0 %v5155_v56  ;;  %2276 = vmatpush.bf16.msrb.mxu2 %v5283_v31  ;;  %v6093_v53 = vld [vmem:[#allocation5 + $0x184] sm:$0xf]  ;;  %v5339_v56 = vor.u32 %v6143_v7, %v5336_v23  ;;  %v6868_v26 = vor.u32 %v6035_v48, %v4902_v14  ;;  %v5200_v59 = vld [vmem:[#allocation5 + $0x208] sm:$0xf0]  ;;  %v4938_v32 = vld [vmem:[#allocation2 + $0xf8] sm:$0xf] }
  0xdd   : > { %v6125_v12 = vld [vmem:[#allocation5 + $0x284] sm:$0xf]  ;;  %v5139_v54 = vor.u32 %v6093_v53, %v5136_v13  ;;  %v5328_v43 = vld [vmem:[#allocation5 + $0x308] sm:$0xf0]  ;;  %vm2578_vm12 = vsmask.f32 256 }
  0xde   : > { %2247 = vmatpush.bf16.msrb.mxu1 %v5219_v35  ;;  %v5267_v31 = vor.u32 %v6125_v12, %v5264_v34  ;;  %v6109_v25 = vld [vmem:[#allocation5 + $0x204] sm:$0xf]  ;;  %vm2610_vm13 = vsmask.f32 7938  ;;  %vm7152_vm14 = vmand %vm2577_vm11, %vm2578_vm12  ;;  %s6412_s6 = sshra.s32 %s4642_s30, 4  ;;  %s6413_s6 = int_to_ptr.hbm [resolvable:$true] %s6412_s6 }
  0xdf   : > { %v1886_v44 = vpop.f32.mrf.mxu0  ;;  %2305 = vmatpush.bf16.msrb.mxu3 %v5347_v42  ;;  %v5203_v28 = vor.u32 %v6109_v25, %v5200_v59  ;;  %v6195_v13 = vld [vmem:[%s7824_s2 + $0x30] sm:$0xff]  ;;  %v5448_v25 = vld [vmem:[#allocation5 + $0x3f8] sm:$0xf0]  ;;  %vm7157_vm15 = vmand %vm2577_vm11, %vm2610_vm13  ;;  %s6414_s7 = scalar_lea.hbm %s6413_s6, 64  ;;  %p6419_p3 = scmp.lt.s32.totalorder %s6413_s6, %s7827_s5 }
  0xe0   : > { %v1939_v60 = vpop.f32.mrf.mxu2  ;;  %v1915_v0 = vpop.f32.mrf.mxu1  ;;  %2219 = vmatpush.bf16.msrb.mxu0 %v5147_v24  ;;  %2277 = vmatpush.bf16.msrb.mxu2 %v5275_v51  ;;  %p6415_p0 = scmp.ne.s32.totalorder %s6413_s6, %s6414_s7  ;;  %p6420_p4 = scmp.lt.s32.totalorder %s6418_s10, %s6414_s7 }
  0xe1   : > { %v1940_v18 = vadd.f32 %v1939_v60, %v1911_v63  ;;  %v1916_v60 = vadd.f32 %v1915_v0, %v1886_v44  ;;  %v6196_v44 = vld [vmem:[%s7824_s2 + $0x38] sm:$0xff] }
  0xe2   : > { %2202 = vmatmul.bf16.gmra.mxu3 %v6666_v40  ;;  %v6141_v40 = vld [vmem:[#allocation5 + $0x304] sm:$0xf]  ;;  %2248 = vmatpush.bf16.msrb.mxu1 %v5211_v20  ;;  %p6416_p1 = pnand %p6415_p0, %p6540_p5  ;;  %p6421_p7 = por %p6420_p4, %p6419_p3 }
  0xe3   : > { %v1971_v27 = vpop.f32.mrf.mxu3  ;;  %v6866_v1 = vadd.f32 %v1968_v22, %v1940_v18  ;;  %2306 = vmatpush.bf16.msrb.mxu3 %v5339_v56  ;;  %v5331_v22 = vor.u32 %v6141_v40, %v5328_v43  ;;  %v6044_v18 = vld [vmem:[#allocation2 + $0x118] sm:$0xf0]  ;;  %v6194_v43 = vld [vmem:[%s7824_s2 + $0x28] sm:$0xff] }
  0xe4   : > { %2220 = vmatpush.bf16.msrb.mxu0 %v5139_v54  ;;  %2278 = vmatpush.bf16.msrb.mxu2 %v5267_v31  ;;  %v6171_v31 = vld [vmem:[#allocation5 + $0x3f4] sm:$0xf]  ;;  %p6417_p2 = pneg %p6416_p1 }
  0xe5   : > { %2173 = vmatmul.bf16.gmra.mxu2 %v6651_v62  ;;  %v5451_v59 = vor.u32 %v6171_v31, %v5448_v25  ;;  %v6163_v31 = vld [vmem:[#allocation5 + $0x3b4] sm:$0xf]  ;;  %v5416_v25 = vld [vmem:[#allocation5 + $0x3b8] sm:$0xf0] }
  0xe6   : > { %2249 = vmatpush.bf16.msrb.mxu1 %v5203_v28  ;;  %v5512_v28 = vld [vmem:[#allocation5 + $0x478] sm:$0xf0]  ;;  %p6422_p8 = pnand %p6421_p7, %p6417_p2 }
  0xe7   : > { %v1889_v41 = vpop.f32.mrf.mxu0  ;;  %2307 = vmatpush.bf16.msrb.mxu3 %v5331_v22 }
  0xe8   : > { %v1942_v33 = vpop.f32.mrf.mxu2  ;;  %v1918_v35 = vpop.f32.mrf.mxu1  ;;  %2519 = vmatpush.bf16.msra.mxu2 %v6196_v44  ;;  %2329 = vmatpush.bf16.msra.mxu0 %v5451_v59  ;;  %v5419_v59 = vor.u32 %v6163_v31, %v5416_v25 }
  0xe9   : > { %2115 = vmatmul.bf16.gmra.mxu0 %v6868_v26  ;;  %2144 = vmatmul.bf16.gmra.mxu1 %v6649_v55  ;;  %v1943_v63 = vadd.f32 %v1942_v33, %v6859_v15  ;;  %v1919_v42 = vadd.f32 %v1918_v35, %v1889_v41  ;;  %v6879_v55 = vor.u32 %v6044_v18, %v4938_v32  ;;  %v6169_v33 = vld [vmem:[#allocation5 + $0x3e4] sm:$0xf]  ;;  %v5440_v35 = vld [vmem:[#allocation5 + $0x3e8] sm:$0xf0]  ;;  %v6183_v18 = vld [vmem:[#allocation5 + $0x454] sm:$0xf] }
  0xeb   : > { %v1973_v24 = vpop.f32.mrf.mxu3  ;;  %v6874_v62 = vadd.f32 %v1971_v27, %v1943_v63  ;;  %v6185_v63 = vld [vmem:[#allocation5 + $0x464] sm:$0xf] }
  0xec   : > { %2520 = vmatpush.bf16.msra.mxu2 %v6195_v13 }
  0xef   : > { %v1891_v14 = vpop.f32.mrf.mxu0 }
  0xf0   : > { %v1944_v51 = vpop.f32.mrf.mxu2  ;;  %v1920_v53 = vpop.f32.mrf.mxu1  ;;  %2521 = vmatpush.bf16.msra.mxu2 %v6194_v43  ;;  %v6192_v43 = vld [vmem:[%s7824_s2 + $0x18] sm:$0xff] }
  0xf1   : > { %v1945_v6 = vadd.f32 %v1944_v51, %v1916_v60  ;;  %v5432_v51 = vld [vmem:[#allocation5 + $0x3d8] sm:$0xf0] }
  0xf2   : > { %2207 = vmatmul.bf16.gmra.mxu3 %v6687_v3 }
  0xf3   : > { %v1976_v48 = vpop.f32.mrf.mxu3  ;;  %v6877_v7 = vadd.f32 %v1973_v24, %v1945_v6 }
  0xf5   : > { %2178 = vmatmul.bf16.gmra.mxu2 %v6673_v10  ;;  %v1921_v10 = vadd.f32 %v1920_v53, %v1891_v14  ;;  %v6181_v53 = vld [vmem:[#allocation5 + $0x444] sm:$0xf] }
  0xf8   : > { %v1947_v15 = vpop.f32.mrf.mxu2 }
  0xf9   : > { %2120 = vmatmul.bf16.gmra.mxu0 %v6879_v55  ;;  %2149 = vmatmul.bf16.gmra.mxu1 %v6671_v5  ;;  %v1948_v0 = vadd.f32 %v1947_v15, %v1919_v42  ;;  %v1990_v23 = vpop.f32.mrf.mxu0  ;;  %v5504_v42 = vld [vmem:[#allocation5 + $0x468] sm:$0xf0] }
  0xfa   : > { %v6888_v3 = vadd.f32 %v1990_v23, %v6835_v46  ;;  %v5507_v60 = vor.u32 %v6185_v63, %v5504_v42  ;;  %v5424_v23 = vld [vmem:[#allocation5 + $0x3c8] sm:$0xf0] }
  0xfb   : > { %v6890_v27 = vadd.f32 %v1976_v48, %v1948_v0  ;;  %v1978_v20 = vpop.f32.mrf.mxu3  ;;  %v5496_v48 = vld [vmem:[#allocation5 + $0x458] sm:$0xf0]  ;;  %v6165_v0 = vld [vmem:[#allocation5 + $0x3c4] sm:$0xf]  ;;  %v5472_v63 = vld [vmem:[#allocation5 + $0x428] sm:$0xf0] }
  0xfc   : > { %v5499_v44 = vor.u32 %v6183_v18, %v5496_v48  ;;  %v6175_v18 = vld [vmem:[#allocation5 + $0x414] sm:$0xf]  ;;  %v5464_v48 = vld [vmem:[#allocation5 + $0x418] sm:$0xf0] }
 0x100   : > { %v1949_v12 = vpop.f32.mrf.mxu2 }
 0x101   : > { %v1950_v56 = vadd.f32 %v1949_v12, %v1921_v10  ;;  %v6895_v54 = vpop.f32.mrf.mxu0  ;;  %v5488_v10 = vld [vmem:[#allocation5 + $0x448] sm:$0xf0] }
 0x102   : > { %2308 = vmatmul.bf16.vlgmr.msrb.gmra.mxu3 %v6711_v9  ;;  %v6187_v9 = vld [vmem:[#allocation5 + $0x474] sm:$0xf]  ;;  %v5491_v12 = vor.u32 %v6181_v53, %v5488_v10  ;;  %v6173_v10 = vld [vmem:[#allocation5 + $0x404] sm:$0xf] }
 0x103   : > { %v6898_v5 = vadd.f32 %v1978_v20, %v1950_v56  ;;  %v5515_v41 = vor.u32 %v6187_v9, %v5512_v28  ;;  %v5427_v20 = vor.u32 %v6165_v0, %v5424_v23  ;;  %v6179_v9 = vld [vmem:[#allocation5 + $0x434] sm:$0xf]  ;;  %v5467_v0 = vor.u32 %v6175_v18, %v5464_v48  ;;  %v6157_v23 = vld [vmem:[#allocation5 + $0x384] sm:$0xf] }
 0x105   : > { %2279 = vmatmul.bf16.vlgmr.msrb.gmra.mxu2 %v6720_v37  ;;  %v6901_v46 = vpop.f32.mrf.mxu3  ;;  %2358 = vmatpush.bf16.msra.mxu1 %v5515_v41 }
 0x106   : > { %v6903_v34 = vpop.f32.mrf.mxu1 }
 0x108   : > { %v6906_v40 = vpop.f32.mrf.mxu2 }
 0x109   : > { %2221 = vmatmul.bf16.vlgmr.msrb.gmra.mxu0 %v6611_v19  ;;  %2250 = vmatmul.bf16.vlgmr.msrb.gmra.mxu1 %v6697_v38  ;;  %v1995_v37 = vpop.f32.mrf.mxu0  ;;  %v5443_v19 = vor.u32 %v6169_v33, %v5440_v35  ;;  %v6167_v38 = vld [vmem:[#allocation5 + $0x3d4] sm:$0xf]  ;;  %v6161_v33 = vld [vmem:[#allocation5 + $0x3a4] sm:$0xf]  ;;  %v5408_v35 = vld [vmem:[#allocation5 + $0x3a8] sm:$0xf0] }
 0x10a   : > { %v6913_v22 = vadd.f32 %v1995_v37, %v6861_v50  ;;  %2359 = vmatpush.bf16.msra.mxu1 %v5507_v60  ;;  %v5435_v6 = vor.u32 %v6167_v38, %v5432_v51  ;;  %v6193_v50 = vld [vmem:[%s7824_s2 + $0x20] sm:$0xff]  ;;  %v5400_v51 = vld [vmem:[#allocation5 + $0x398] sm:$0xf0] }
 0x10b   : > { %2330 = vmatpush.bf16.msra.mxu0 %v5443_v19  ;;  %2522 = vmatpush.bf16.msra.mxu2 %v6193_v50  ;;  %v6177_v19 = vld [vmem:[#allocation5 + $0x424] sm:$0xf] }
 0x10c   : > { %v5475_v60 = vor.u32 %v6177_v19, %v5472_v63 }
 0x10d   : > { %v6915_v24 = vpop.f32.mrf.mxu3 }
 0x10e   : > { %v6917_v14 = vpop.f32.mrf.mxu1  ;;  %2360 = vmatpush.bf16.msra.mxu1 %v5499_v44 }
 0x10f   : > { %2331 = vmatpush.bf16.msra.mxu0 %v5435_v6  ;;  %2523 = vmatpush.bf16.msra.mxu2 %v6192_v43 }
 0x110   : > { %v6922_v32 = vpop.f32.mrf.mxu2 }
 0x111   : > { %v6924_v15 = vpop.f32.mrf.mxu0 }
 0x112   : > { %2313 = vmatmul.bf16.gmra.mxu3 %v6740_v29  ;;  %2361 = vmatpush.bf16.msra.mxu1 %v5491_v12  ;;  %v5456_v12 = vld [vmem:[#allocation5 + $0x408] sm:$0xf0] }
 0x113   : > { %2332 = vmatpush.bf16.msra.mxu0 %v5427_v20  ;;  %v5392_v20 = vld [vmem:[#allocation5 + $0x388] sm:$0xf0]  ;;  %v5459_v25 = vor.u32 %v6173_v10, %v5456_v12 }
 0x114   : > { %v5395_v53 = vor.u32 %v6157_v23, %v5392_v20 }
 0x115   : > { %2284 = vmatmul.bf16.gmra.mxu2 %v6746_v52  ;;  %v6928_v13 = vpop.f32.mrf.mxu3  ;;  %v5480_v52 = vld [vmem:[#allocation5 + $0x438] sm:$0xf0] }
 0x116   : > { %v6930_v56 = vpop.f32.mrf.mxu1  ;;  %v5483_v37 = vor.u32 %v6179_v9, %v5480_v52 }
 0x117   : > { %2333 = vmatpush.bf16.msra.mxu0 %v5419_v59 }
 0x118   : > { %v6933_v29 = vpop.f32.mrf.mxu2  ;;  %2362 = vmatpush.bf16.msra.mxu1 %v5483_v37 }
 0x119   : > { %2226 = vmatmul.bf16.gmra.mxu0 %v6637_v16  ;;  %2255 = vmatmul.bf16.gmra.mxu1 %v6722_v45  ;;  %v2000_v28 = vpop.f32.mrf.mxu0  ;;  %v5411_v16 = vor.u32 %v6161_v33, %v5408_v35  ;;  %v6159_v45 = vld [vmem:[#allocation5 + $0x394] sm:$0xf] }
 0x11a   : > { %v6940_v41 = vadd.f32 %v2000_v28, %v6874_v62  ;;  %v5403_v6 = vor.u32 %v6159_v45, %v5400_v51  ;;  %v6191_v62 = vld [vmem:[%s7824_s2 + $0x10] sm:$0xff]  ;;  %v6190_v28 = vld [vmem:[%s7824_s2 + $0x8] sm:$0xff] }
 0x11b   : > { %2334 = vmatpush.bf16.msra.mxu0 %v5411_v16  ;;  %2524 = vmatpush.bf16.msra.mxu2 %v6191_v62  ;;  %v2020_v16 = vadd.f32 %v6903_v34, %v6888_v3  ;;  %v7006_v3 = vld [vmem:[%s7826_s4] ss:$0 sm:$0xff] }
 0x11c   : > { %2363 = vmatpush.bf16.msra.mxu1 %v5475_v60 }
 0x11d   : > { %v6942_v42 = vpop.f32.mrf.mxu3 }
 0x11e   : > { %v6944_v38 = vpop.f32.mrf.mxu1 }
 0x11f   : > { %2335 = vmatpush.bf16.msra.mxu0 %v5403_v6  ;;  %2525 = vmatpush.bf16.msra.mxu2 %v6190_v28 }
 0x120   : > { %v6949_v50 = vpop.f32.mrf.mxu2  ;;  %2364 = vmatpush.bf16.msra.mxu1 %v5467_v0 }
 0x121   : > { %v6951_v44 = vpop.f32.mrf.mxu0 }
 0x122   : > { %2318 = vmatmul.bf16.gmra.mxu3 %v6762_v2 }
 0x123   : > { %2336 = vmatpush.bf16.msra.mxu0 %v5395_v53 }
 0x124   : > { %2365 = vmatpush.bf16.msra.mxu1 %v5459_v25 }
 0x125   : > { %2289 = vmatmul.bf16.gmra.mxu2 %v6770_v30  ;;  %v6955_v31 = vpop.f32.mrf.mxu3 }
 0x126   : > { %v6957_v59 = vpop.f32.mrf.mxu1 }
 0x128   : > { %v6960_v43 = vpop.f32.mrf.mxu2 }
 0x129   : > { %2231 = vmatmul.bf16.gmra.mxu0 %v6655_v17  ;;  %2260 = vmatmul.bf16.gmra.mxu1 %v6748_v8  ;;  %v2005_v2 = vpop.f32.mrf.mxu0  ;;  %v6189_v17 = vld [vmem:[%s7824_s2] sm:$0xff] }
 0x12a   : > { %v6964_v9 = vadd.f32 %v2005_v2, %v6890_v27  ;;  %2526 = vmatpush.bf16.msra.mxu2 %v6189_v17 }
 0x12d   : > { %v6966_v52 = vpop.f32.mrf.mxu3 }
 0x12e   : > { %v6968_v30 = vpop.f32.mrf.mxu1 }
 0x130   : > { %v6973_v37 = vpop.f32.mrf.mxu2 }
 0x131   : > { %v6988_v35 = vpop.f32.mrf.mxu0 }
 0x132   : > { %2323 = vmatmul.bf16.gmra.mxu3 %v6784_v58 }
 0x135   : > { %2294 = vmatmul.bf16.gmra.mxu2 %v6792_v36  ;;  %v6980_v8 = vpop.f32.mrf.mxu3  ;;  %v2049_v36 = vadd.f32 %v6906_v40, %v2020_v16 }
 0x136   : > { %v6982_v27 = vpop.f32.mrf.mxu1 }
 0x137   : > { %v2078_v60 = vadd.f32 %v6901_v46, %v2049_v36  ;;  %v7015_v46 = vld [vmem:[%s7826_s4 + $0x1] ss:$0 sm:$0xff] }
 0x138   : > { %v6985_v33 = vpop.f32.mrf.mxu2 }
 0x139   : > { %2236 = vmatmul.bf16.gmra.mxu0 %v6681_v39  ;;  %2265 = vmatmul.bf16.gmra.mxu1 %v6774_v49  ;;  %v1993_v39 = vadd.f32 %v6895_v54, %v6847_v47 }
 0x13b   : > { %v2022_v51 = vadd.f32 %v6917_v14, %v1993_v39 }
 0x13d   : > { %v6990_v58 = vpop.f32.mrf.mxu3  ;;  %v2051_v40 = vadd.f32 %v6922_v32, %v2022_v51 }
 0x13e   : > { %v6994_v19 = vpop.f32.mrf.mxu1 }
 0x13f   : > { %v2080_v18 = vadd.f32 %v6915_v24, %v2051_v40  ;;  %v1998_v24 = vadd.f32 %v6924_v15, %v6866_v1 }
 0x140   : > { %v6997_v63 = vpop.f32.mrf.mxu2 }
 0x141   : > { %v2027_v17 = vadd.f32 %v6944_v38, %v1998_v24 }
 0x145   : > { %v2193_v49 = vpop.f32.mrf.mxu3 }
 0x146   : > { %v2106_v45 = vpop.f32.mrf.mxu0  ;;  %v2135_v34 = vpop.f32.mrf.mxu1 }
 0x147   : > { %v2107_v6 = vadd.f32 %v2106_v45, %v2078_v60  ;;  %v2056_v45 = vadd.f32 %v6949_v50, %v2027_v17 }
 0x148   : > { %v2164_v62 = vpop.f32.mrf.mxu2 }
 0x149   : > { %2337 = vmatmul.bf16.vlgmr.msra.gmra.mxu0 %v6708_v4  ;;  %2366 = vmatmul.bf16.vlgmr.msra.gmra.mxu1 %v6820_v61  ;;  %v2165_v47 = vadd.f32 %v2164_v62, %v2135_v34  ;;  %v2389_v54 = vmul.f32 %v7006_v3, %v2107_v6  ;;  %v2025_v4 = vadd.f32 %v6930_v56, %v6913_v22 }
 0x14a   : > { %v2085_v38 = vadd.f32 %v6942_v42, %v2056_v45  ;;  %v2030_v34 = vadd.f32 %v6957_v59, %v6940_v41  ;;  %v2003_v42 = vadd.f32 %v6951_v44, %v6877_v7  ;;  %v7836_v7 = vld [vmem:[#allocation11_spill] sm:$0xff] }
 0x14b   : > { %v7017_v14 = vadd.f32 %v2193_v49, %v2165_v47  ;;  %v2399_v61 = vadd.f32 %v7015_v46, %v2389_v54  ;;  %v2054_v20 = vadd.f32 %v6933_v29, %v2025_v4 }
 0x14d   : > { %v7020_v0 = vpop.f32.mrf.mxu3  ;;  %v2415_v12 = vmul.f32 0.01, %v2399_v61  ;;  %vm2407_vm3 = vcmp.gt.f32.partialorder %v2399_v61, 0.0  ;;  %v2083_v22 = vadd.f32 %v6928_v13, %v2054_v20 }
 0x14e   : > { %v2108_v48 = vpop.f32.mrf.mxu0  ;;  %v7025_v23 = vpop.f32.mrf.mxu1 }
 0x14f   : > { %v2109_v32 = vadd.f32 %v2108_v48, %v2080_v18  ;;  %v2423_v29 = vsel %vm2407_vm3, %v2399_v61, %v2415_v12  ;;  %v2032_v61 = vadd.f32 %v6968_v30, %v2003_v42  ;;  %vm7251_vm3 = vmor %vm2973_vm0, %vm2974_vm1 }
 0x150   : > { %v7029_v10 = vpop.f32.mrf.mxu2 }
 0x151   : > { %v2390_v53 = vmul.f32 %v7006_v3, %v2109_v32  ;;  %v2061_v12 = vadd.f32 %v6973_v37, %v2032_v61 }
 0x153   : > { %v2400_v25 = vadd.f32 %v7015_v46, %v2390_v53  ;;  %v2090_v30 = vadd.f32 %v6966_v52, %v2061_v12  ;;  %v2008_v52 = vadd.f32 %v6988_v35, %v6898_v5  ;;  %v7837_v5 = vld [vmem:[#allocation12_spill] sm:$0xff] }
 0x155   : > { %vm2408_vm4 = vcmp.gt.f32.partialorder %v2400_v25, 0.0  ;;  %v2416_v56 = vmul.f32 0.01, %v2400_v25  ;;  %v2198_v28 = vpop.f32.mrf.mxu3 }
 0x156   : > { %v2111_v2 = vpop.f32.mrf.mxu0  ;;  %v2140_v39 = vpop.f32.mrf.mxu1 }
 0x157   : > { %v2424_v16 = vsel %vm2408_vm4, %v2400_v25, %v2416_v56  ;;  %v2112_v36 = vadd.f32 %v2111_v2, %v2083_v22 }
 0x158   : > { %v2451_v60 = vpack.c.bf16 %v2424_v16, %v2423_v29  ;;  %v2169_v1 = vpop.f32.mrf.mxu2 }
 0x159   : > { %2342 = vmatmul.bf16.gmra.mxu0 %v6735_v21  ;;  %2371 = vmatmul.bf16.gmra.mxu1 %v6849_v11  ;;  %v2170_v15 = vadd.f32 %v2169_v1, %v2140_v39  ;;  %v2391_v13 = vmul.f32 %v7006_v3, %v2112_v36  ;;  %v2059_v11 = vadd.f32 %v6960_v43, %v2030_v34 }
 0x15a   : > { %2527 = vmatmul.bf16.vlgmr.msra.gmra.mxu2 %v2451_v60 }
 0x15b   : > { %v7040_v49 = vadd.f32 %v2198_v28, %v2170_v15  ;;  %v2401_v50 = vadd.f32 %v7015_v46, %v2391_v13  ;;  %v2088_v41 = vadd.f32 %v6955_v31, %v2059_v11  ;;  %v2035_v28 = vadd.f32 %v6982_v27, %v6964_v9 }
 0x15c   : > { %v2037_v15 = vadd.f32 %v6994_v19, %v2008_v52  ;;  %v6240_v52 = vld [vmem:[%s7825_s3 + $0x38] sm:$0xff] }
 0x15d   : > { %v7043_v6 = vpop.f32.mrf.mxu3  ;;  %v2417_v54 = vmul.f32 0.01, %v2401_v50  ;;  %vm2409_vm5 = vcmp.gt.f32.partialorder %v2401_v50, 0.0  ;;  %4305 = vmatpush.bf16.msra.mxu3 %v6240_v52 }
 0x15e   : > { %v2113_v51 = vpop.f32.mrf.mxu0  ;;  %v7048_v40 = vpop.f32.mrf.mxu1 }
 0x15f   : > { %v2114_v21 = vadd.f32 %v2113_v51, %v2085_v38  ;;  %v2425_v20 = vsel %vm2409_vm5, %v2401_v50, %v2417_v54  ;;  %v2066_v50 = vadd.f32 %v6997_v63, %v2037_v15  ;;  %vm2731_vm5 = vcmask 1043456  }
 0x160   : > { %v7052_v47 = vpop.f32.mrf.mxu2 }
 0x161   : > { %v2392_v62 = vmul.f32 %v7006_v3, %v2114_v21 }
 0x163   : > { %v2402_v18 = vadd.f32 %v7015_v46, %v2392_v62  ;;  %v2095_v62 = vadd.f32 %v6990_v58, %v2066_v50 }
 0x165   : > { %vm2410_vm6 = vcmp.gt.f32.partialorder %v2402_v18, 0.0  ;;  %v2418_v59 = vmul.f32 0.01, %v2402_v18  ;;  %v2203_v4 = vpop.f32.mrf.mxu3 }
 0x166   : > { %v2116_v48 = vpop.f32.mrf.mxu0  ;;  %v2145_v32 = vpop.f32.mrf.mxu1 }
 0x167   : > { %v2117_v43 = vadd.f32 %v2116_v48, %v2088_v41  ;;  %v2426_v53 = vsel %vm2410_vm6, %v2402_v18, %v2418_v59  ;;  %vm7298_vm6 = vmand %vm2731_vm5, %vm2610_vm13 }
 0x168   : > { %v2452_v24 = vpack.c.bf16 %v2426_v53, %v2425_v20  ;;  %v2174_v44 = vpop.f32.mrf.mxu2 }
 0x169   : > { %2347 = vmatmul.bf16.gmra.mxu0 %v7836_v7  ;;  %2376 = vmatmul.bf16.gmra.mxu1 %v6868_v26  ;;  %v2175_v31 = vadd.f32 %v2174_v44, %v2145_v32  ;;  %v2393_v25 = vmul.f32 %v7006_v3, %v2117_v43  ;;  %v2064_v26 = vadd.f32 %v6985_v33, %v2035_v28 }
 0x16a   : > { %2532 = vmatmul.bf16.gmra.mxu2 %v2452_v24 }
 0x16b   : > { %v7063_v22 = vadd.f32 %v2203_v4, %v2175_v31  ;;  %v2403_v37 = vadd.f32 %v7015_v46, %v2393_v25  ;;  %v2093_v9 = vadd.f32 %v6980_v8, %v2064_v26 }
 0x16d   : > { %v7066_v2 = vpop.f32.mrf.mxu3  ;;  %v2419_v39 = vmul.f32 0.01, %v2403_v37  ;;  %vm2411_vm7 = vcmp.gt.f32.partialorder %v2403_v37, 0.0 }
 0x16e   : > { %v2118_v56 = vpop.f32.mrf.mxu0  ;;  %v7071_v29 = vpop.f32.mrf.mxu1 }
 0x16f   : > { %v2119_v17 = vadd.f32 %v2118_v56, %v2090_v30  ;;  %v2427_v38 = vsel %vm2411_vm7, %v2403_v37, %v2419_v39 }
 0x170   : > { %v7075_v36 = vpop.f32.mrf.mxu2 }
 0x171   : > { %v2394_v16 = vmul.f32 %v7006_v3, %v2119_v17 }
 0x173   : > { %v2404_v60 = vadd.f32 %v7015_v46, %v2394_v16 }
 0x175   : > { %vm2412_vm8 = vcmp.gt.f32.partialorder %v2404_v60, 0.0  ;;  %v2420_v27 = vmul.f32 0.01, %v2404_v60  ;;  %v2208_v1 = vpop.f32.mrf.mxu3 }
 0x176   : > { %v2121_v45 = vpop.f32.mrf.mxu0  ;;  %v2150_v13 = vpop.f32.mrf.mxu1 }
 0x177   : > { %v2122_v33 = vadd.f32 %v2121_v45, %v2093_v9  ;;  %v2428_v51 = vsel %vm2412_vm8, %v2404_v60, %v2420_v27 }
 0x178   : > { %v2453_v34 = vpack.c.bf16 %v2428_v51, %v2427_v38  ;;  %v2179_v35 = vpop.f32.mrf.mxu2 }
 0x179   : > { %2352 = vmatmul.bf16.gmra.mxu0 %v7837_v5  ;;  %2381 = vmatmul.bf16.gmra.mxu1 %v6879_v55  ;;  %v2180_v8 = vadd.f32 %v2179_v35, %v2150_v13  ;;  %v2395_v21 = vmul.f32 %v7006_v3, %v2122_v33  ;;  %v6238_v5 = vld [vmem:[%s7825_s3 + $0x28] sm:$0xff] }
 0x17a   : > { %2537 = vmatmul.bf16.gmra.mxu2 %v2453_v34 }
 0x17b   : > { %v2209_v11 = vadd.f32 %v2208_v1, %v2180_v8  ;;  %v2405_v54 = vadd.f32 %v7015_v46, %v2395_v21 }
 0x17d   : > { %v7087_v42 = vpop.f32.mrf.mxu3  ;;  %v2421_v48 = vmul.f32 0.01, %v2405_v54  ;;  %vm2413_vm9 = vcmp.gt.f32.partialorder %v2405_v54, 0.0 }
 0x17e   : > { %v2123_v19 = vpop.f32.mrf.mxu0  ;;  %v7090_v41 = vpop.f32.mrf.mxu1 }
 0x17f   : > { %v2124_v18 = vadd.f32 %v2123_v19, %v2095_v62  ;;  %v2429_v20 = vsel %vm2413_vm9, %v2405_v54, %v2421_v48 }
 0x180   : > { %v7093_v59 = vpop.f32.mrf.mxu2 }
 0x181   : > { %v2396_v63 = vmul.f32 %v7006_v3, %v2124_v18 }
 0x183   : > { %v2406_v55 = vadd.f32 %v7015_v46, %v2396_v63 }
 0x185   : > { %vm2414_vm10 = vcmp.gt.f32.partialorder %v2406_v55, 0.0  ;;  %v2422_v4 = vmul.f32 0.01, %v2406_v55  ;;  %v2309_v58 = vpop.f32.mrf.mxu3 }
 0x186   : > { %v2222_v61 = vpop.f32.mrf.mxu0  ;;  %v2251_v32 = vpop.f32.mrf.mxu1 }
 0x187   : > { %v2223_v43 = vadd.f32 %v2222_v61, %v7017_v14  ;;  %v2430_v53 = vsel %vm2414_vm10, %v2406_v55, %v2422_v4  ;;  %v2167_v61 = vadd.f32 %v7029_v10, %v7025_v23  ;;  %v2615_v23 = vld [vmem:[#allocation3 + $0xc] sm:$0x1] }
 0x188   : > { %v2454_v24 = vpack.c.bf16 %v2430_v53, %v2429_v20  ;;  %v2280_v7 = vpop.f32.mrf.mxu2  ;;  %v2583_v53 = vld [vmem:[#allocation3 + $0x8] sm:$0x1] }
 0x189   : > { %v2252_v12 = vadd.f32 %v2251_v32, %v2223_v43  ;;  %v6236_v43 = vld [vmem:[%s7825_s3 + $0x18] sm:$0xff] }
 0x18a   : > { %2542 = vmatmul.bf16.gmra.mxu2 %v2454_v24  ;;  %v6256_v24 = vld [vmem:[%s7825_s3 + $0xb8] sm:$0xff] }
 0x18b   : > { %v2281_v3 = vadd.f32 %v2280_v7, %v2252_v12  ;;  %v2196_v12 = vadd.f32 %v7020_v0, %v2167_v61  ;;  %v6469_v7 = vmov 0   ;;  %4363 = vmatpush.bf16.msrb.mxu1 %v6256_v24  ;;  %v2589_v24 = vld [vmem:[#allocation3 + $0x18] sm:$0x1] }
 0x18c   : > { %2572 = vst [vmem:[#allocation3] sm:$0xf] %v6469_v7 }
 0x18d   : > { %v7097_v44 = vadd.f32 %v2309_v58, %v2281_v3  ;;  %v7101_v46 = vpop.f32.mrf.mxu3  ;;  %v2584_v3 = vsel %vm7152_vm14, 0, %v2583_v53  ;;  %2573 = vst [vmem:[#allocation3 + $0x4] sm:$0x1] %v6469_v7  ;;  %v6252_v53 = vld [vmem:[%s7825_s3 + $0x98] sm:$0xff] }
 0x18e   : > { %v7099_v31 = vpop.f32.mrf.mxu0  ;;  %v7103_v25 = vpop.f32.mrf.mxu1  ;;  %2576 = vst [vmem:[#allocation3 + $0x4c] sm:$0x1] %v6469_v7 }
 0x18f   : > { %2585 = vst [vmem:[#allocation3 + $0x8] sm:$0x1] %v2584_v3 }
 0x190   : > { %v7105_v30 = vpop.f32.mrf.mxu2  ;;  %2575 = vst [vmem:[#allocation3 + $0x48] sm:$0xf] %v6469_v7  ;;  %v6261_v7 = vld [vmem:[%s7825_s3 + $0xe0] sm:$0xff] }
 0x193   : > { %v2580_v52 = vld [vmem:[#allocation3] sm:$0x1] }
 0x195   : > { %v2314_v14 = vpop.f32.mrf.mxu3 }
 0x196   : > { %v2227_v56 = vpop.f32.mrf.mxu0  ;;  %v2256_v37 = vpop.f32.mrf.mxu1 }
 0x197   : > { %v2228_v28 = vadd.f32 %v2227_v56, %v7040_v49  ;;  %v6239_v49 = vld [vmem:[%s7825_s3 + $0x30] sm:$0xff]  ;;  %v2616_v56 = vsel %vm7157_vm15, 0, %v2615_v23 }
 0x198   : > { %v2285_v26 = vpop.f32.mrf.mxu2  ;;  %4306 = vmatpush.bf16.msra.mxu3 %v6239_v49  ;;  %2617 = vst [vmem:[#allocation3 + $0xc] sm:$0x1] %v2616_v56  ;;  %v6245_v56 = vld [vmem:[%s7825_s3 + $0x60] sm:$0xff] }
 0x199   : > { %v2257_v17 = vadd.f32 %v2256_v37, %v2228_v28  ;;  %v6255_v28 = vld [vmem:[%s7825_s3 + $0xb0] sm:$0xff]  ;;  %v6264_v37 = vld [vmem:[%s7825_s3 + $0xf8] sm:$0xff] }
 0x19a   : > { %4364 = vmatpush.bf16.msrb.mxu1 %v6255_v28  ;;  %4392 = vmatpush.bf16.msrb.mxu2 %v6264_v37  ;;  %v6251_v28 = vld [vmem:[%s7825_s3 + $0x90] sm:$0xff] }
 0x19b   : > { %v2286_v16 = vadd.f32 %v2285_v26, %v2257_v17 }
 0x19c   : > { %4307 = vmatpush.bf16.msra.mxu3 %v6238_v5  ;;  %v2172_v5 = vadd.f32 %v7052_v47, %v7048_v40  ;;  %v6262_v40 = vld [vmem:[%s7825_s3 + $0xe8] sm:$0xff] }
 0x19d   : > { %v7111_v39 = vadd.f32 %v2314_v14, %v2286_v16  ;;  %v7115_v9 = vpop.f32.mrf.mxu3  ;;  %v2225_v14 = vadd.f32 %v7099_v31, %v2196_v12  ;;  %v6248_v31 = vld [vmem:[%s7825_s3 + $0x78] sm:$0xff] }
 0x19e   : > { %v7113_v60 = vpop.f32.mrf.mxu0  ;;  %v7117_v27 = vpop.f32.mrf.mxu1  ;;  %4334 = vmatpush.bf16.msrb.mxu0 %v6248_v31  ;;  %v2621_v12 = vld [vmem:[#allocation3 + $0x1c] sm:$0x1] }
 0x19f   : > { %v2254_v17 = vadd.f32 %v7103_v25, %v2225_v14  ;;  %v2622_v3 = vsel %vm7157_vm15, 0, %v2621_v12  ;;  %v6258_v12 = vld [vmem:[%s7825_s3 + $0xc8] sm:$0xff] }
 0x1a0   : > { %v7119_v45 = vpop.f32.mrf.mxu2  ;;  %2623 = vst [vmem:[#allocation3 + $0x1c] sm:$0x1] %v2622_v3 }
 0x1a1   : > { %v2283_v49 = vadd.f32 %v7105_v30, %v2254_v17  ;;  %v6234_v17 = vld [vmem:[%s7825_s3 + $0x8] sm:$0xff] }
 0x1a5   : > { %v2319_v15 = vpop.f32.mrf.mxu3 }
 0x1a6   : > { %v2232_v1 = vpop.f32.mrf.mxu0  ;;  %v2261_v13 = vpop.f32.mrf.mxu1 }
 0x1a7   : > { %v2233_v33 = vadd.f32 %v2232_v1, %v7063_v22  ;;  %v6237_v22 = vld [vmem:[%s7825_s3 + $0x20] sm:$0xff] }
 0x1a8   : > { %v2290_v51 = vpop.f32.mrf.mxu2  ;;  %4308 = vmatpush.bf16.msra.mxu3 %v6237_v22  ;;  %v2618_v22 = vld [vmem:[#allocation3 + $0x14] sm:$0x1] }
 0x1a9   : > { %v2262_v38 = vadd.f32 %v2261_v13, %v2233_v33  ;;  %v2612_v33 = vld [vmem:[#allocation3 + $0x4] sm:$0x1]  ;;  %v2586_v13 = vld [vmem:[#allocation3 + $0x10] sm:$0x1] }
 0x1aa   : > { %v2613_v25 = vsel %vm7157_vm15, 0, %v2612_v33  ;;  %v2587_v30 = vsel %vm7152_vm14, 0, %v2586_v13 }
 0x1ab   : > { %v2291_v34 = vadd.f32 %v2290_v51, %v2262_v38  ;;  %v2639_v38 = vld [vmem:[#allocation3 + $0x4c] sm:$0x1]  ;;  %2614 = vst [vmem:[#allocation3 + $0x4] sm:$0x1] %v2613_v25 }
 0x1ac   : > { %4309 = vmatpush.bf16.msra.mxu3 %v6236_v43  ;;  %v2640_v51 = vsel %vm7157_vm15, 0, %v2639_v38  ;;  %2588 = vst [vmem:[#allocation3 + $0x10] sm:$0x1] %v2587_v30  ;;  %v6235_v43 = vld [vmem:[%s7825_s3 + $0x10] sm:$0xff]  ;;  %v6250_v25 = vld [vmem:[%s7825_s3 + $0x88] sm:$0xff]  ;;  %v6233_v38 = vld [vmem:[%s7825_s3] sm:$0xff] }
 0x1ad   : > { %v7125_v50 = vadd.f32 %v2319_v15, %v2291_v34  ;;  %v7134_v21 = vpop.f32.mrf.mxu3  ;;  %v2581_v15 = vsel %vm7152_vm14, 0, %v2580_v52  ;;  %v6263_v34 = vld [vmem:[%s7825_s3 + $0xf0] sm:$0xff]  ;;  %2641 = vst [vmem:[#allocation3 + $0x4c] sm:$0x1] %v2640_v51  ;;  %v2592_v30 = vld [vmem:[#allocation3 + $0x20] sm:$0x1] }
 0x1ae   : > { %v7130_v35 = vpop.f32.mrf.mxu0  ;;  %v7132_v8 = vpop.f32.mrf.mxu1  ;;  %2582 = vst [vmem:[#allocation3] sm:$0x1] %v2581_v15  ;;  %4393 = vmatpush.bf16.msrb.mxu2 %v6263_v34  ;;  %v2624_v51 = vld [vmem:[#allocation3 + $0x24] sm:$0x1]  ;;  %v2593_v34 = vsel %vm7152_vm14, 0, %v2592_v30  ;;  %v6272_v30 = vld [vmem:[%s7825_s3 + $0x138] sm:$0xff] }
 0x1af   : > { %2594 = vst [vmem:[#allocation3 + $0x20] sm:$0x1] %v2593_v34 }
 0x1b0   : > { %v7136_v62 = vpop.f32.mrf.mxu2  ;;  %4310 = vmatpush.bf16.msra.mxu3 %v6235_v43 }
 0x1b2   : > { %4394 = vmatpush.bf16.msrb.mxu2 %v6262_v40 }
 0x1b4   : > { %4311 = vmatpush.bf16.msra.mxu3 %v6234_v17  ;;  %v2733_v17 = vld [vmem:[#allocation3 + $0x8] sm:$0xf] }
 0x1b5   : > { %v2324_v55 = vpop.f32.mrf.mxu3 }
 0x1b6   : > { %v2237_v19 = vpop.f32.mrf.mxu0  ;;  %v2266_v18 = vpop.f32.mrf.mxu1  ;;  %4395 = vmatpush.bf16.msrb.mxu2 %v6261_v7 }
 0x1b7   : > { %v2238_v54 = vadd.f32 %v2237_v19, %v2209_v11  ;;  %v2312_v19 = vadd.f32 %v7101_v46, %v2283_v49  ;;  %v6244_v49 = vld [vmem:[%s7825_s3 + $0x58] sm:$0xff] }
 0x1b8   : > { %v2295_v48 = vpop.f32.mrf.mxu2  ;;  %4312 = vmatpush.bf16.msra.mxu3 %v6233_v38 }
 0x1b9   : > { %v2267_v63 = vadd.f32 %v2266_v18, %v2238_v54  ;;  %v2619_v54 = vsel %vm7157_vm15, 0, %v2618_v22  ;;  %v6247_v18 = vld [vmem:[%s7825_s3 + $0x70] sm:$0xff] }
 0x1ba   : > { %2620 = vst [vmem:[#allocation3 + $0x14] sm:$0x1] %v2619_v54  ;;  %4335 = vmatpush.bf16.msrb.mxu0 %v6247_v18  ;;  %v6243_v22 = vld [vmem:[%s7825_s3 + $0x50] sm:$0xff]  ;;  %v2177_v54 = vadd.f32 %v7075_v36, %v7071_v29  ;;  %v2797_v18 = vld [vmem:[#allocation3] sm:$0xf] }
 0x1bb   : > { %v2296_v4 = vadd.f32 %v2295_v48, %v2267_v63  ;;  %v6253_v63 = vld [vmem:[%s7825_s3 + $0xa0] sm:$0xff]  ;;  %v2814_v40 = vshrl.u32 %v2797_v18, 16 }
 0x1bc   : > { %v6249_v29 = vld [vmem:[%s7825_s3 + $0x80] sm:$0xff]  ;;  %4421 = vmatpush.bf16.msrb.mxu3 %v6272_v30 }
 0x1bd   : > { %v7143_v58 = vadd.f32 %v2324_v55, %v2296_v4  ;;  %v6246_v55 = vld [vmem:[%s7825_s3 + $0x68] sm:$0xff]  ;;  %v2201_v4 = vadd.f32 %v7043_v6, %v2172_v5  ;;  %v2590_v6 = vsel %vm7152_vm14, 0, %v2589_v24  ;;  %v2625_v5 = vsel %vm7157_vm15, 0, %v2624_v51  ;;  %v2798_v36 = vld [vmem:[#allocation3 + $0x4] sm:$0x1] }
 0x1be   : > { %v7148_v32 = vpop.f32.mrf.mxu0  ;;  %v7150_v11 = vpop.f32.mrf.mxu1  ;;  %4336 = vmatpush.bf16.msrb.mxu0 %v6246_v55  ;;  %2591 = vst [vmem:[#allocation3 + $0x18] sm:$0x1] %v2590_v6  ;;  %v2823_v7 = vshll.u32 %v2798_v36, 16  ;;  %v2598_v36 = vld [vmem:[#allocation3 + $0x30] sm:$0x1] }
 0x1bf   : > { %7838 = vst [vmem:[#allocation11_spill] sm:$0xff] %v7150_v11  ;;  %v2230_v23 = vadd.f32 %v7113_v60, %v2201_v4  ;;  %v2781_v60 = vld [vmem:[#allocation3] sm:$0xf] }
 0x1c0   : > { %v7235_v14 = vpop.f32.mrf.mxu2  ;;  %2789 = vst [vmem:[#allocation4] sm:$0xf] %v2781_v60 }
 0x1c1   : > { %7843 = vst [vmem:[#allocation12_spill] sm:$0xff] %v7235_v14 }
 0x1c2   : > { %4337 = vmatpush.bf16.msrb.mxu0 %v6245_v56  ;;  %2626 = vst [vmem:[#allocation3 + $0x24] sm:$0x1] %v2625_v5  ;;  %v6242_v56 = vld [vmem:[%s7825_s3 + $0x48] sm:$0xff] }
 0x1c6   : > { %v2338_v0 = vpop.f32.mrf.mxu0  ;;  %v2367_v16 = vpop.f32.mrf.mxu1  ;;  %4338 = vmatpush.bf16.msrb.mxu0 %v6244_v49  ;;  %v2736_v49 = vld [vmem:[#allocation3 + $0xc] sm:$0x1] }
 0x1c7   : > { %v2339_v26 = vadd.f32 %v2338_v0, %v7097_v44  ;;  %v6254_v44 = vld [vmem:[%s7825_s3 + $0xa8] sm:$0xff]  ;;  %v2259_v0 = vadd.f32 %v7117_v27, %v2230_v23  ;;  %v2942_v27 = vld [vmem:[#allocation3 + $0x4] sm:$0x1] }
 0x1c8   : > { %4365 = vmatpush.bf16.msrb.mxu1 %v6254_v44  ;;  %v2978_v13 = vrot.slane %v2942_v27, 5 }
 0x1c9   : > { %v7182_v1 = vadd.f32 %v2367_v16, %v2339_v26  ;;  %v6260_v26 = vld [vmem:[%s7825_s3 + $0xd8] sm:$0xff]  ;;  %v2941_v16 = vld [vmem:[#allocation3] sm:$0xe]  ;;  %v2288_v44 = vadd.f32 %v7119_v45, %v2259_v0  ;;  %v6259_v45 = vld [vmem:[%s7825_s3 + $0xd0] sm:$0xff]  ;;  %v2825_v0 = vrot.slane %v2823_v7, 5 }
 0x1ca   : > { %v5548_v15 = vrot.slane %v2941_v16, 9  ;;  %4396 = vmatpush.bf16.msrb.mxu2 %v6260_v26  ;;  %4339 = vmatpush.bf16.msrb.mxu0 %v6243_v22  ;;  %v2595_v26 = vld [vmem:[#allocation3 + $0x28] sm:$0x1]  ;;  %v2627_v16 = vld [vmem:[#allocation3 + $0x2c] sm:$0x1] }
 0x1cc   : > { %4366 = vmatpush.bf16.msrb.mxu1 %v6253_v63  ;;  %v2317_v63 = vadd.f32 %v7115_v9, %v2288_v44  ;;  %v2206_v9 = vadd.f32 %v7066_v2, %v2177_v54 }
 0x1ce   : > { %v2340_v48 = vpop.f32.mrf.mxu0  ;;  %v2369_v46 = vpop.f32.mrf.mxu1  ;;  %4397 = vmatpush.bf16.msrb.mxu2 %v6259_v45  ;;  %4340 = vmatpush.bf16.msrb.mxu0 %v6242_v56 }
 0x1cf   : > { %v2341_v47 = vadd.f32 %v2340_v48, %v2312_v19  ;;  %v2979_v19 = vsel %vm7251_vm3, %v5548_v15, %v2978_v13  ;;  %v2596_v15 = vsel %vm7152_vm14, 0, %v2595_v26  ;;  %v2628_v13 = vsel %vm7157_vm15, 0, %v2627_v16 }
 0x1d0   : > { %4367 = vmatpush.bf16.msrb.mxu1 %v6252_v53  ;;  %3016 = vst [vmem:[#allocation4 + $0x8] sm:$0xf] %v2979_v19  ;;  %v2816_v53 = vrot.slane %v2814_v40, 4 }
 0x1d1   : > { %v7216_v61 = vadd.f32 %v2369_v46, %v2341_v47  ;;  %v2817_v47 = vshll.u32 %v2797_v18, 16  ;;  %2597 = vst [vmem:[#allocation3 + $0x28] sm:$0x1] %v2596_v15 }
 0x1d2   : > { %4398 = vmatpush.bf16.msrb.mxu2 %v6258_v12  ;;  %2629 = vst [vmem:[#allocation3 + $0x2c] sm:$0x1] %v2628_v13 }
 0x1d3   : > { %v2819_v23 = vrot.slane %v2817_v47, 5  ;;  %v2739_v47 = vld [vmem:[#allocation3 + $0x10] sm:$0xf] }
 0x1d4   : > { %4368 = vmatpush.bf16.msrb.mxu1 %v6251_v28  ;;  %v2235_v28 = vadd.f32 %v7130_v35, %v2206_v9 }
 0x1d5   : > { %v2820_v60 = vor.u32 %v2819_v23, %v2816_v53  ;;  %v2742_v53 = vld [vmem:[#allocation3 + $0x14] sm:$0x1] }
 0x1d6   : > { %v2343_v37 = vpop.f32.mrf.mxu0  ;;  %v2372_v52 = vpop.f32.mrf.mxu1  ;;  %v2264_v35 = vadd.f32 %v7132_v8, %v2235_v28 }
 0x1d7   : > { %v2344_v31 = vadd.f32 %v2343_v37, %v7111_v39  ;;  %v2821_v37 = vrot.slane %v2820_v60, 4 }
 0x1d8   : > { %4369 = vmatpush.bf16.msrb.mxu1 %v6250_v25  ;;  %v2293_v22 = vadd.f32 %v7136_v62, %v2264_v35  ;;  %v6241_v62 = vld [vmem:[%s7825_s3 + $0x40] sm:$0xff]  ;;  %v2745_v35 = vld [vmem:[#allocation3 + $0x18] sm:$0xf] }
 0x1d9   : > { %v7256_v39 = vadd.f32 %v2372_v52, %v2344_v31  ;;  %v2826_v51 = vsel %vm6589_vm2, %v2821_v37, %v2825_v0  ;;  %4341 = vmatpush.bf16.msrb.mxu0 %v6241_v62 }
 0x1da   : > { %2933 = vst [vmem:[#allocation4 + $0x4] sm:$0xf] %v2826_v51 }
 0x1dc   : > { %4370 = vmatpush.bf16.msrb.mxu1 %v6249_v29  ;;  %v6271_v29 = vld [vmem:[%s7825_s3 + $0x130] sm:$0xff] }
 0x1dd   : > { %v2528_v48 = vpop.f32.mrf.mxu2  ;;  %4422 = vmatpush.bf16.msrb.mxu3 %v6271_v29 }
 0x1de   : > { %vm2548_vm4 = vcmp.gt.f32.partialorder %v2528_v48, 0.0  ;;  %v2556_v46 = vmul.f32 0.01, %v2528_v48  ;;  %v2345_v55 = vpop.f32.mrf.mxu0  ;;  %v2374_v43 = vpop.f32.mrf.mxu1 }
 0x1df   : > { %v2346_v4 = vadd.f32 %v2345_v55, %v2317_v63 }
 0x1e0   : > { %v2564_v24 = vsel %vm2548_vm4, %v2528_v48, %v2556_v46  ;;  %v2322_v46 = vadd.f32 %v7134_v21, %v2293_v22 }
 0x1e1   : > { %v2642_v6 = vpack.c.bf16 %v2564_v24, %v2564_v24  ;;  %v7286_v3 = vadd.f32 %v2374_v43, %v2346_v4  ;;  %v2599_v24 = vsel %vm7152_vm14, 0, %v2598_v36 }
 0x1e2   : > { %2600 = vst [vmem:[#allocation3 + $0x30] sm:$0x1] %v2599_v24 }
 0x1e3   : > { %v2651_v2 = vshrl.u32 %v2642_v6, 16  ;;  %v2654_v52 = vshll.u32 %v2642_v6, 16 }
 0x1e5   : > { %v2653_v31 = vrot.slane %v2651_v2, 7  ;;  %v2530_v27 = vpop.f32.mrf.mxu2 }
 0x1e6   : > { %vm2549_vm7 = vcmp.gt.f32.partialorder %v2530_v27, 0.0  ;;  %v2557_v25 = vmul.f32 0.01, %v2530_v27  ;;  %v2348_v38 = vpop.f32.mrf.mxu0  ;;  %v2377_v45 = vpop.f32.mrf.mxu1 }
 0x1e7   : > { %v2656_v34 = vor.u32 %v2654_v52, %v2653_v31  ;;  %v2657_v5 = vrot.slane %v2653_v31, 4  ;;  %v2349_v8 = vadd.f32 %v2348_v38, %v7125_v50  ;;  %v6257_v50 = vld [vmem:[%s7825_s3 + $0xc0] sm:$0xff] }
 0x1e8   : > { %v2565_v19 = vsel %vm2549_vm7, %v2530_v27, %v2557_v25  ;;  %4399 = vmatpush.bf16.msrb.mxu2 %v6257_v50  ;;  %v2748_v25 = vld [vmem:[#allocation3 + $0x1c] sm:$0x1] }
 0x1e9   : > { %v2734_v54 = vsel %vm7298_vm6, %v2656_v34, %v2733_v17  ;;  %v2737_v18 = vsel %vm7152_vm14, %v2657_v5, %v2736_v49  ;;  %v2643_v63 = vpack.c.bf16 %v2565_v19, %v2565_v19  ;;  %v7313_v48 = vadd.f32 %v2377_v45, %v2349_v8  ;;  %v2630_v17 = vld [vmem:[#allocation3 + $0x34] sm:$0x1] }
 0x1ea   : > { %2735 = vst [vmem:[#allocation3 + $0x8] sm:$0xf] %v2734_v54  ;;  %v2631_v27 = vsel %vm7157_vm15, 0, %v2630_v17  ;;  %v2754_v17 = vld [vmem:[#allocation3 + $0x24] sm:$0x1] }
 0x1eb   : > { %2738 = vst [vmem:[#allocation3 + $0xc] sm:$0x1] %v2737_v18  ;;  %v2659_v40 = vshrl.u32 %v2643_v63, 16  ;;  %v2662_v4 = vshll.u32 %v2643_v63, 16 }
 0x1ec   : > { %2632 = vst [vmem:[#allocation3 + $0x34] sm:$0x1] %v2631_v27 }
 0x1ed   : > { %v2661_v55 = vrot.slane %v2659_v40, 7  ;;  %v2533_v43 = vpop.f32.mrf.mxu2 }
 0x1ee   : > { %vm2550_vm8 = vcmp.gt.f32.partialorder %v2533_v43, 0.0  ;;  %v2558_v23 = vmul.f32 0.01, %v2533_v43  ;;  %v2350_v9 = vpop.f32.mrf.mxu0  ;;  %v2379_v56 = vpop.f32.mrf.mxu1 }
 0x1ef   : > { %v2664_v12 = vor.u32 %v2662_v4, %v2661_v55  ;;  %v2665_v7 = vrot.slane %v2661_v55, 4  ;;  %v2351_v6 = vadd.f32 %v2350_v9, %v2322_v46  ;;  %v6270_v4 = vld [vmem:[%s7825_s3 + $0x128] sm:$0xff]  ;;  %v5574_v9 = vld [vmem:[#allocation4] sm:$0xf] }
 0x1f0   : > { %v2566_v21 = vsel %vm2550_vm8, %v2533_v43, %v2558_v23  ;;  %4423 = vmatpush.bf16.msrb.mxu3 %v6270_v4 }
 0x1f1   : > { %v2799_v60 = vld [vmem:[#allocation3 + $0x8] sm:$0xf]  ;;  %v2740_v28 = vsel %vm7298_vm6, %v2664_v12, %v2739_v47  ;;  %v2743_v0 = vsel %vm7152_vm14, %v2665_v7, %v2742_v53  ;;  %v2644_v2 = vpack.c.bf16 %v2566_v21, %v2566_v21  ;;  %v7331_v37 = vadd.f32 %v2379_v56, %v2351_v6 }
 0x1f2   : > { %v2828_v26 = vshrl.u32 %v2799_v60, 16  ;;  %v2831_v16 = vshll.u32 %v2799_v60, 16  ;;  %v2943_v31 = vld [vmem:[#allocation3 + $0x8] sm:$0xe]  ;;  %2741 = vst [vmem:[#allocation3 + $0x10] sm:$0xf] %v2740_v28 }
 0x1f3   : > { %7848 = vst [vmem:[#allocation13_spill] sm:$0xff] %v7331_v37  ;;  %v7333_v52 = vld [vmem:[#allocation3 + $0x8] sm:$0xf]  ;;  %v2667_v49 = vshrl.u32 %v2644_v2, 16  ;;  %v2670_v13 = vshll.u32 %v2644_v2, 16  ;;  %v5549_v54 = vrot.slane %v2943_v31, 9 }
 0x1f4   : > { %2744 = vst [vmem:[#allocation3 + $0x14] sm:$0x1] %v2743_v0  ;;  %v2830_v15 = vrot.slane %v2828_v26, 4  ;;  %v2782_v30 = vld [vmem:[#allocation3 + $0x8] sm:$0xf]  ;;  %v2833_v45 = vrot.slane %v2831_v16, 5 }
 0x1f5   : > { %v2535_v38 = vpop.f32.mrf.mxu2  ;;  %v2944_v51 = vld [vmem:[#allocation3 + $0xc] sm:$0x1]  ;;  %v2669_v34 = vrot.slane %v2667_v49, 7  ;;  %2790 = vst [vmem:[#allocation4 + $0x24] sm:$0xf] %v2782_v30  ;;  %v3057_v47 = vshrl.u32 %v7333_v52, 16 }
 0x1f6   : > { %vm2551_vm9 = vcmp.gt.f32.partialorder %v2535_v38, 0.0  ;;  %v2559_v5 = vmul.f32 0.01, %v2535_v38  ;;  %v2353_v8 = vpop.f32.mrf.mxu0  ;;  %v2382_v19 = vpop.f32.mrf.mxu1  ;;  %v3024_v18 = vld [vmem:[#allocation3 + $0x8] sm:$0xf]  ;;  %v2982_v40 = vrot.slane %v2944_v51, 5  ;;  %v2834_v12 = vor.u32 %v2833_v45, %v2830_v15 }
 0x1f7   : > { %v2354_v22 = vadd.f32 %v2353_v8, %v7143_v58  ;;  %v2672_v63 = vor.u32 %v2670_v13, %v2669_v34  ;;  %v2673_v50 = vrot.slane %v2669_v34, 4  ;;  %3032 = vst [vmem:[#allocation4 + $0xc] sm:$0xf] %v3024_v18  ;;  %v2800_v43 = vld [vmem:[#allocation3 + $0xc] sm:$0x1]  ;;  %v3060_v23 = vshll.u32 %v7333_v52, 16 }
 0x1f8   : > { %v2567_v62 = vsel %vm2551_vm9, %v2535_v38, %v2559_v5  ;;  %v2983_v24 = vsel %vm7251_vm3, %v5549_v54, %v2982_v40  ;;  %v7351_v7 = vrot.slane %v3057_v47, 4  ;;  %v2837_v60 = vshll.u32 %v2800_v43, 16  ;;  %v2751_v2 = vld [vmem:[#allocation3 + $0x20] sm:$0xf]  ;;  %v5582_v40 = vld [vmem:[#allocation4 + $0x8] sm:$0xf] }
 0x1f9   : > { %v2645_v46 = vpack.c.bf16 %v2567_v62, %v2567_v62  ;;  %v7339_v55 = vadd.f32 %v2382_v19, %v2354_v22  ;;  %v3042_v58 = vld [vmem:[#allocation3 + $0x10] sm:$0xf]  ;;  %v2746_v29 = vsel %vm7298_vm6, %v2672_v63, %v2745_v35  ;;  %v2749_v36 = vsel %vm7152_vm14, %v2673_v50, %v2748_v25  ;;  %v6269_v16 = vld [vmem:[%s7825_s3 + $0x120] sm:$0xff]  ;;  %3017 = vst [vmem:[#allocation4 + $0x2c] sm:$0xf] %v2983_v24 }
 0x1fa   : > { %v3281_v53 = vld [vmem:[#allocation3 + $0x10] sm:$0xf]  ;;  %2747 = vst [vmem:[#allocation3 + $0x18] sm:$0xf] %v2746_v29  ;;  %v3071_v6 = vshrl.u32 %v3042_v58, 16  ;;  %v3074_v28 = vshll.u32 %v3042_v58, 16  ;;  %4424 = vmatpush.bf16.msrb.mxu3 %v6269_v16 }
 0x1fb   : > { %7849 = vst [vmem:[#allocation14_spill] sm:$0xff] %v7339_v55  ;;  %v2675_v56 = vshrl.u32 %v2645_v46, 16  ;;  %v3298_v0 = vshrl.u32 %v3281_v53, 16  ;;  %v2678_v52 = vshll.u32 %v2645_v46, 16  ;;  %v3301_v15 = vshll.u32 %v3281_v53, 16 }
 0x1fc   : > { %2750 = vst [vmem:[#allocation3 + $0x1c] sm:$0x1] %v2749_v36  ;;  %v6201_v26 = vld [vmem:[#allocation4 + $0x20] sm:$0xf0]  ;;  %v3025_v13 = vld [vmem:[#allocation3 + $0x10] sm:$0xf] }
 0x1fd   : > { %v2538_v21 = vpop.f32.mrf.mxu2  ;;  %v2677_v31 = vrot.slane %v2675_v56, 7  ;;  %v5575_v49 = vor.u32 %v6201_v26, %v5574_v9  ;;  %v2835_v35 = vrot.slane %v2834_v12, 4  ;;  %v2601_v25 = vld [vmem:[#allocation3 + $0x38] sm:$0x1]  ;;  %v7356_v38 = vrot.slane %v3060_v23, 5 }
 0x1fe   : > { %vm2552_vm10 = vcmp.gt.f32.partialorder %v2538_v21, 0.0  ;;  %v2560_v27 = vmul.f32 0.01, %v2538_v21  ;;  %3033 = vst [vmem:[#allocation4 + $0x30] sm:$0xf] %v3025_v13  ;;  %v7359_v8 = vrot.slane %v3071_v6, 4 }
 0x1ff   : > { %v2680_v30 = vor.u32 %v2678_v52, %v2677_v31  ;;  %v2681_v51 = vrot.slane %v2677_v31, 4  ;;  %4313 = vmatmul.bf16.vlgmr.msra.gmra.mxu3 %v5575_v49  ;;  %v2783_v5 = vld [vmem:[#allocation3 + $0x10] sm:$0xf]  ;;  %v2839_v22 = vrot.slane %v2837_v60, 5  ;;  %v2633_v19 = vld [vmem:[#allocation3 + $0x3c] sm:$0x1]  ;;  %v3063_v44 = vor.u32 %v7356_v38, %v7351_v7 }
 0x200   : > { %v2568_v34 = vsel %vm2552_vm10, %v2538_v21, %v2560_v27  ;;  %2791 = vst [vmem:[#allocation4 + $0x48] sm:$0xf] %v2783_v5  ;;  %v7361_v54 = vrot.slane %v3074_v28, 5  ;;  %v7363_v18 = vrot.slane %v3298_v0, 4  ;;  %v7371_v47 = vrot.slane %v3301_v15, 5 }
 0x201   : > { %v2646_v45 = vpack.c.bf16 %v2568_v34, %v2568_v34  ;;  %v7365_v63 = vld [vmem:[#allocation3 + $0x18] sm:$0xf]  ;;  %v2752_v50 = vsel %vm7298_vm6, %v2680_v30, %v2751_v2  ;;  %v2755_v62 = vsel %vm7152_vm14, %v2681_v51, %v2754_v17  ;;  %v2840_v46 = vsel %vm6589_vm2, %v2835_v35, %v2839_v22  ;;  %v2945_v53 = vld [vmem:[#allocation3 + $0x10] sm:$0xe]  ;;  %v2757_v12 = vld [vmem:[#allocation3 + $0x28] sm:$0xf] }
 0x202   : > { %2753 = vst [vmem:[#allocation3 + $0x20] sm:$0xf] %v2752_v50  ;;  %v2784_v4 = vld [vmem:[#allocation3 + $0x18] sm:$0xf]  ;;  %v2602_v43 = vsel %vm7152_vm14, 0, %v2601_v25  ;;  %v2634_v36 = vsel %vm7157_vm15, 0, %v2633_v19 }
 0x203   : > { %2756 = vst [vmem:[#allocation3 + $0x24] sm:$0x1] %v2755_v62  ;;  %v2683_v58 = vshrl.u32 %v2646_v45, 16  ;;  %v3312_v23 = vshrl.u32 %v7365_v63, 16  ;;  %v3315_v9 = vshll.u32 %v7365_v63, 16  ;;  %v2686_v24 = vshll.u32 %v2646_v45, 16 }
 0x204   : > { %v2760_v6 = vld [vmem:[#allocation3 + $0x2c] sm:$0x1]  ;;  %v6202_v56 = vld [vmem:[#allocation4 + $0x28] sm:$0xf0]  ;;  %2934 = vst [vmem:[#allocation4 + $0x28] sm:$0xf] %v2840_v46 }
 0x205   : > { %v2540_v29 = vpop.f32.mrf.mxu2  ;;  %v6198_v21 = vld [vmem:[#allocation4 + $0xc] sm:$0xf]  ;;  %v2685_v60 = vrot.slane %v2683_v58, 7  ;;  %v5583_v28 = vor.u32 %v6202_v56, %v5582_v40  ;;  %v5550_v2 = vrot.slane %v2945_v53, 9  ;;  %v5584_v17 = vld [vmem:[#allocation4 + $0x2c] sm:$0xf0] }
 0x206   : > { %vm2553_vm11 = vcmp.gt.f32.partialorder %v2540_v29, 0.0  ;;  %v2561_v0 = vmul.f32 0.01, %v2540_v29  ;;  %2792 = vst [vmem:[#allocation4 + $0x6c] sm:$0xf] %v2784_v4  ;;  %v5587_v52 = vor.u32 %v6198_v21, %v5584_v17  ;;  %v6268_v50 = vld [vmem:[%s7825_s3 + $0x118] sm:$0xff] }
 0x207   : > { %v2946_v26 = vld [vmem:[#allocation3 + $0x14] sm:$0x1]  ;;  %v2688_v16 = vor.u32 %v2686_v24, %v2685_v60  ;;  %v2689_v31 = vrot.slane %v2685_v60, 4  ;;  %4371 = vmatmul.bf16.vlgmr.msrb.gmra.mxu1 %v5583_v28  ;;  %2603 = vst [vmem:[#allocation3 + $0x38] sm:$0x1] %v2602_v43  ;;  %4425 = vmatpush.bf16.msrb.mxu3 %v6268_v50  ;;  %v7443_v7 = vrot.slane %v3315_v9, 5 }
 0x208   : > { %v2569_v49 = vsel %vm2553_vm11, %v2540_v29, %v2561_v0  ;;  %2635 = vst [vmem:[#allocation3 + $0x3c] sm:$0x1] %v2634_v36  ;;  %v2947_v15 = vld [vmem:[#allocation3 + $0x18] sm:$0xe]  ;;  %v2948_v13 = vld [vmem:[#allocation3 + $0x1c] sm:$0x1]  ;;  %4400 = vmatmul.bf16.vlgmr.msrb.gmra.mxu2 %v5587_v52 }
 0x209   : > { %v2647_v27 = vpack.c.bf16 %v2569_v49, %v2569_v49  ;;  %v2758_v35 = vsel %vm7298_vm6, %v2688_v16, %v2757_v12  ;;  %v2761_v25 = vsel %vm7152_vm14, %v2689_v31, %v2760_v6  ;;  %v6197_v30 = vld [vmem:[#allocation4 + $0x4] sm:$0xf]  ;;  %v2986_v51 = vrot.slane %v2946_v26, 5  ;;  %v3026_v19 = vld [vmem:[#allocation3 + $0x18] sm:$0xf]  ;;  %v6286_v63 = vld [vmem:[%s7825_s3 + $0x1a8] sm:$0xff] }
 0x20a   : > { %v5551_v34 = vrot.slane %v2947_v15, 9  ;;  %2759 = vst [vmem:[#allocation3 + $0x28] sm:$0xf] %v2758_v35  ;;  %v2990_v22 = vrot.slane %v2948_v13, 5  ;;  %v2763_v62 = vld [vmem:[#allocation3 + $0x30] sm:$0xf] }
 0x20b   : > { %v2691_v5 = vshrl.u32 %v2647_v27, 16  ;;  %v2694_v45 = vshll.u32 %v2647_v27, 16  ;;  %2762 = vst [vmem:[#allocation3 + $0x2c] sm:$0x1] %v2761_v25  ;;  %v2766_v40 = vld [vmem:[#allocation3 + $0x34] sm:$0x1]  ;;  %v2987_v43 = vsel %vm7251_vm3, %v5550_v2, %v2986_v51 }
 0x20c   : > { %v5610_v46 = vld [vmem:[#allocation4 + $0x48] sm:$0xf]  ;;  %v2604_v58 = vld [vmem:[#allocation3 + $0x40] sm:$0x1]  ;;  %v2636_v29 = vld [vmem:[#allocation3 + $0x44] sm:$0x1]  ;;  %v2991_v12 = vsel %vm7251_vm3, %v5551_v34, %v2990_v22 }
 0x20d   : > { %v2543_v4 = vpop.f32.mrf.mxu2  ;;  %v2693_v36 = vrot.slane %v2691_v5, 7  ;;  %v5576_v53 = vld [vmem:[#allocation4 + $0x24] sm:$0xf0]  ;;  %v6210_v56 = vld [vmem:[#allocation4 + $0x68] sm:$0xf0]  ;;  %v2605_v16 = vsel %vm7152_vm14, 0, %v2604_v58 }
 0x20e   : > { %vm2554_vm12 = vcmp.gt.f32.partialorder %v2543_v4, 0.0  ;;  %v2562_v24 = vmul.f32 0.01, %v2543_v4  ;;  %v5579_v6 = vor.u32 %v6197_v30, %v5576_v53  ;;  %3018 = vst [vmem:[#allocation4 + $0x50] sm:$0xf] %v2987_v43  ;;  %v5611_v0 = vor.u32 %v6210_v56, %v5610_v46  ;;  %v6288_v2 = vld [vmem:[%s7825_s3 + $0x1b8] sm:$0xff] }
 0x20f   : > { %v3027_v21 = vld [vmem:[#allocation3 + $0x20] sm:$0xf]  ;;  %v2696_v60 = vor.u32 %v2694_v45, %v2693_v36  ;;  %v2697_v28 = vrot.slane %v2693_v36, 4  ;;  %3019 = vst [vmem:[#allocation4 + $0x74] sm:$0xf] %v2991_v12  ;;  %v2637_v31 = vsel %vm7157_vm15, 0, %v2636_v29  ;;  %4479 = vmatpush.bf16.msra.mxu1 %v6288_v2 }
 0x210   : > { %v2570_v17 = vsel %vm2554_vm12, %v2543_v4, %v2562_v24  ;;  %4342 = vmatmul.bf16.vlgmr.msrb.gmra.mxu0 %v5579_v6  ;;  %3034 = vst [vmem:[#allocation4 + $0x54] sm:$0xf] %v3026_v19  ;;  %v2801_v52 = vld [vmem:[#allocation3 + $0x10] sm:$0xf]  ;;  %4318 = vmatmul.bf16.gmra.mxu3 %v5611_v0  ;;  %v2802_v15 = vld [vmem:[#allocation3 + $0x14] sm:$0x1] }
 0x211   : > { %v2648_v26 = vpack.c.bf16 %v2570_v17, %v2570_v17  ;;  %v2764_v49 = vsel %vm7298_vm6, %v2696_v60, %v2763_v62  ;;  %v2767_v27 = vsel %vm7152_vm14, %v2697_v28, %v2766_v40  ;;  %3035 = vst [vmem:[#allocation4 + $0x78] sm:$0xf] %v3027_v21  ;;  %v2803_v13 = vld [vmem:[#allocation3 + $0x18] sm:$0xf]  ;;  %v2804_v30 = vld [vmem:[#allocation3 + $0x1c] sm:$0x1] }
 0x212   : > { %2765 = vst [vmem:[#allocation3 + $0x30] sm:$0xf] %v2764_v49  ;;  %v2769_v51 = vld [vmem:[#allocation3 + $0x38] sm:$0xf]  ;;  %v2772_v10 = vld [vmem:[#allocation3 + $0x3c] sm:$0x1] }
 0x213   : > { %v2699_v35 = vshrl.u32 %v2648_v26, 16  ;;  %v2702_v25 = vshll.u32 %v2648_v26, 16  ;;  %2768 = vst [vmem:[#allocation3 + $0x34] sm:$0x1] %v2767_v27  ;;  %v2842_v34 = vshrl.u32 %v2801_v52, 16  ;;  %v2845_v5 = vshll.u32 %v2801_v52, 16 }
 0x214   : > { %v2851_v45 = vshll.u32 %v2802_v15, 16  ;;  %v2856_v22 = vshrl.u32 %v2803_v13, 16  ;;  %2606 = vst [vmem:[#allocation3 + $0x40] sm:$0x1] %v2605_v16  ;;  %v2859_v62 = vshll.u32 %v2803_v13, 16  ;;  %v2865_v40 = vshll.u32 %v2804_v30, 16 }
 0x215   : > { %v2701_v19 = vrot.slane %v2699_v35, 7  ;;  %v2545_v50 = vpop.f32.mrf.mxu2  ;;  %v6267_v46 = vld [vmem:[%s7825_s3 + $0x110] sm:$0xff]  ;;  %v5618_v4 = vld [vmem:[#allocation4 + $0x50] sm:$0xf]  ;;  %v2844_v58 = vrot.slane %v2842_v34, 4  ;;  %v2847_v24 = vrot.slane %v2845_v5, 5 }
 0x216   : > { %vm2555_vm13 = vcmp.gt.f32.partialorder %v2545_v50, 0.0  ;;  %v2563_v43 = vmul.f32 0.01, %v2545_v50  ;;  %v6211_v53 = vld [vmem:[#allocation4 + $0x70] sm:$0xf0]  ;;  %4426 = vmatpush.bf16.msrb.mxu3 %v6267_v46  ;;  %v2853_v21 = vrot.slane %v2851_v45, 5 }
 0x217   : > { %v2704_v29 = vor.u32 %v2702_v25, %v2701_v19  ;;  %v2705_v36 = vrot.slane %v2701_v19, 4  ;;  %2638 = vst [vmem:[#allocation3 + $0x44] sm:$0x1] %v2637_v31  ;;  %v5619_v12 = vor.u32 %v6211_v53, %v5618_v4  ;;  %v6207_v6 = vld [vmem:[#allocation4 + $0x54] sm:$0xf]  ;;  %v2858_v60 = vrot.slane %v2856_v22, 4 }
 0x218   : > { %v2571_v56 = vsel %vm2555_vm13, %v2545_v50, %v2563_v43  ;;  %v2785_v28 = vld [vmem:[#allocation3 + $0x20] sm:$0xf]  ;;  %v5620_v2 = vld [vmem:[#allocation4 + $0x74] sm:$0xf0]  ;;  %v2848_v16 = vor.u32 %v2847_v24, %v2844_v58  ;;  %v2861_v49 = vrot.slane %v2859_v62, 5  ;;  %v2867_v27 = vrot.slane %v2865_v40, 5 }
 0x219   : > { %v2770_v0 = vsel %vm7298_vm6, %v2704_v29, %v2769_v51  ;;  %v2773_v17 = vsel %vm7152_vm14, %v2705_v36, %v2772_v10  ;;  %v2649_v26 = vpack.c.bf16 %v2571_v56, %v2571_v56  ;;  %v2786_v52 = vld [vmem:[#allocation3 + $0x28] sm:$0xf]  ;;  %2793 = vst [vmem:[#allocation4 + $0x90] sm:$0xf] %v2785_v28  ;;  %4376 = vmatmul.bf16.gmra.mxu1 %v5619_v12  ;;  %v2949_v15 = vld [vmem:[#allocation3 + $0x20] sm:$0xe] }
 0x21a   : > { %2771 = vst [vmem:[#allocation3 + $0x38] sm:$0xf] %v2770_v0  ;;  %v5623_v31 = vor.u32 %v6207_v6, %v5620_v2  ;;  %v2849_v25 = vrot.slane %v2848_v16, 4  ;;  %v5552_v30 = vrot.slane %v2949_v15, 9  ;;  %v2862_v34 = vor.u32 %v2861_v49, %v2858_v60  ;;  %v2950_v10 = vld [vmem:[#allocation3 + $0x24] sm:$0x1] }
 0x21b   : > { %2774 = vst [vmem:[#allocation3 + $0x3c] sm:$0x1] %v2773_v17  ;;  %v2707_v13 = vshrl.u32 %v2649_v26, 16  ;;  %v2710_v35 = vshll.u32 %v2649_v26, 16  ;;  %v2775_v51 = vld [vmem:[#allocation3 + $0x40] sm:$0xf] }
 0x21c   : > { %4405 = vmatmul.bf16.gmra.mxu2 %v5623_v31  ;;  %2794 = vst [vmem:[#allocation4 + $0xb4] sm:$0xf] %v2786_v52  ;;  %v2854_v45 = vsel %vm6589_vm2, %v2849_v25, %v2853_v21  ;;  %v2951_v22 = vld [vmem:[#allocation3 + $0x28] sm:$0xe]  ;;  %v2952_v19 = vld [vmem:[#allocation3 + $0x2c] sm:$0x1] }
 0x21d   : > { %v2709_v5 = vrot.slane %v2707_v13, 7  ;;  %v2994_v50 = vrot.slane %v2950_v10, 5  ;;  %v2863_v40 = vrot.slane %v2862_v34, 4  ;;  %2935 = vst [vmem:[#allocation4 + $0x4c] sm:$0xf] %v2854_v45  ;;  %v5553_v46 = vrot.slane %v2951_v22, 9 }
 0x21e   : > { %v2778_v62 = vld [vmem:[#allocation3 + $0x44] sm:$0x1]  ;;  %v2998_v29 = vrot.slane %v2952_v19, 5  ;;  %v3028_v53 = vld [vmem:[#allocation3 + $0x28] sm:$0xf]  ;;  %v6287_v24 = vld [vmem:[%s7825_s3 + $0x1b0] sm:$0xff] }
 0x21f   : > { %v2712_v4 = vor.u32 %v2710_v35, %v2709_v5  ;;  %v2713_v43 = vrot.slane %v2709_v5, 4  ;;  %v2995_v58 = vsel %vm7251_vm3, %v5552_v30, %v2994_v50  ;;  %v2868_v36 = vsel %vm6589_vm2, %v2863_v40, %v2867_v27  ;;  %v6296_v12 = vld [vmem:[%s7825_s3 + $0x1f8] sm:$0xff]  ;;  %v3029_v28 = vld [vmem:[#allocation3 + $0x30] sm:$0xf]  ;;  %v2805_v0 = vld [vmem:[#allocation3 + $0x20] sm:$0xf]  ;;  %4480 = vmatpush.bf16.msra.mxu1 %v6287_v24 }
 0x220   : > { %3020 = vst [vmem:[#allocation4 + $0x98] sm:$0xf] %v2995_v58  ;;  %v5646_v21 = vld [vmem:[#allocation4 + $0x90] sm:$0xf]  ;;  %v2999_v60 = vsel %vm7251_vm3, %v5553_v46, %v2998_v29  ;;  %v2806_v17 = vld [vmem:[#allocation3 + $0x24] sm:$0x1]  ;;  %4508 = vmatpush.bf16.msra.mxu2 %v6296_v12  ;;  %v3077_v27 = vor.u32 %v7361_v54, %v7359_v8 }
 0x221   : > { %v2776_v6 = vsel %vm7298_vm6, %v2712_v4, %v2775_v51  ;;  %v2779_v56 = vsel %vm7152_vm14, %v2713_v43, %v2778_v62  ;;  %2936 = vst [vmem:[#allocation4 + $0x70] sm:$0xf] %v2868_v36  ;;  %v7428_v2 = vld [vmem:[#allocation3 + $0xc] sm:$0x1]  ;;  %v2807_v26 = vld [vmem:[#allocation3 + $0x28] sm:$0xf] }
 0x222   : > { %2777 = vst [vmem:[#allocation3 + $0x40] sm:$0xf] %v2776_v6  ;;  %v2808_v16 = vld [vmem:[#allocation3 + $0x2c] sm:$0x1]  ;;  %v2870_v31 = vshrl.u32 %v2805_v0, 16  ;;  %v2873_v49 = vshll.u32 %v2805_v0, 16 }
 0x223   : > { %2780 = vst [vmem:[#allocation3 + $0x44] sm:$0x1] %v2779_v56  ;;  %v6219_v52 = vld [vmem:[#allocation4 + $0xb0] sm:$0xf0]  ;;  %v2879_v13 = vshll.u32 %v2806_v17, 16  ;;  %v2884_v35 = vshrl.u32 %v2807_v26, 16  ;;  %4481 = vmatpush.bf16.msra.mxu1 %v6286_v63 }
 0x224   : > { %v5647_v15 = vor.u32 %v6219_v52, %v5646_v21  ;;  %3021 = vst [vmem:[#allocation4 + $0xbc] sm:$0xf] %v2999_v60  ;;  %v2887_v25 = vshll.u32 %v2807_v26, 16  ;;  %v6280_v30 = vld [vmem:[%s7825_s3 + $0x178] sm:$0xff]  ;;  %v7439_v51 = vrot.slane %v3312_v23, 4  ;;  %v2872_v38 = vrot.slane %v2870_v31, 4 }
 0x225   : > { %3036 = vst [vmem:[#allocation4 + $0x9c] sm:$0xf] %v3028_v53  ;;  %v2875_v8 = vrot.slane %v2873_v49, 5  ;;  %v6206_v54 = vld [vmem:[#allocation4 + $0x4c] sm:$0xf]  ;;  %v2886_v34 = vrot.slane %v2884_v35, 4  ;;  %4450 = vmatpush.bf16.msra.mxu0 %v6280_v30 }
 0x226   : > { %4323 = vmatmul.bf16.gmra.mxu3 %v5647_v15  ;;  %3037 = vst [vmem:[#allocation4 + $0xc0] sm:$0xf] %v3029_v28  ;;  %v2889_v10 = vrot.slane %v2887_v25, 5  ;;  %v2893_v5 = vshll.u32 %v2808_v16, 16  ;;  %v7445_v45 = vrot.slane %v3063_v44, 4  ;;  %v2881_v19 = vrot.slane %v2879_v13, 5 }
 0x227   : > { %v2876_v22 = vor.u32 %v2875_v8, %v2872_v38  ;;  %v6295_v23 = vld [vmem:[%s7825_s3 + $0x1f0] sm:$0xff]  ;;  %v3066_v9 = vshll.u32 %v7428_v2, 16  ;;  %v7454_v50 = vrot.slane %v3077_v27, 4  ;;  %v5654_v29 = vld [vmem:[#allocation4 + $0x98] sm:$0xf]  ;;  %v6285_v6 = vld [vmem:[%s7825_s3 + $0x1a0] sm:$0xff] }
 0x228   : > { %v5612_v62 = vld [vmem:[#allocation4 + $0x6c] sm:$0xf0]  ;;  %v2890_v40 = vor.u32 %v2889_v10, %v2886_v34  ;;  %v2895_v46 = vrot.slane %v2893_v5, 5  ;;  %v6279_v4 = vld [vmem:[%s7825_s3 + $0x170] sm:$0xff]  ;;  %4509 = vmatpush.bf16.msra.mxu2 %v6295_v23  ;;  %v2788_v53 = vld [vmem:[#allocation3 + $0x38] sm:$0xf]  ;;  %4482 = vmatpush.bf16.msra.mxu1 %v6285_v6 }
 0x229   : > { %v2787_v43 = vld [vmem:[#allocation3 + $0x30] sm:$0xf]  ;;  %v5615_v58 = vor.u32 %v6206_v54, %v5612_v62  ;;  %v2877_v36 = vrot.slane %v2876_v22, 4  ;;  %v6266_v24 = vld [vmem:[%s7825_s3 + $0x108] sm:$0xff]  ;;  %4451 = vmatpush.bf16.msra.mxu0 %v6279_v4  ;;  %2796 = vst [vmem:[#allocation4 + $0xfc] sm:$0xf] %v2788_v53 }
 0x22a   : > { %2795 = vst [vmem:[#allocation4 + $0xd8] sm:$0xf] %v2787_v43  ;;  %v2891_v12 = vrot.slane %v2890_v40, 4  ;;  %v6294_v56 = vld [vmem:[%s7825_s3 + $0x1e8] sm:$0xff]  ;;  %4427 = vmatpush.bf16.msrb.mxu3 %v6266_v24  ;;  %v2953_v0 = vld [vmem:[#allocation3 + $0x30] sm:$0xe] }
 0x22b   : > { %v6278_v21 = vld [vmem:[%s7825_s3 + $0x168] sm:$0xff]  ;;  %4347 = vmatmul.bf16.gmra.mxu0 %v5615_v58  ;;  %v2882_v28 = vsel %vm6589_vm2, %v2877_v36, %v2881_v19  ;;  %v2954_v17 = vld [vmem:[#allocation3 + $0x34] sm:$0x1]  ;;  %v2955_v52 = vld [vmem:[#allocation3 + $0x38] sm:$0xe]  ;;  %v5554_v15 = vrot.slane %v2953_v0, 9 }
 0x22c   : > { %v6220_v60 = vld [vmem:[#allocation4 + $0xb8] sm:$0xf0]  ;;  %v2896_v44 = vsel %vm6589_vm2, %v2891_v12, %v2895_v46  ;;  %2937 = vst [vmem:[#allocation4 + $0x94] sm:$0xf] %v2882_v28  ;;  %4510 = vmatpush.bf16.msra.mxu2 %v6294_v56  ;;  %v2956_v49 = vld [vmem:[#allocation3 + $0x3c] sm:$0x1] }
 0x22d   : > { %v5655_v26 = vor.u32 %v6220_v60, %v5654_v29  ;;  %v6216_v16 = vld [vmem:[#allocation4 + $0x9c] sm:$0xf]  ;;  %v5656_v31 = vld [vmem:[#allocation4 + $0xbc] sm:$0xf0]  ;;  %2938 = vst [vmem:[#allocation4 + $0xb8] sm:$0xf] %v2896_v44  ;;  %4452 = vmatpush.bf16.msra.mxu0 %v6278_v21 }
 0x22e   : > { %v5659_v27 = vor.u32 %v6216_v16, %v5656_v31  ;;  %v3002_v13 = vrot.slane %v2954_v17, 5  ;;  %v5555_v35 = vrot.slane %v2955_v52, 9  ;;  %v6284_v25 = vld [vmem:[%s7825_s3 + $0x198] sm:$0xff]  ;;  %v6293_v30 = vld [vmem:[%s7825_s3 + $0x1e0] sm:$0xff]  ;;  %v3006_v8 = vrot.slane %v2956_v49, 5  ;;  %v6283_v19 = vld [vmem:[%s7825_s3 + $0x190] sm:$0xff] }
 0x22f   : > { %4381 = vmatmul.bf16.gmra.mxu1 %v5655_v26  ;;  %v6277_v38 = vld [vmem:[%s7825_s3 + $0x160] sm:$0xff]  ;;  %v3030_v54 = vld [vmem:[#allocation3 + $0x38] sm:$0xf]  ;;  %v2809_v40 = vld [vmem:[#allocation3 + $0x30] sm:$0xf]  ;;  %v3068_v26 = vrot.slane %v3066_v9, 5  ;;  %v3304_v16 = vor.u32 %v7371_v47, %v7363_v18 }
 0x230   : > { %v3031_v34 = vld [vmem:[#allocation3 + $0x40] sm:$0xf]  ;;  %4410 = vmatmul.bf16.gmra.mxu2 %v5659_v27  ;;  %v3003_v22 = vsel %vm7251_vm3, %v5554_v15, %v3002_v13  ;;  %3038 = vst [vmem:[#allocation4 + $0xe4] sm:$0xf] %v3030_v54  ;;  %v6292_v63 = vld [vmem:[%s7825_s3 + $0x1d8] sm:$0xff]  ;;  %v3007_v62 = vsel %vm7251_vm3, %v5555_v35, %v3006_v8  ;;  %4483 = vmatpush.bf16.msra.mxu1 %v6284_v25  ;;  %v2898_v24 = vshrl.u32 %v2809_v40, 16 }
 0x231   : > { %v6265_v10 = vld [vmem:[%s7825_s3 + $0x100] sm:$0xff]  ;;  %v5682_v5 = vld [vmem:[#allocation4 + $0xd8] sm:$0xf]  ;;  %v6228_v23 = vld [vmem:[#allocation4 + $0xf8] sm:$0xf0]  ;;  %4511 = vmatpush.bf16.msra.mxu2 %v6293_v30  ;;  %4453 = vmatpush.bf16.msra.mxu0 %v6277_v38  ;;  %v2901_v12 = vshll.u32 %v2809_v40, 16  ;;  %v3069_v2 = vsel %vm6589_vm2, %v7445_v45, %v3068_v26 }
 0x232   : > { %3022 = vst [vmem:[#allocation4 + $0xe0] sm:$0xf] %v3003_v22  ;;  %v3043_v46 = vld [vmem:[#allocation3 + $0x14] sm:$0x1]  ;;  %v5683_v4 = vor.u32 %v6228_v23, %v5682_v5  ;;  %4428 = vmatpush.bf16.msrb.mxu3 %v6265_v10  ;;  %v2811_v58 = vld [vmem:[#allocation3 + $0x38] sm:$0xf] }
 0x233   : > { %3023 = vst [vmem:[#allocation4 + $0x104] sm:$0xf] %v3007_v62  ;;  %v2810_v43 = vld [vmem:[#allocation3 + $0x34] sm:$0x1]  ;;  %v6215_v29 = vld [vmem:[#allocation4 + $0x94] sm:$0xf] }
 0x234   : > { %3039 = vst [vmem:[#allocation4 + $0x108] sm:$0xf] %v3031_v34  ;;  %v2812_v36 = vld [vmem:[#allocation3 + $0x3c] sm:$0x1]  ;;  %v5648_v53 = vld [vmem:[#allocation4 + $0xb4] sm:$0xf0]  ;;  %4484 = vmatpush.bf16.msra.mxu1 %v6283_v19  ;;  %v3318_v34 = vor.u32 %v7443_v7, %v7439_v51 }
 0x235   : > { %v2907_v6 = vshll.u32 %v2810_v43, 16  ;;  %v2912_v56 = vshrl.u32 %v2811_v58, 16  ;;  %v2915_v21 = vshll.u32 %v2811_v58, 16  ;;  %v2921_v60 = vshll.u32 %v2812_v36, 16  ;;  %4512 = vmatpush.bf16.msra.mxu2 %v6292_v63  ;;  %v6276_v28 = vld [vmem:[%s7825_s3 + $0x158] sm:$0xff]  ;;  %v6282_v0 = vld [vmem:[%s7825_s3 + $0x188] sm:$0xff] }
 0x236   : > { %v6291_v17 = vld [vmem:[%s7825_s3 + $0x1d0] sm:$0xff]  ;;  %v5651_v44 = vor.u32 %v6215_v29, %v5648_v53  ;;  %4328 = vmatmul.bf16.gmra.mxu3 %v5683_v4  ;;  %v2900_v52 = vrot.slane %v2898_v24, 4  ;;  %v2903_v31 = vrot.slane %v2901_v12, 5  ;;  %v3284_v15 = vld [vmem:[#allocation3 + $0x1c] sm:$0x1]  ;;  %4454 = vmatpush.bf16.msra.mxu0 %v6276_v28  ;;  %v3080_v9 = vshll.u32 %v3043_v46, 16 }
 0x237   : > { %v2914_v49 = vrot.slane %v2912_v56, 4  ;;  %v3282_v27 = vld [vmem:[#allocation3 + $0x14] sm:$0x1]  ;;  %v2909_v13 = vrot.slane %v2907_v6, 5  ;;  %v2917_v35 = vrot.slane %v2915_v21, 5  ;;  %v6304_v18 = vld [vmem:[%s7825_s3 + $0x238] sm:$0xff] }
 0x238   : > { %v6275_v25 = vld [vmem:[%s7825_s3 + $0x150] sm:$0xff]  ;;  %v2904_v38 = vor.u32 %v2903_v31, %v2900_v52  ;;  %v2923_v8 = vrot.slane %v2921_v60, 5  ;;  %3176 = vst [vmem:[#allocation4 + $0x10] sm:$0xf] %v3069_v2  ;;  %v6281_v54 = vld [vmem:[%s7825_s3 + $0x180] sm:$0xff]  ;;  %4485 = vmatpush.bf16.msra.mxu1 %v6282_v0  ;;  %v3082_v22 = vrot.slane %v3080_v9, 5  ;;  %4537 = vmatpush.bf16.msra.mxu3 %v6304_v18 }
 0x239   : > { %v5690_v47 = vld [vmem:[#allocation4 + $0xe0] sm:$0xf]  ;;  %v6225_v30 = vld [vmem:[#allocation4 + $0xe4] sm:$0xf]  ;;  %v3184_v10 = vld [vmem:[#allocation3 + $0x8] sm:$0xe]  ;;  %v2918_v45 = vor.u32 %v2917_v35, %v2914_v49  ;;  %4513 = vmatpush.bf16.msra.mxu2 %v6291_v17 }
 0x23a   : > { %v6229_v5 = vld [vmem:[#allocation4 + $0x100] sm:$0xf0]  ;;  %v6290_v19 = vld [vmem:[%s7825_s3 + $0x1c8] sm:$0xff]  ;;  %v3265_v63 = vld [vmem:[#allocation3 + $0x10] sm:$0xf]  ;;  %v2905_v46 = vrot.slane %v2904_v38, 4  ;;  %v3083_v58 = vsel %vm6589_vm2, %v7454_v50, %v3082_v22  ;;  %4455 = vmatpush.bf16.msra.mxu0 %v6275_v25 }
 0x23b   : > { %v3186_v23 = vld [vmem:[#allocation3 + $0x10] sm:$0xe]  ;;  %v5691_v62 = vor.u32 %v6229_v5, %v5690_v47  ;;  %v5692_v40 = vld [vmem:[#allocation4 + $0x104] sm:$0xf0]  ;;  %v6274_v51 = vld [vmem:[%s7825_s3 + $0x148] sm:$0xff]  ;;  %4352 = vmatmul.bf16.gmra.mxu0 %v5651_v44  ;;  %v2919_v43 = vrot.slane %v2918_v45, 4 }
 0x23c   : > { %v3266_v7 = vld [vmem:[#allocation3 + $0x18] sm:$0xf]  ;;  %v5695_v4 = vor.u32 %v6225_v30, %v5692_v40  ;;  %3273 = vst [vmem:[#allocation4 + $0x18] sm:$0xf] %v3265_v63  ;;  %v6289_v29 = vld [vmem:[%s7825_s3 + $0x1c0] sm:$0xff]  ;;  %v3305_v36 = vrot.slane %v3304_v16, 4  ;;  %v2910_v24 = vsel %vm6589_vm2, %v2905_v46, %v2909_v13  ;;  %4486 = vmatpush.bf16.msra.mxu1 %v6281_v54 }
 0x23d   : > { %v6303_v53 = vld [vmem:[%s7825_s3 + $0x230] sm:$0xff]  ;;  %3177 = vst [vmem:[#allocation4 + $0x34] sm:$0xf] %v3083_v58  ;;  %v3307_v12 = vshll.u32 %v3282_v27, 16  ;;  %v3319_v6 = vrot.slane %v3318_v34, 4  ;;  %v3321_v56 = vshll.u32 %v3284_v15, 16  ;;  %v2924_v21 = vsel %vm6589_vm2, %v2919_v43, %v2923_v8  ;;  %4514 = vmatpush.bf16.msra.mxu2 %v6290_v19 }
 0x23e   : > { %v6302_v50 = vld [vmem:[%s7825_s3 + $0x228] sm:$0xff]  ;;  %2939 = vst [vmem:[#allocation4 + $0xdc] sm:$0xf] %v2910_v24  ;;  %v3187_v28 = vld [vmem:[#allocation3 + $0x14] sm:$0x1]  ;;  %4538 = vmatpush.bf16.msra.mxu3 %v6303_v53  ;;  %v5556_v26 = vrot.slane %v3184_v10, 9  ;;  %4456 = vmatpush.bf16.msra.mxu0 %v6274_v51 }
 0x23f   : > { %v3185_v60 = vld [vmem:[#allocation3 + $0xc] sm:$0x1]  ;;  %4386 = vmatmul.bf16.gmra.mxu1 %v5691_v62  ;;  %2940 = vst [vmem:[#allocation4 + $0x100] sm:$0xf] %v2924_v21  ;;  %v3309_v0 = vrot.slane %v3307_v12, 5  ;;  %v3323_v17 = vrot.slane %v3321_v56, 5 }
 0x240   : > { %v3218_v16 = vrot.slane %v3185_v60, 5  ;;  %3274 = vst [vmem:[#allocation4 + $0x3c] sm:$0xf] %v3266_v7  ;;  %v6273_v44 = vld [vmem:[%s7825_s3 + $0x140] sm:$0xff]  ;;  %v5557_v52 = vrot.slane %v3186_v23, 9  ;;  %v3222_v31 = vrot.slane %v3187_v28, 5  ;;  %4415 = vmatmul.bf16.gmra.mxu2 %v5695_v4 }
 0x241   : > { %v3310_v49 = vsel %vm6589_vm2, %v3305_v36, %v3309_v0  ;;  %v3324_v27 = vsel %vm6589_vm2, %v3319_v6, %v3323_v17  ;;  %v3044_v13 = vld [vmem:[#allocation3 + $0x18] sm:$0xf]  ;;  %v3045_v35 = vld [vmem:[#allocation3 + $0x1c] sm:$0x1]  ;;  %v3046_v25 = vld [vmem:[#allocation3 + $0x20] sm:$0xf]  ;;  %4515 = vmatpush.bf16.msra.mxu2 %v6289_v29 }
 0x242   : > { %v3219_v15 = vsel %vm7251_vm3, %v5556_v26, %v3218_v16  ;;  %v5590_v2 = vld [vmem:[#allocation4 + $0x10] sm:$0xf]  ;;  %3417 = vst [vmem:[#allocation4 + $0x1c] sm:$0xf] %v3310_v49  ;;  %v3223_v9 = vsel %vm7251_vm3, %v5557_v52, %v3222_v31  ;;  %v3085_v18 = vshrl.u32 %v3044_v13, 16  ;;  %v3088_v47 = vshll.u32 %v3044_v13, 16  ;;  %4539 = vmatpush.bf16.msra.mxu3 %v6302_v50  ;;  %4457 = vmatpush.bf16.msra.mxu0 %v6273_v44 }
 0x243   : > { %3418 = vst [vmem:[#allocation4 + $0x40] sm:$0xf] %v3324_v27  ;;  %v3047_v30 = vld [vmem:[#allocation3 + $0x24] sm:$0x1]  ;;  %v3094_v38 = vshll.u32 %v3045_v35, 16  ;;  %v3099_v8 = vshrl.u32 %v3046_v25, 16 }
 0x244   : > { %v6203_v54 = vld [vmem:[#allocation4 + $0x30] sm:$0xf0]  ;;  %3256 = vst [vmem:[#allocation4 + $0x14] sm:$0xf] %v3219_v15  ;;  %v3087_v34 = vrot.slane %v3085_v18, 4  ;;  %v3090_v10 = vrot.slane %v3088_v47, 5 }
 0x245   : > { %v5591_v5 = vor.u32 %v6203_v54, %v5590_v2  ;;  %3257 = vst [vmem:[#allocation4 + $0x38] sm:$0xf] %v3223_v9  ;;  %v3101_v45 = vrot.slane %v3099_v8, 4  ;;  %v3102_v63 = vshll.u32 %v3046_v25, 16  ;;  %v3108_v23 = vshll.u32 %v3047_v30, 16  ;;  %v6301_v58 = vld [vmem:[%s7825_s3 + $0x220] sm:$0xff] }
 0x246   : > { %v5684_v22 = vld [vmem:[#allocation4 + $0xfc] sm:$0xf0]  ;;  %v3091_v19 = vor.u32 %v3090_v10, %v3087_v34  ;;  %v3267_v62 = vld [vmem:[#allocation3 + $0x20] sm:$0xf]  ;;  %v6224_v40 = vld [vmem:[#allocation4 + $0xdc] sm:$0xf]  ;;  %4540 = vmatpush.bf16.msra.mxu3 %v6301_v58 }
 0x247   : > { %4429 = vmatmul.bf16.vlgmr.msrb.gmra.mxu3 %v5591_v5  ;;  %v3268_v46 = vld [vmem:[#allocation3 + $0x28] sm:$0xf]  ;;  %3275 = vst [vmem:[#allocation4 + $0x60] sm:$0xf] %v3267_v62  ;;  %v5687_v51 = vor.u32 %v6224_v40, %v5684_v22  ;;  %v3096_v4 = vrot.slane %v3094_v38, 5  ;;  %v3104_v43 = vrot.slane %v3102_v63, 5 }
 0x248   : > { %v3092_v7 = vrot.slane %v3091_v19, 4  ;;  %3276 = vst [vmem:[#allocation4 + $0x84] sm:$0xf] %v3268_v46  ;;  %v3285_v29 = vld [vmem:[#allocation3 + $0x20] sm:$0xf]  ;;  %v3110_v56 = vrot.slane %v3108_v23, 5 }
 0x249   : > { %v3286_v36 = vld [vmem:[#allocation3 + $0x24] sm:$0x1]  ;;  %v5598_v53 = vld [vmem:[#allocation4 + $0x18] sm:$0xf]  ;;  %v6204_v24 = vld [vmem:[#allocation4 + $0x38] sm:$0xf0]  ;;  %v3105_v6 = vor.u32 %v3104_v43, %v3101_v45 }
 0x24a   : > { %v3097_v12 = vsel %vm6589_vm2, %v3092_v7, %v3096_v4  ;;  %v3287_v50 = vld [vmem:[#allocation3 + $0x28] sm:$0xf]  ;;  %v3288_v21 = vld [vmem:[#allocation3 + $0x2c] sm:$0x1]  ;;  %v3326_v60 = vshrl.u32 %v3285_v29, 16  ;;  %v3329_v28 = vshll.u32 %v3285_v29, 16  ;;  %v5599_v52 = vor.u32 %v6204_v24, %v5598_v53 }
 0x24b   : > { %3178 = vst [vmem:[#allocation4 + $0x58] sm:$0xf] %v3097_v12  ;;  %4357 = vmatmul.bf16.gmra.mxu0 %v5687_v51  ;;  %v5600_v0 = vld [vmem:[#allocation4 + $0x3c] sm:$0xf0]  ;;  %v3106_v17 = vrot.slane %v3105_v6, 4  ;;  %v3335_v26 = vshll.u32 %v3286_v36, 16 }
 0x24c   : > { %v3340_v16 = vshrl.u32 %v3287_v50, 16  ;;  %v3343_v44 = vshll.u32 %v3287_v50, 16  ;;  %v3328_v31 = vrot.slane %v3326_v60, 4  ;;  %v3331_v49 = vrot.slane %v3329_v28, 5  ;;  %v3188_v27 = vld [vmem:[#allocation3 + $0x18] sm:$0xe] }
 0x24d   : > { %v6300_v15 = vld [vmem:[%s7825_s3 + $0x218] sm:$0xff]  ;;  %v6200_v13 = vld [vmem:[#allocation4 + $0x1c] sm:$0xf]  ;;  %v3111_v35 = vsel %vm6589_vm2, %v3106_v17, %v3110_v56  ;;  %v3349_v9 = vshll.u32 %v3288_v21, 16  ;;  %v3337_v30 = vrot.slane %v3335_v26, 5  ;;  %v5558_v38 = vrot.slane %v3188_v27, 9 }
 0x24e   : > { %v3342_v25 = vrot.slane %v3340_v16, 4  ;;  %v3345_v2 = vrot.slane %v3343_v44, 5  ;;  %v5603_v18 = vor.u32 %v6200_v13, %v5600_v0  ;;  %3179 = vst [vmem:[#allocation4 + $0x7c] sm:$0xf] %v3111_v35  ;;  %v3332_v47 = vor.u32 %v3331_v49, %v3328_v31  ;;  %4541 = vmatpush.bf16.msra.mxu3 %v6300_v15  ;;  %v3189_v54 = vld [vmem:[#allocation3 + $0x1c] sm:$0x1] }
 0x24f   : > { %4487 = vmatmul.bf16.vlgmr.msra.gmra.mxu1 %v5599_v52  ;;  %v3190_v34 = vld [vmem:[#allocation3 + $0x20] sm:$0xe]  ;;  %v3191_v10 = vld [vmem:[#allocation3 + $0x24] sm:$0x1]  ;;  %v3226_v45 = vrot.slane %v3189_v54, 5  ;;  %v3351_v62 = vrot.slane %v3349_v9, 5 }
 0x250   : > { %v3346_v8 = vor.u32 %v3345_v2, %v3342_v25  ;;  %4516 = vmatmul.bf16.vlgmr.msra.gmra.mxu2 %v5603_v18  ;;  %v3333_v5 = vrot.slane %v3332_v47, 4  ;;  %v5559_v22 = vrot.slane %v3190_v34, 9  ;;  %v3230_v19 = vrot.slane %v3191_v10, 5  ;;  %v3048_v63 = vld [vmem:[#allocation3 + $0x28] sm:$0xf]  ;;  %v6299_v36 = vld [vmem:[%s7825_s3 + $0x210] sm:$0xff] }
 0x251   : > { %v3049_v40 = vld [vmem:[#allocation3 + $0x2c] sm:$0x1]  ;;  %v3113_v46 = vshrl.u32 %v3048_v63, 16  ;;  %v3227_v7 = vsel %vm7251_vm3, %v5558_v38, %v3226_v45  ;;  %v3050_v43 = vld [vmem:[#allocation3 + $0x30] sm:$0xf]  ;;  %v3116_v29 = vshll.u32 %v3048_v63, 16 }
 0x252   : > { %v3347_v23 = vrot.slane %v3346_v8, 4  ;;  %v3338_v51 = vsel %vm6589_vm2, %v3333_v5, %v3337_v30  ;;  %v3231_v4 = vsel %vm7251_vm3, %v5559_v22, %v3230_v19  ;;  %v3051_v58 = vld [vmem:[#allocation3 + $0x34] sm:$0x1]  ;;  %v3122_v12 = vshll.u32 %v3049_v40, 16  ;;  %v5592_v56 = vld [vmem:[#allocation4 + $0x34] sm:$0xf0]  ;;  %4542 = vmatpush.bf16.msra.mxu3 %v6299_v36 }
 0x253   : > { %3419 = vst [vmem:[#allocation4 + $0x64] sm:$0xf] %v3338_v51  ;;  %v3115_v24 = vrot.slane %v3113_v46, 4  ;;  %v3127_v6 = vshrl.u32 %v3050_v43, 16  ;;  %v5626_v50 = vld [vmem:[#allocation4 + $0x58] sm:$0xf] }
 0x254   : > { %v3352_v53 = vsel %vm6589_vm2, %v3347_v23, %v3351_v62  ;;  %v3118_v21 = vrot.slane %v3116_v29, 5  ;;  %v3130_v60 = vshll.u32 %v3050_v43, 16  ;;  %3258 = vst [vmem:[#allocation4 + $0x5c] sm:$0xf] %v3227_v7  ;;  %v3136_v17 = vshll.u32 %v3051_v58, 16 }
 0x255   : > { %3420 = vst [vmem:[#allocation4 + $0x88] sm:$0xf] %v3352_v53  ;;  %v6212_v28 = vld [vmem:[#allocation4 + $0x78] sm:$0xf0]  ;;  %v3129_v0 = vrot.slane %v3127_v6, 4  ;;  %v3124_v52 = vrot.slane %v3122_v12, 5 }
 0x256   : > { %v6199_v26 = vld [vmem:[#allocation4 + $0x14] sm:$0xf]  ;;  %v5627_v16 = vor.u32 %v6212_v28, %v5626_v50  ;;  %3259 = vst [vmem:[#allocation4 + $0x80] sm:$0xf] %v3231_v4  ;;  %v3119_v44 = vor.u32 %v3118_v21, %v3115_v24  ;;  %v3132_v31 = vrot.slane %v3130_v60, 5  ;;  %v3138_v30 = vrot.slane %v3136_v17, 5 }
 0x257   : > { %v3269_v49 = vld [vmem:[#allocation3 + $0x30] sm:$0xf]  ;;  %v3270_v27 = vld [vmem:[#allocation3 + $0x38] sm:$0xf]  ;;  %v3290_v25 = vld [vmem:[#allocation3 + $0x34] sm:$0x1]  ;;  %v5595_v9 = vor.u32 %v6199_v26, %v5592_v56 }
 0x258   : > { %3277 = vst [vmem:[#allocation4 + $0xa8] sm:$0xf] %v3269_v49  ;;  %v3289_v15 = vld [vmem:[#allocation3 + $0x30] sm:$0xf]  ;;  %4434 = vmatmul.bf16.gmra.mxu3 %v5627_v16  ;;  %v3120_v13 = vrot.slane %v3119_v44, 4  ;;  %v3133_v35 = vor.u32 %v3132_v31, %v3129_v0  ;;  %v3363_v63 = vshll.u32 %v3290_v25, 16 }
 0x259   : > { %3278 = vst [vmem:[#allocation4 + $0xcc] sm:$0xf] %v3270_v27  ;;  %v3354_v2 = vshrl.u32 %v3289_v15, 16  ;;  %v5634_v18 = vld [vmem:[#allocation4 + $0x60] sm:$0xf]  ;;  %v3357_v8 = vshll.u32 %v3289_v15, 16 }
 0x25a   : > { %v6213_v47 = vld [vmem:[#allocation4 + $0x80] sm:$0xf0]  ;;  %v3291_v38 = vld [vmem:[#allocation3 + $0x38] sm:$0xf]  ;;  %v3125_v54 = vsel %vm6589_vm2, %v3120_v13, %v3124_v52  ;;  %v3134_v34 = vrot.slane %v3133_v35, 4  ;;  %v6298_v24 = vld [vmem:[%s7825_s3 + $0x208] sm:$0xff] }
 0x25b   : > { %v3292_v10 = vld [vmem:[#allocation3 + $0x3c] sm:$0x1]  ;;  %v3356_v5 = vrot.slane %v3354_v2, 4  ;;  %v3368_v45 = vshrl.u32 %v3291_v38, 16  ;;  %4458 = vmatmul.bf16.vlgmr.msra.gmra.mxu0 %v5595_v9  ;;  %3180 = vst [vmem:[#allocation4 + $0xa0] sm:$0xf] %v3125_v54  ;;  %v5635_v23 = vor.u32 %v6213_v47, %v5634_v18  ;;  %4543 = vmatpush.bf16.msra.mxu3 %v6298_v24 }
 0x25c   : > { %v5636_v22 = vld [vmem:[#allocation4 + $0x84] sm:$0xf0]  ;;  %v3359_v19 = vrot.slane %v3357_v8, 5  ;;  %v3139_v62 = vsel %vm6589_vm2, %v3134_v34, %v3138_v30  ;;  %v3371_v46 = vshll.u32 %v3291_v38, 16  ;;  %v3192_v51 = vld [vmem:[#allocation3 + $0x28] sm:$0xe] }
 0x25d   : > { %v3370_v40 = vrot.slane %v3368_v45, 4  ;;  %v6209_v7 = vld [vmem:[#allocation4 + $0x64] sm:$0xf]  ;;  %3181 = vst [vmem:[#allocation4 + $0xc4] sm:$0xf] %v3139_v62  ;;  %v3377_v29 = vshll.u32 %v3292_v10, 16 }
 0x25e   : > { %v3360_v4 = vor.u32 %v3359_v19, %v3356_v5  ;;  %v5639_v43 = vor.u32 %v6209_v7, %v5636_v22  ;;  %v3373_v58 = vrot.slane %v3371_v46, 5  ;;  %v3193_v36 = vld [vmem:[#allocation3 + $0x2c] sm:$0x1]  ;;  %v5560_v53 = vrot.slane %v3192_v51, 9  ;;  %v3194_v56 = vld [vmem:[#allocation3 + $0x30] sm:$0xe] }
 0x25f   : > { %4492 = vmatmul.bf16.gmra.mxu1 %v5635_v23  ;;  %v3365_v6 = vrot.slane %v3363_v63, 5  ;;  %v3195_v21 = vld [vmem:[#allocation3 + $0x34] sm:$0x1]  ;;  %v3234_v60 = vrot.slane %v3193_v36, 5  ;;  %v5561_v28 = vrot.slane %v3194_v56, 9  ;;  %v3379_v49 = vrot.slane %v3377_v29, 5 }
 0x260   : > { %v3361_v12 = vrot.slane %v3360_v4, 4  ;;  %4521 = vmatmul.bf16.gmra.mxu2 %v5639_v43  ;;  %v3374_v50 = vor.u32 %v3373_v58, %v3370_v40  ;;  %v3052_v0 = vld [vmem:[#allocation3 + $0x38] sm:$0xf]  ;;  %v3238_v26 = vrot.slane %v3195_v21, 5  ;;  %v3053_v16 = vld [vmem:[#allocation3 + $0x3c] sm:$0x1] }
 0x261   : > { %v3054_v44 = vld [vmem:[#allocation3 + $0x40] sm:$0xf]  ;;  %v3141_v52 = vshrl.u32 %v3052_v0, 16  ;;  %v3235_v27 = vsel %vm7251_vm3, %v5560_v53, %v3234_v60  ;;  %v3144_v15 = vshll.u32 %v3052_v0, 16  ;;  %v3055_v35 = vld [vmem:[#allocation3 + $0x44] sm:$0x1] }
 0x262   : > { %v3366_v17 = vsel %vm6589_vm2, %v3361_v12, %v3365_v6  ;;  %v3375_v31 = vrot.slane %v3374_v50, 4  ;;  %v3239_v13 = vsel %vm7251_vm3, %v5561_v28, %v3238_v26  ;;  %3260 = vst [vmem:[#allocation4 + $0xa4] sm:$0xf] %v3235_v27  ;;  %v3150_v2 = vshll.u32 %v3053_v16, 16  ;;  %v5628_v9 = vld [vmem:[#allocation4 + $0x7c] sm:$0xf0] }
 0x263   : > { %3421 = vst [vmem:[#allocation4 + $0xac] sm:$0xf] %v3366_v17  ;;  %v3143_v25 = vrot.slane %v3141_v52, 4  ;;  %v3146_v30 = vrot.slane %v3144_v15, 5  ;;  %v3155_v38 = vshrl.u32 %v3054_v44, 16  ;;  %v3158_v54 = vshll.u32 %v3054_v44, 16 }
 0x264   : > { %v6221_v18 = vld [vmem:[#allocation4 + $0xc0] sm:$0xf0]  ;;  %v3380_v47 = vsel %vm6589_vm2, %v3375_v31, %v3379_v49  ;;  %3261 = vst [vmem:[#allocation4 + $0xc8] sm:$0xf] %v3239_v13  ;;  %v5662_v8 = vld [vmem:[#allocation4 + $0xa0] sm:$0xf] }
 0x265   : > { %3422 = vst [vmem:[#allocation4 + $0xd0] sm:$0xf] %v3380_v47  ;;  %v6297_v34 = vld [vmem:[%s7825_s3 + $0x200] sm:$0xff]  ;;  %v6208_v10 = vld [vmem:[#allocation4 + $0x5c] sm:$0xf]  ;;  %v5663_v5 = vor.u32 %v6221_v18, %v5662_v8  ;;  %v3147_v45 = vor.u32 %v3146_v30, %v3143_v25  ;;  %v3157_v22 = vrot.slane %v3155_v38, 4 }
 0x266   : > { %v2607_v19 = vld [vmem:[#allocation3 + $0x48] sm:$0x1]  ;;  %v3271_v63 = vld [vmem:[#allocation3 + $0x40] sm:$0xf]  ;;  %v3160_v23 = vrot.slane %v3158_v54, 5  ;;  %v3164_v62 = vshll.u32 %v3055_v35, 16  ;;  %4544 = vmatpush.bf16.msra.mxu3 %v6297_v34  ;;  %v5631_v43 = vor.u32 %v6208_v10, %v5628_v9 }
 0x267   : > { %v2608_v40 = vsel %vm7152_vm14, 0, %v2607_v19  ;;  %3279 = vst [vmem:[#allocation4 + $0xf0] sm:$0xf] %v3271_v63  ;;  %v3148_v46 = vrot.slane %v3147_v45, 4  ;;  %v3152_v51 = vrot.slane %v3150_v2, 5 }
 0x268   : > { %4439 = vmatmul.bf16.gmra.mxu3 %v5663_v5  ;;  %2609 = vst [vmem:[#allocation3 + $0x48] sm:$0x1] %v2608_v40  ;;  %v3293_v7 = vld [vmem:[#allocation3 + $0x40] sm:$0xf]  ;;  %v7598_v4 = vld [vmem:[#allocation3 + $0x10] sm:$0xe]  ;;  %v3161_v29 = vor.u32 %v3160_v23, %v3157_v22 }
 0x269   : > { %v6222_v58 = vld [vmem:[#allocation4 + $0xc8] sm:$0xf0]  ;;  %v3294_v36 = vld [vmem:[#allocation3 + $0x44] sm:$0x1]  ;;  %v3153_v53 = vsel %vm6589_vm2, %v3148_v46, %v3152_v51  ;;  %v3296_v24 = vld [vmem:[#allocation3 + $0x4c] sm:$0x1] }
 0x26a   : > { %v3382_v12 = vshrl.u32 %v3293_v7, 16  ;;  %v3385_v20 = vshll.u32 %v3293_v7, 16  ;;  %v3391_v6 = vshll.u32 %v3294_v36, 16  ;;  %v5670_v56 = vld [vmem:[#allocation4 + $0xa8] sm:$0xf]  ;;  %v3162_v50 = vrot.slane %v3161_v29, 4 }
 0x26b   : > { %4463 = vmatmul.bf16.gmra.mxu0 %v5631_v43  ;;  %v3166_v21 = vrot.slane %v3164_v62, 5  ;;  %3182 = vst [vmem:[#allocation4 + $0xe8] sm:$0xf] %v3153_v53  ;;  %v3427_v60 = vld [vmem:[#allocation3 + $0x18] sm:$0xe]  ;;  %v5671_v28 = vor.u32 %v6222_v58, %v5670_v56  ;;  %v5564_v16 = vrot.slane %v7598_v4, 9 }
 0x26c   : > { %v5672_v0 = vld [vmem:[#allocation4 + $0xcc] sm:$0xf0]  ;;  %v3384_v17 = vrot.slane %v3382_v12, 4  ;;  %v3387_v26 = vrot.slane %v3385_v20, 5  ;;  %v6218_v44 = vld [vmem:[#allocation4 + $0xac] sm:$0xf] }
 0x26d   : > { %v3167_v52 = vsel %vm6589_vm2, %v3162_v50, %v3166_v21  ;;  %v3393_v31 = vrot.slane %v3391_v6, 5  ;;  %v3405_v49 = vshll.u32 %v3296_v24, 16  ;;  %v3196_v27 = vld [vmem:[#allocation3 + $0x38] sm:$0xe]  ;;  %v5675_v15 = vor.u32 %v6218_v44, %v5672_v0  ;;  %v3197_v35 = vld [vmem:[#allocation3 + $0x3c] sm:$0x1] }
 0x26e   : > { %3183 = vst [vmem:[#allocation4 + $0x10c] sm:$0xf] %v3167_v52  ;;  %v3388_v13 = vor.u32 %v3387_v26, %v3384_v17  ;;  %v3198_v25 = vld [vmem:[#allocation3 + $0x40] sm:$0xe]  ;;  %v3199_v18 = vld [vmem:[#allocation3 + $0x44] sm:$0x1] }
 0x26f   : > { %4497 = vmatmul.bf16.gmra.mxu1 %v5671_v28  ;;  %v3272_v2 = vld [vmem:[#allocation3 + $0x48] sm:$0xf]  ;;  %v5562_v8 = vrot.slane %v3196_v27, 9  ;;  %v3242_v54 = vrot.slane %v3197_v35, 5  ;;  %v5563_v34 = vrot.slane %v3198_v25, 9  ;;  %v3246_v10 = vrot.slane %v3199_v18, 5 }
 0x270   : > { %v3295_v9 = vld [vmem:[#allocation3 + $0x48] sm:$0xf]  ;;  %4526 = vmatmul.bf16.gmra.mxu2 %v5675_v15  ;;  %3280 = vst [vmem:[#allocation4 + $0x114] sm:$0xf] %v3272_v2  ;;  %v3389_v47 = vrot.slane %v3388_v13, 4  ;;  %v5565_v45 = vrot.slane %v3427_v60, 9 }
 0x271   : > { %v3396_v30 = vshrl.u32 %v3295_v9, 16  ;;  %v3399_v38 = vshll.u32 %v3295_v9, 16  ;;  %v3426_v5 = vld [vmem:[#allocation3 + $0x14] sm:$0x1]  ;;  %v3407_v23 = vrot.slane %v3405_v49, 5  ;;  %v3243_v46 = vsel %vm7251_vm3, %v5562_v8, %v3242_v54  ;;  %v7623_v9 = vpop.f32.mrf.mxu3 }
 0x272   : > { %v3394_v22 = vsel %vm6589_vm2, %v3389_v47, %v3393_v31  ;;  %v3428_v62 = vld [vmem:[#allocation3 + $0x1c] sm:$0x1]  ;;  %v5698_v40 = vld [vmem:[#allocation4 + $0xe8] sm:$0xf]  ;;  %v3247_v51 = vsel %vm7251_vm3, %v5563_v34, %v3246_v10  ;;  %v3459_v7 = vrot.slane %v3426_v5, 5  ;;  %7850 = vst [vmem:[#allocation15_spill] sm:$0xff] %v7623_v9 }
 0x273   : > { %v3398_v19 = vrot.slane %v3396_v30, 4  ;;  %v3401_v63 = vrot.slane %v3399_v38, 5  ;;  %3423 = vst [vmem:[#allocation4 + $0xf4] sm:$0xf] %v3394_v22  ;;  %v3463_v4 = vrot.slane %v3428_v62, 5 }
 0x274   : > { %v3429_v43 = vld [vmem:[#allocation3 + $0x20] sm:$0xe]  ;;  %v5664_v58 = vld [vmem:[#allocation4 + $0xc4] sm:$0xf0]  ;;  %3262 = vst [vmem:[#allocation4 + $0xec] sm:$0xf] %v3243_v46  ;;  %v3460_v12 = vsel %vm7251_vm3, %v5564_v16, %v3459_v7 }
 0x275   : > { %v3402_v29 = vor.u32 %v3401_v63, %v3398_v19  ;;  %v3430_v36 = vld [vmem:[#allocation3 + $0x24] sm:$0x1]  ;;  %v3431_v53 = vld [vmem:[#allocation3 + $0x28] sm:$0xe]  ;;  %v6230_v24 = vld [vmem:[#allocation4 + $0x108] sm:$0xf0]  ;;  %v3464_v20 = vsel %vm7251_vm3, %v5565_v45, %v3463_v4 }
 0x276   : > { %3263 = vst [vmem:[#allocation4 + $0x110] sm:$0xf] %v3247_v51  ;;  %v3432_v6 = vld [vmem:[#allocation3 + $0x2c] sm:$0x1]  ;;  %v5699_v56 = vor.u32 %v6230_v24, %v5698_v40  ;;  %v5566_v21 = vrot.slane %v3429_v43, 9  ;;  %v3467_v60 = vrot.slane %v3430_v36, 5 }
 0x277   : > { %v3403_v50 = vrot.slane %v3402_v29, 4  ;;  %3497 = vst [vmem:[#allocation4 + $0x20] sm:$0xf] %v3460_v12  ;;  %v6217_v28 = vld [vmem:[#allocation4 + $0xa4] sm:$0xf]  ;;  %v5567_v0 = vrot.slane %v3431_v53, 9 }
 0x278   : > { %3498 = vst [vmem:[#allocation4 + $0x44] sm:$0xf] %v3464_v20  ;;  %v3471_v17 = vrot.slane %v3432_v6, 5  ;;  %4444 = vmatmul.bf16.gmra.mxu3 %v5699_v56  ;;  %v5706_v26 = vld [vmem:[#allocation4 + $0xf0] sm:$0xf]  ;;  %v3468_v16 = vsel %vm7251_vm3, %v5566_v21, %v3467_v60  ;;  %v5667_v49 = vor.u32 %v6217_v28, %v5664_v58  ;;  %v7635_v56 = vpop.f32.mrf.mxu0 }
 0x279   : > { %v3408_v44 = vsel %vm6589_vm2, %v3403_v50, %v3407_v23  ;;  %v3433_v52 = vld [vmem:[#allocation3 + $0x30] sm:$0xe]  ;;  %v3434_v31 = vld [vmem:[#allocation3 + $0x34] sm:$0x1]  ;;  %v6231_v27 = vld [vmem:[#allocation4 + $0x110] sm:$0xf0]  ;;  %v7637_v50 = vpop.f32.mrf.mxu1 }
 0x27a   : > { %3424 = vst [vmem:[#allocation4 + $0x118] sm:$0xf] %v3408_v44  ;;  %v3472_v15 = vsel %vm7251_vm3, %v5567_v0, %v3471_v17  ;;  %v5568_v13 = vrot.slane %v3433_v52, 9  ;;  %v3475_v35 = vrot.slane %v3434_v31, 5  ;;  %v3435_v25 = vld [vmem:[#allocation3 + $0x38] sm:$0xe]  ;;  %v5707_v18 = vor.u32 %v6231_v27, %v5706_v26 }
 0x27b   : > { %3499 = vst [vmem:[#allocation4 + $0x68] sm:$0xf] %v3468_v16  ;;  %4468 = vmatmul.bf16.gmra.mxu0 %v5667_v49  ;;  %v3436_v2 = vld [vmem:[#allocation3 + $0x3c] sm:$0x1]  ;;  %v5569_v47 = vrot.slane %v3435_v25, 9 }
 0x27c   : > { %3500 = vst [vmem:[#allocation4 + $0x8c] sm:$0xf] %v3472_v15  ;;  %v3476_v57 = vsel %vm7251_vm3, %v5568_v13, %v3475_v35  ;;  %v3479_v30 = vrot.slane %v3436_v2, 5  ;;  %v6227_v38 = vld [vmem:[#allocation4 + $0xf4] sm:$0xf] }
 0x27d   : > { %3501 = vst [vmem:[#allocation4 + $0xb0] sm:$0xf] %v3476_v57  ;;  %v3437_v10 = vld [vmem:[#allocation3 + $0x40] sm:$0xe]  ;;  %v3438_v5 = vld [vmem:[#allocation3 + $0x44] sm:$0x1] }
 0x27e   : > { %v3480_v8 = vsel %vm7251_vm3, %v5569_v47, %v3479_v30  ;;  %v3439_v22 = vld [vmem:[#allocation3 + $0x48] sm:$0xe]  ;;  %v3440_v19 = vld [vmem:[#allocation3 + $0x4c] sm:$0x1]  ;;  %v5570_v23 = vrot.slane %v3437_v10, 9  ;;  %v3483_v62 = vrot.slane %v3438_v5, 5 }
 0x27f   : > { %4502 = vmatmul.bf16.gmra.mxu1 %v5707_v18  ;;  %3502 = vst [vmem:[#allocation4 + $0xd4] sm:$0xf] %v3480_v8  ;;  %v6205_v45 = vld [vmem:[#allocation4 + $0x40] sm:$0xf0]  ;;  %v5571_v40 = vrot.slane %v3439_v22, 9  ;;  %v3487_v46 = vrot.slane %v3440_v19, 5 }
 0x280   : > { %v5606_v51 = vld [vmem:[#allocation4 + $0x20] sm:$0xf]  ;;  %v5700_v7 = vld [vmem:[#allocation4 + $0x10c] sm:$0xf0]  ;;  %v3484_v43 = vsel %vm7251_vm3, %v5570_v23, %v3483_v62  ;;  %v6226_v29 = vld [vmem:[#allocation4 + $0xec] sm:$0xf] }
 0x281   : > { %v5708_v54 = vld [vmem:[#allocation4 + $0x114] sm:$0xf0]  ;;  %v5607_v4 = vor.u32 %v6205_v45, %v5606_v51  ;;  %v3488_v58 = vsel %vm7251_vm3, %v5571_v40, %v3487_v46  ;;  %3503 = vst [vmem:[#allocation4 + $0xf8] sm:$0xf] %v3484_v43  ;;  %v5703_v36 = vor.u32 %v6226_v29, %v5700_v7 }
 0x282   : > { %v5711_v34 = vor.u32 %v6227_v38, %v5708_v54  ;;  %v7627_v63 = vpop.f32.mrf.mxu3  ;;  %3504 = vst [vmem:[#allocation4 + $0x11c] sm:$0xf] %v3488_v58  ;;  %v5642_v12 = vld [vmem:[#allocation4 + $0x68] sm:$0xf] }
 0x283   : > { %v6214_v24 = vld [vmem:[#allocation4 + $0x88] sm:$0xf0]  ;;  %7851 = vst [vmem:[#allocation16_spill] sm:$0xff] %v7635_v56 }
 0x284   : > { %4531 = vmatmul.bf16.gmra.mxu2 %v5711_v34  ;;  %v5643_v6 = vor.u32 %v6214_v24, %v5642_v12  ;;  %7852 = vst [vmem:[#allocation17_spill] sm:$0xff] %v7637_v50  ;;  %v5678_v28 = vld [vmem:[#allocation4 + $0xb0] sm:$0xf]  ;;  %v4372_v17 = vpop.f32.mrf.mxu1 }
 0x286   : > { %v6223_v60 = vld [vmem:[#allocation4 + $0xd0] sm:$0xf0] }
 0x287   : > { %v5679_v0 = vor.u32 %v6223_v60, %v5678_v28 }
 0x288   : > { %4545 = vmatmul.bf16.vlgmr.msra.gmra.mxu3 %v5607_v4  ;;  %v5714_v27 = vld [vmem:[#allocation4 + $0xf8] sm:$0xf] }
 0x289   : > { %v6232_v15 = vld [vmem:[#allocation4 + $0x118] sm:$0xf0] }
 0x28a   : > { %v4316_v53 = vpop.f32.mrf.mxu3  ;;  %v5715_v35 = vor.u32 %v6232_v15, %v5714_v27 }
 0x28b   : > { %4473 = vmatmul.bf16.gmra.mxu0 %v5703_v36  ;;  %v4401_v26 = vpop.f32.mrf.mxu2 }
 0x28c   : > { %v4374_v52 = vpop.f32.mrf.mxu1 }
 0x28d   : > { %v4343_v33 = vpop.f32.mrf.mxu0 }
 0x28e   : > { %v4344_v24 = vadd.f32 %v4343_v33, %v7627_v63 }
 0x293   : > { %v7633_v20 = vpop.f32.mrf.mxu3  ;;  %v4403_v49 = vpop.f32.mrf.mxu2 }
 0x295   : > { %v4345_v16 = vpop.f32.mrf.mxu0 }
 0x296   : > { %v4377_v2 = vpop.f32.mrf.mxu1  ;;  %v4346_v15 = vadd.f32 %v4345_v16, %v4316_v53 }
 0x298   : > { %4550 = vmatmul.bf16.gmra.mxu3 %v5643_v6  ;;  %v4373_v6 = vadd.f32 %v4372_v17, %v4344_v24  ;;  %v4375_v50 = vadd.f32 %v4374_v52, %v4346_v15  ;;  %v7688_v17 = vld [vmem:[%s7826_s4 + $0x4] ss:$0 sm:$0xff]  ;;  %v7693_v52 = vld [vmem:[%s7826_s4 + $0x2] ss:$0 sm:$0xff] }
 0x29a   : > { %v4402_v27 = vadd.f32 %v4401_v26, %v4373_v6 }
 0x29b   : > { %v7639_v21 = vpop.f32.mrf.mxu3 }
 0x29e   : > { %v4379_v30 = vpop.f32.mrf.mxu1 }
 0x29f   : > { %v4406_v57 = vpop.f32.mrf.mxu2 }
 0x2a7   : > { %v7649_v38 = vpop.f32.mrf.mxu2 }
 0x2a8   : > { %4555 = vmatmul.bf16.gmra.mxu3 %v5679_v0  ;;  %v4348_v13 = vpop.f32.mrf.mxu0 }
 0x2a9   : > { %v7641_v44 = vpop.f32.mrf.mxu3  ;;  %v4349_v37 = vadd.f32 %v4348_v13, %v7633_v20  ;;  %v7700_v20 = vld [vmem:[%s7826_s4 + $0x5] ss:$0 sm:$0xff] }
 0x2ab   : > { %v4378_v53 = vadd.f32 %v4377_v2, %v4349_v37 }
 0x2ac   : > { %v7653_v34 = vpop.f32.mrf.mxu1 }
 0x2ad   : > { %v4407_v13 = vadd.f32 %v4406_v57, %v4378_v53 }
 0x2b0   : > { %v4350_v18 = vpop.f32.mrf.mxu0 }
 0x2b1   : > { %v7643_v31 = vpop.f32.mrf.mxu3  ;;  %v4351_v37 = vadd.f32 %v4350_v18, %v7639_v21 }
 0x2b3   : > { %v7655_v10 = vpop.f32.mrf.mxu2  ;;  %v4380_v6 = vadd.f32 %v4379_v30, %v4351_v37 }
 0x2b4   : > { %v7659_v22 = vpop.f32.mrf.mxu1 }
 0x2b8   : > { %4560 = vmatmul.bf16.gmra.mxu3 %v5715_v35  ;;  %v7651_v8 = vpop.f32.mrf.mxu0 }
 0x2b9   : > { %v7645_v25 = vpop.f32.mrf.mxu3 }
 0x2bb   : > { %v7661_v19 = vpop.f32.mrf.mxu2 }
 0x2bc   : > { %v7665_v40 = vpop.f32.mrf.mxu1 }
 0x2c0   : > { %v7657_v45 = vpop.f32.mrf.mxu0 }
 0x2c1   : > { %v7647_v47 = vpop.f32.mrf.mxu3 }
 0x2c3   : > { %v7667_v51 = vpop.f32.mrf.mxu2 }
 0x2c4   : > { %v7673_v43 = vpop.f32.mrf.mxu1 }
 0x2c8   : > { %v7663_v62 = vpop.f32.mrf.mxu0 }
 0x2ca   : > { %v4430_v54 = vpop.f32.mrf.mxu3 }
 0x2cb   : > { %v7675_v58 = vpop.f32.mrf.mxu2  ;;  %v4431_v35 = vadd.f32 %v4430_v54, %v4402_v27  ;;  %v7706_v54 = vld [vmem:[%s7826_s4 + $0x3] ss:$0 sm:$0xff]  ;;  %v4409_v27 = vadd.f32 %v7649_v38, %v4380_v6 }
 0x2cc   : > { %7853 = vst [vmem:[#allocation18_spill] sm:$0xff] %v7675_v58  ;;  %v4488_v12 = vpop.f32.mrf.mxu1  ;;  %v4404_v58 = vadd.f32 %v4403_v49, %v4375_v50 }
 0x2d0   : > { %v7669_v7 = vpop.f32.mrf.mxu0 }
 0x2d2   : > { %v4432_v5 = vpop.f32.mrf.mxu3 }
 0x2d3   : > { %v4517_v60 = vpop.f32.mrf.mxu2  ;;  %v4433_v63 = vadd.f32 %v4432_v5, %v4404_v58 }
 0x2d4   : > { %v4490_v56 = vpop.f32.mrf.mxu1 }
 0x2d8   : > { %v4459_v29 = vpop.f32.mrf.mxu0 }
 0x2d9   : > { %v4460_v55 = vadd.f32 %v4459_v29, %v4431_v35 }
 0x2db   : > { %v4435_v23 = vpop.f32.mrf.mxu3  ;;  %v4519_v9 = vpop.f32.mrf.mxu2  ;;  %v4489_v33 = vadd.f32 %v4488_v12, %v4460_v55  ;;  %v2433_v55 = vmul.f32 %v7688_v17, %v7182_v1 }
 0x2dc   : > { %v4493_v50 = vpop.f32.mrf.mxu1  ;;  %v4436_v58 = vadd.f32 %v4435_v23, %v4407_v13 }
 0x2dd   : > { %v4518_v26 = vadd.f32 %v4517_v60, %v4489_v33  ;;  %v2443_v12 = vadd.f32 %v7700_v20, %v2433_v55  ;;  %v4356_v55 = vadd.f32 %v7657_v45, %v7643_v31 }
 0x2e0   : > { %v4461_v28 = vpop.f32.mrf.mxu0 }
 0x2e1   : > { %v4462_v16 = vadd.f32 %v4461_v28, %v4433_v63  ;;  %v2434_v28 = vmul.f32 %v7688_v17, %v7216_v61 }
 0x2e3   : > { %v4437_v46 = vpop.f32.mrf.mxu3  ;;  %v4522_v5 = vpop.f32.mrf.mxu2  ;;  %v4491_v29 = vadd.f32 %v4490_v56, %v4462_v16  ;;  %v4354_v56 = vadd.f32 %v7651_v8, %v7641_v44  ;;  %v2444_v61 = vadd.f32 %v7700_v20, %v2434_v28 }
 0x2e4   : > { %v4495_v30 = vpop.f32.mrf.mxu1  ;;  %v4438_v63 = vadd.f32 %v4437_v46, %v4409_v27 }
 0x2e5   : > { %v4520_v21 = vadd.f32 %v4519_v9, %v4491_v29 }
 0x2e8   : > { %v4464_v11 = vpop.f32.mrf.mxu0 }
 0x2e9   : > { %v4465_v18 = vadd.f32 %v4464_v11, %v4436_v58  ;;  %v4383_v11 = vadd.f32 %v7653_v34, %v4354_v56 }
 0x2eb   : > { %v7671_v4 = vpop.f32.mrf.mxu3  ;;  %v4494_v33 = vadd.f32 %v4493_v50, %v4465_v18  ;;  %v2435_v50 = vmul.f32 %v7688_v17, %v7256_v39  ;;  %v4385_v39 = vadd.f32 %v7659_v22, %v4356_v55 }
 0x2ed   : > { %v4523_v8 = vadd.f32 %v4522_v5, %v4494_v33 }
 0x2f0   : > { %v4466_v24 = vpop.f32.mrf.mxu0 }
 0x2f1   : > { %v4467_v16 = vadd.f32 %v4466_v24, %v4438_v63  ;;  %v2445_v24 = vadd.f32 %v7700_v20, %v2435_v50 }
 0x2f3   : > { %v7677_v36 = vpop.f32.mrf.mxu3  ;;  %v4496_v58 = vadd.f32 %v4495_v30, %v4467_v16 }
 0x2f8   : > { %v4469_v38 = vpop.f32.mrf.mxu0 }
 0x2fb   : > { %v7680_v0 = vpop.f32.mrf.mxu3 }
 0x303   : > { %v7682_v14 = vpop.f32.mrf.mxu3 }
 0x30b   : > { %v4546_v49 = vpop.f32.mrf.mxu3 }
 0x30c   : > { %v4547_v2 = vadd.f32 %v4546_v49, %v4518_v26  ;;  %v4524_v26 = vpop.f32.mrf.mxu2  ;;  %v4412_v49 = vadd.f32 %v7655_v10, %v4383_v11  ;;  %v4361_v11 = vadd.f32 %v7669_v7, %v7647_v47 }
 0x30d   : > { %v4525_v6 = vadd.f32 %v4524_v26, %v4496_v58 }
 0x30e   : > { %v4568_v1 = vmul.f32 %v7693_v52, %v4547_v2  ;;  %v4441_v2 = vadd.f32 %v7671_v4, %v4412_v49  ;;  %v2436_v4 = vmul.f32 %v7688_v17, %v7286_v3 }
 0x310   : > { %v4578_v57 = vadd.f32 %v7706_v54, %v4568_v1  ;;  %v4498_v1 = vpop.f32.mrf.mxu1  ;;  %v4470_v31 = vadd.f32 %v4469_v38, %v4441_v2  ;;  %v2446_v3 = vadd.f32 %v7700_v20, %v2436_v4  ;;  %v7856_v2 = vld [vmem:[#allocation18_spill] sm:$0xff]  ;;  %v7858_v4 = vld [vmem:[#allocation15_spill] sm:$0xff] }
 0x312   : > { %v4586_v60 = vadd.f32 %v4578_v57, %v2443_v12  ;;  %v4359_v57 = vadd.f32 %v7663_v62, %v7645_v25  ;;  %v2182_v62 = vadd.f32 %v7093_v59, %v7090_v41 }
 0x313   : > { %v4548_v23 = vpop.f32.mrf.mxu3 }
 0x314   : > { %vm4594_vm2 = vcmp.gt.f32.partialorder %v4586_v60, 0.0  ;;  %v4602_v15 = vmul.f32 0.01, %v4586_v60  ;;  %v4549_v35 = vadd.f32 %v4548_v23, %v4520_v21  ;;  %v4527_v12 = vpop.f32.mrf.mxu2  ;;  %v4471_v21 = vpop.f32.mrf.mxu0  ;;  %v4499_v23 = vadd.f32 %v4498_v1, %v4470_v31 }
 0x315   : > { %v2211_v41 = vadd.f32 %v7087_v42, %v2182_v62  ;;  %v7854_v42 = vld [vmem:[#allocation11_spill] sm:$0xff] }
 0x316   : > { %v4610_v53 = vsel %vm4594_vm2, %v4586_v60, %v4602_v15  ;;  %v4569_v9 = vmul.f32 %v7693_v52, %v4549_v35  ;;  %v4414_v60 = vadd.f32 %v7661_v19, %v4385_v39  ;;  %v4388_v35 = vadd.f32 %v7665_v40, %v4359_v57 }
 0x317   : > { %4618 = vst [vmem:[%s7721_s15] sm:$0xff] %v4610_v53  ;;  %v4528_v30 = vadd.f32 %v4527_v12, %v4499_v23 }
 0x318   : > { %v4579_v44 = vadd.f32 %v7706_v54, %v4569_v9  ;;  %v4443_v56 = vadd.f32 %v7677_v36, %v4414_v60  ;;  %v4500_v19 = vpop.f32.mrf.mxu1  ;;  %v2437_v36 = vmul.f32 %v7688_v17, %v7313_v48  ;;  %v4417_v53 = vadd.f32 %v7667_v51, %v4388_v35 }
 0x319   : > { %v2240_v48 = vadd.f32 %v7148_v32, %v2211_v41 }
 0x31a   : > { %v4587_v46 = vadd.f32 %v4579_v44, %v2444_v61  ;;  %v4472_v63 = vadd.f32 %v4471_v21, %v4443_v56  ;;  %v4446_v44 = vadd.f32 %v7680_v0, %v4417_v53  ;;  %v2447_v51 = vadd.f32 %v7700_v20, %v2437_v36  ;;  %v7855_v0 = vld [vmem:[#allocation13_spill] sm:$0xff]  ;;  %v7860_v56 = vld [vmem:[#allocation16_spill] sm:$0xff] }
 0x31b   : > { %v4551_v34 = vpop.f32.mrf.mxu3  ;;  %v2438_v55 = vmul.f32 %v7688_v17, %v7855_v0 }
 0x31c   : > { %vm4595_vm14 = vcmp.gt.f32.partialorder %v4587_v46, 0.0  ;;  %v4603_v13 = vmul.f32 0.01, %v4587_v46  ;;  %v4552_v37 = vadd.f32 %v4551_v34, %v4523_v8  ;;  %v4529_v9 = vpop.f32.mrf.mxu2  ;;  %v4474_v59 = vpop.f32.mrf.mxu0  ;;  %v4501_v38 = vadd.f32 %v4500_v19, %v4472_v63  ;;  %v7861_v63 = vld [vmem:[#allocation17_spill] sm:$0xff] }
 0x31d   : > { %v4475_v50 = vadd.f32 %v4474_v59, %v4446_v44  ;;  %v2269_v34 = vadd.f32 %v7854_v42, %v2240_v48  ;;  %v2448_v31 = vadd.f32 %v7700_v20, %v2438_v55 }
 0x31e   : > { %v4611_v29 = vsel %vm4595_vm14, %v4587_v46, %v4603_v13  ;;  %v4570_v5 = vmul.f32 %v7693_v52, %v4552_v37  ;;  %v4390_v46 = vadd.f32 %v7673_v43, %v4361_v11  ;;  %v4530_v7 = vadd.f32 %v4529_v9, %v4501_v38 }
 0x31f   : > { %4619 = vst [vmem:[%s7721_s15 + $0x8] sm:$0xff] %v4611_v29 }
 0x320   : > { %v4580_v10 = vadd.f32 %v7706_v54, %v4570_v5  ;;  %v4503_v13 = vpop.f32.mrf.mxu1  ;;  %v4419_v32 = vadd.f32 %v7856_v2, %v4390_v46  ;;  %v7857_v5 = vld [vmem:[#allocation12_spill] sm:$0xff] }
 0x321   : > { %v2298_v43 = vadd.f32 %v7857_v5, %v2269_v34  ;;  %v4504_v39 = vadd.f32 %v4503_v13, %v4475_v50 }
 0x322   : > { %v4588_v45 = vadd.f32 %v4580_v10, %v2445_v24  ;;  %v4448_v24 = vadd.f32 %v7682_v14, %v4419_v32 }
 0x323   : > { %v4553_v18 = vpop.f32.mrf.mxu3  ;;  %v2327_v57 = vadd.f32 %v7858_v4, %v2298_v43 }
 0x324   : > { %vm4596_vm15 = vcmp.gt.f32.partialorder %v4588_v45, 0.0  ;;  %v4604_v28 = vmul.f32 0.01, %v4588_v45  ;;  %v4554_v22 = vadd.f32 %v4553_v18, %v4525_v6  ;;  %v4532_v1 = vpop.f32.mrf.mxu2  ;;  %v4476_v6 = vpop.f32.mrf.mxu0 }
 0x325   : > { %v4533_v21 = vadd.f32 %v4532_v1, %v4504_v39  ;;  %v4477_v18 = vadd.f32 %v4476_v6, %v4448_v24  ;;  %v2356_v23 = vadd.f32 %v7860_v56, %v2327_v57 }
 0x326   : > { %v4612_v27 = vsel %vm4596_vm15, %v4588_v45, %v4604_v28  ;;  %v4571_v15 = vmul.f32 %v7693_v52, %v4554_v22  ;;  %v7859_v28 = vld [vmem:[#allocation14_spill] sm:$0xff] }
 0x327   : > { %4620 = vst [vmem:[%s7721_s15 + $0x10] sm:$0xff] %v4612_v27  ;;  %v2439_v22 = vmul.f32 %v7688_v17, %v7859_v28 }
 0x328   : > { %v4581_v25 = vadd.f32 %v7706_v54, %v4571_v15  ;;  %v4505_v35 = vpop.f32.mrf.mxu1 }
 0x32a   : > { %v4589_v33 = vadd.f32 %v4581_v25, %v2446_v3  ;;  %v4506_v3 = vadd.f32 %v4505_v35, %v4477_v18 }
 0x32b   : > { %v4556_v40 = vpop.f32.mrf.mxu3 }
 0x32c   : > { %vm4597_vm0 = vcmp.gt.f32.partialorder %v4589_v33, 0.0  ;;  %v4605_v26 = vmul.f32 0.01, %v4589_v33  ;;  %v4557_v61 = vadd.f32 %v4556_v40, %v4528_v30  ;;  %v4534_v19 = vpop.f32.mrf.mxu2  ;;  %v2449_v30 = vadd.f32 %v7700_v20, %v2439_v22 }
 0x32d   : > { %v4535_v53 = vadd.f32 %v4534_v19, %v4506_v3 }
 0x32e   : > { %v4613_v8 = vsel %vm4597_vm0, %v4589_v33, %v4605_v26  ;;  %v4572_v16 = vmul.f32 %v7693_v52, %v4557_v61  ;;  %v2385_v33 = vadd.f32 %v7861_v63, %v2356_v23 }
 0x32f   : > { %4621 = vst [vmem:[%s7721_s15 + $0x18] sm:$0xff] %v4613_v8 }
 0x330   : > { %v4582_v47 = vadd.f32 %v7706_v54, %v4572_v16  ;;  %v2440_v11 = vmul.f32 %v7688_v17, %v2385_v33 }
 0x332   : > { %v4590_v49 = vadd.f32 %v4582_v47, %v2447_v51  ;;  %v2450_v44 = vadd.f32 %v7700_v20, %v2440_v11 }
 0x333   : > { %v4558_v37 = vpop.f32.mrf.mxu3 }
 0x334   : > { %vm4598_vm1 = vcmp.gt.f32.partialorder %v4590_v49, 0.0  ;;  %v4606_v58 = vmul.f32 0.01, %v4590_v49  ;;  %v4559_v29 = vadd.f32 %v4558_v37, %v4530_v7 }
 0x336   : > { %v4614_v10 = vsel %vm4598_vm1, %v4590_v49, %v4606_v58  ;;  %v4573_v12 = vmul.f32 %v7693_v52, %v4559_v29 }
 0x337   : > { %4622 = vst [vmem:[%s7721_s15 + $0x20] sm:$0xff] %v4614_v10 }
 0x338   : > { %v4583_v45 = vadd.f32 %v7706_v54, %v4573_v12 }
 0x33a   : > { %v4591_v60 = vadd.f32 %v4583_v45, %v2448_v31 }
 0x33b   : > { %v4561_v14 = vpop.f32.mrf.mxu3 }
 0x33c   : > { %vm4599_vm3 = vcmp.gt.f32.partialorder %v4591_v60, 0.0  ;;  %v4607_v27 = vmul.f32 0.01, %v4591_v60  ;;  %v4562_v15 = vadd.f32 %v4561_v14, %v4533_v21 }
 0x33e   : > { %v4615_v25 = vsel %vm4599_vm3, %v4591_v60, %v4607_v27  ;;  %v4574_v62 = vmul.f32 %v7693_v52, %v4562_v15 }
 0x33f   : > { %4623 = vst [vmem:[%s7721_s15 + $0x28] sm:$0xff] %v4615_v25 }
 0x340   : > { %v4584_v36 = vadd.f32 %v7706_v54, %v4574_v62 }
 0x342   : > { %v4592_v9 = vadd.f32 %v4584_v36, %v2449_v30 }
 0x343   : > { %v4563_v40 = vpop.f32.mrf.mxu3 }
 0x344   : > { %vm4600_vm4 = vcmp.gt.f32.partialorder %v4592_v9, 0.0  ;;  %v4608_v26 = vmul.f32 0.01, %v4592_v9  ;;  %v4564_v61 = vadd.f32 %v4563_v40, %v4535_v53 }
 0x346   : > { %v4616_v41 = vsel %vm4600_vm4, %v4592_v9, %v4608_v26  ;;  %v4575_v59 = vmul.f32 %v7693_v52, %v4564_v61 }
 0x347   : > { %4624 = vst [vmem:[%s7721_s15 + $0x30] sm:$0xff] %v4616_v41 }
 0x348   : > { %v4585_v38 = vadd.f32 %v7706_v54, %v4575_v59 }
 0x34a   : > { %v4593_v17 = vadd.f32 %v4585_v38, %v2450_v44 }
 0x34c   : > { %vm4601_vm5 = vcmp.gt.f32.partialorder %v4593_v17, 0.0  ;;  %v4609_v8 = vmul.f32 0.01, %v4593_v17 }
 0x34e   : > { %v4617_v16 = vsel %vm4601_vm5, %v4593_v17, %v4609_v8 }
 0x34f   : > { %4625 = vst [vmem:[%s7721_s15 + $0x38] sm:$0xff] %v4617_v16 }
 0x350   : > { %6425 = shalt.err (!%p6422_p8)
}
 0x351   : > { %s6470_s13 = smov 128   ;;  %s6471_s14 = smov 8  }
 0x352   : > { %6311 = dma.vmem_to_hbm [thread:$0]  (%p6540_p5), %s4640_s26, 1024, %s4642_s30, %s4627_s22, %s6470_s13, %s6470_s13, %s6471_s14  }
 0x353 PF: > { %p6323_p9 = scmp.ge.s32.totalorder %s6464_s21, 2  ;;  %s4656_s15 = sand.u32 1, %s6452_s18  }
 0x354   : > { %s4657_s16 = scalar_lea.sflag [#allocation7], %s4656_s15 }
 0x355   : > { %p6318_p10 = pnand %p6323_p9, %p6544_p6 }
 0x357   : > { %p6319_p11 = pneg %p6318_p10 }
 0x359   : > { %6447 = dma.done.wait (%p6319_p11), %s4657_s16, 1024  }
 0x35a   : > { %6449 = vsyncadd (%p6319_p11), %s4657_s16, 4294966272  ;;  %p16_p12 = scmp.ge.s32.totalorder %s6527_s24, 4   ;;  %s7862_s18 = smov %s6456_s19 }
 0x35b   : > { %s7863_s19 = smov %s6460_s20  ;;  %s7864_s20 = smov %s6538_s27 }
 0x35c   : > { %s7865_s21 = smov %s6527_s24  ;;  %18 = sbr.rel (!%p16_p12) target bundleno = 4 (0x4), region = 88 }
 0x361   :  { %4663 = vsyncpa [#allocation6], 1 }
 0x362   :  { %4665 = vsyncpa [#allocation6 + $0x1], 1 }
 0x363   :  { %4666 = vsyncpa [#allocation7], 1 }
 0x364   :  { %4668 = vsyncpa [#allocation7 + $0x1], 1 }

</bundles_post_ra>
